<compile_context>
chip_gen: v7x
topology: tpu7x:2x2x1
jax: 0.10.0
libtpu: 0.0.40
codegen_flags: <defaults>
</compile_context>

<pallas_src>
import functools

import jax
import jax.numpy as jnp
from jax.experimental import pallas as pl
from jax.experimental.pallas import tpu as pltpu


def _gelu(x):
    # tanh-approximate GELU (monadic op choice); dtype follows x (bf16 on v6e/v7x)
    return 0.5 * x * (1.0 + jnp.tanh(0.7978845608028654 * (x + 0.044715 * x * x * x)))


def _round_up(n, m):
    return ((n + m - 1) // m) * m


def encoder_full_kernel(x_ref, wup_ref, wmh0_ref, wmh1_ref, wdn_ref, wml0_ref,
                        out_ref, *, ew_dtype):
    cd = wup_ref.dtype                     # MXU operand dtype (bf16)
    D = wmh0_ref.shape[0]

    x = x_ref[...]                         # (T, H), already compute dtype

    # fused up projections: HSIZE -> 2*d_inner, f32 accumulation
    xup = jnp.dot(x, wup_ref[...], preferred_element_type=jnp.float32)

    # take the cheap branch off xup immediately so the f32 (T, 2D) buffer dies
    # before the high-branch matmuls (128-aligned slices -> views, no copies)
    mona_h1 = jnp.maximum(xup[:, D:], 0.0).astype(ew_dtype)   # MonadicOperators_high[1]
    xup1 = xup[:, :D].astype(cd)

    # high branch: ModelingOp_h[1]( MonadicOp_h[0]( ModelingOp_h[0](xup1) ) )
    h = jnp.dot(xup1, wmh0_ref[...], preferred_element_type=jnp.float32)
    h = _gelu(h.astype(ew_dtype))                              # MonadicOperators_high[0]
    model_h1 = jnp.dot(h.astype(cd), wmh1_ref[...],
                       preferred_element_type=jnp.float32).astype(ew_dtype)

    # BinaryOperators[0] = add, then down projection d_inner -> HSIZE
    xdown = jnp.dot((model_h1 + mona_h1).astype(cd), wdn_ref[...],
                    preferred_element_type=jnp.float32)

    # low branch
    mona_l0 = _gelu(xdown.astype(ew_dtype))                    # MonadicOperators_low[0]
    model_l = jnp.dot(mona_l0.astype(cd), wml0_ref[...],       # ModelingOperators_low[0]
                      preferred_element_type=jnp.float32).astype(ew_dtype)

    # BinaryOperators[1] = add, MonadicOperators_low[1] = ReLU
    out = jnp.maximum(model_l + mona_l0, 0.0)
    out_ref[...] = out.astype(out_ref.dtype)


def _chip_defaults():
    """Generation-aware (elementwise dtype, vmem_limit_bytes)."""
    kind = ""
    try:
        kind = jax.devices()[0].device_kind.lower()
    except Exception:
        pass
    vmem_cap = 64 * 1024 * 1024            # conservative default (v7x per-TC)
    try:
        vmem_cap = int(pltpu.get_tpu_info().vmem_capacity_bytes)
    except Exception:
        if "v5" in kind or "v6" in kind:
            vmem_cap = 128 * 1024 * 1024   # v5e / v6e physical VMEM
    # leave ~16 MiB headroom for compiler scratch + double-buffered x/out tiles
    vmem_limit = max(32 * 1024 * 1024, vmem_cap - 16 * 1024 * 1024)
    # v5e has no bf16 VPU/EUP -> keep the elementwise chain in f32 there
    ew_dtype = jnp.float32 if "v5" in kind else jnp.bfloat16
    return ew_dtype, vmem_limit


def init_params(key, hsize, d_inner, dtype=jnp.float32):
    ks = jax.random.split(key, 6)
    scale = 0.05
    return {
        "wu1":  (scale * jax.random.normal(ks[0], (hsize, d_inner))).astype(dtype),
        "wu2":  (scale * jax.random.normal(ks[1], (hsize, d_inner))).astype(dtype),
        "wmh0": (scale * jax.random.normal(ks[2], (d_inner, d_inner))).astype(dtype),
        "wmh1": (scale * jax.random.normal(ks[3], (d_inner, d_inner))).astype(dtype),
        "wdn":  (scale * jax.random.normal(ks[4], (d_inner, hsize))).astype(dtype),
        "wml0": (scale * jax.random.normal(ks[5], (hsize, hsize))).astype(dtype),
    }


def pack_params(params, compute_dtype=jnp.bfloat16):
    """Fuse up1/up2 and zero-pad feature dims to multiples of 128 (exact)."""
    H0, D0 = params["wu1"].shape
    H = _round_up(H0, 128)
    D = _round_up(D0, 128)

    def pad(w, r, c):
        return jnp.pad(w, ((0, r - w.shape[0]), (0, c - w.shape[1])))

    wup = jnp.concatenate([pad(params["wu1"], H, D),
                           pad(params["wu2"], H, D)], axis=1)     # (H, 2D)
    return {
        "wup":  wup.astype(compute_dtype),
        "wmh0": pad(params["wmh0"], D, D).astype(compute_dtype),
        "wmh1": pad(params["wmh1"], D, D).astype(compute_dtype),
        "wdn":  pad(params["wdn"],  D, H).astype(compute_dtype),
        "wml0": pad(params["wml0"], H, H).astype(compute_dtype),
    }


def encoder_full(x, packed, *, tile_rows=512, out_dtype=None):
    """x: (B, S, HSIZE) -> (B, S, HSIZE). `packed` from pack_params()."""
    B, S, H0 = x.shape
    H = packed["wml0"].shape[0]            # padded HSIZE   (multiple of 128)
    D = packed["wmh0"].shape[0]            # padded d_inner (multiple of 128)
    cd = packed["wup"].dtype
    out_dtype = x.dtype if out_dtype is None else out_dtype
    ew_dtype, vmem_limit = _chip_defaults()

    # x blocks are bf16 -> packed sublane tile is (16, 128)
    row_align = 16
    assert tile_rows % row_align == 0

    N = B * S
    tr = min(tile_rows, _round_up(N, row_align))
    # prefer >= 2 grid steps so both v7x TensorCores get work on the
    # "parallel" row axis
    if _round_up(N, tr) // tr < 2 and N > row_align:
        tr = _round_up(pl.cdiv(N, 2), row_align)
    Np = _round_up(N, tr)

    xf = x.reshape(N, H0)
    if Np != N or H != H0:
        # zero padding is exact: gelu(0)=relu(0)=0 and the genotype has no bias
        xf = jnp.pad(xf, ((0, Np - N), (0, H - H0)))
    xf = xf.astype(cd)

    grid = (Np // tr,)

    weight_bytes = sum(int(packed[k].size) * packed[k].dtype.itemsize
                       for k in ("wup", "wmh0", "wmh1", "wdn", "wml0"))
    io_bytes = (int(xf.size) * xf.dtype.itemsize
                + Np * H * jnp.dtype(out_dtype).itemsize)
    cost = pl.CostEstimate(
        flops=2 * Np * (H * 2 * D + 2 * D * D + D * H + H * H),
        transcendentals=Np * (D + H),          # tanh in the two GELUs
        bytes_accessed=weight_bytes + io_bytes,
    )

    kernel = functools.partial(encoder_full_kernel, ew_dtype=ew_dtype)

    def run(single_buffer_weights):
        if single_buffer_weights:
            # constant index_map -> resident weights; double-buffering them
            # would just double weight VMEM for nothing
            w_spec = lambda shape: pl.BlockSpec(shape, lambda i: (0, 0),
                                                pipeline_mode=pl.Buffered(1))
        else:
            w_spec = lambda shape: pl.BlockSpec(shape, lambda i: (0, 0))
        return pl.pallas_call(
            kernel,
            out_shape=jax.ShapeDtypeStruct((Np, H), out_dtype),
            grid_spec=pltpu.PrefetchScalarGridSpec(
                num_scalar_prefetch=0,
                grid=grid,
                in_specs=[
                    pl.BlockSpec((tr, H), lambda i: (i, 0)),  # x rows
                    w_spec((H, 2 * D)),   # fused up1|up2
                    w_spec((D, D)),       # ModelingOperators_high[0]
                    w_spec((D, D)),       # ModelingOperators_high[1]
                    w_spec((D, H)),       # down
                    w_spec((H, H)),       # ModelingOperators_low[0]
                ],
                out_specs=pl.BlockSpec((tr, H), lambda i: (i, 0)),
            ),
            compiler_params=pltpu.CompilerParams(
                dimension_semantics=("parallel",),
                vmem_limit_bytes=vmem_limit,
            ),
            cost_estimate=cost,
        )(xf, packed["wup"], packed["wmh0"], packed["wmh1"],
          packed["wdn"], packed["wml0"])

    try:
        out = run(True)
    except Exception:
        # TODO(synk): pl.Buffered(1) rejected on this jax build; fall back to
        # default double-buffered weight specs (correctness unchanged).
        out = run(False)

    return out[:N, :H0].reshape(B, S, H0)


def encoder_full_ref(x, params, compute_dtype=jnp.bfloat16):
    """Pure-JAX reference: bf16 MXU operands, f32 accumulation/elementwise."""
    cd = compute_dtype
    dot = lambda a, w: jnp.dot(a.astype(cd), w.astype(cd),
                               preferred_element_type=jnp.float32)
    xup1 = dot(x, params["wu1"])
    xup2 = dot(x, params["wu2"])
    model_h1 = dot(_gelu(dot(xup1, params["wmh0"])), params["wmh1"])
    mona_h1 = jnp.maximum(xup2, 0.0)
    xdown = dot(model_h1 + mona_h1, params["wdn"])
    mona_l0 = _gelu(xdown)
    model_l = dot(mona_l0, params["wml0"])
    return jnp.maximum(model_l + mona_l0, 0.0)


if __name__ == "__main__":
    key = jax.random.PRNGKey(0)
    kx, kp, kx2, kp2 = jax.random.split(key, 4)

    # Test 1: lane-dense dims (multiples of 128); N=512 rows -> 2 parallel steps.
    B, S, HSIZE, D_INNER = 4, 128, 128, 256
    x = jax.random.normal(kx, (B, S, HSIZE), dtype=jnp.float32)
    params = init_params(kp, HSIZE, D_INNER)
    out = jax.block_until_ready(encoder_full(x, pack_params(params)))
    ref = encoder_full_ref(x, params)
    assert out.shape == (B, S, HSIZE)
    # bf16 elementwise on v6e/v7x -> slightly looser tolerance than pure-f32
    assert jnp.allclose(out, ref, atol=2e-2, rtol=2e-2), \
        float(jnp.max(jnp.abs(out - ref)))

    # Test 2: awkward dims -> exercises feature-dim and row-count zero-padding
    # plus the even-grid (>= 2 steps) logic for tiny row counts.
    B2, S2, H2, D2 = 2, 10, 80, 96
    x2 = jax.random.normal(kx2, (B2, S2, H2), dtype=jnp.float32)
    params2 = init_params(kp2, H2, D2)
    out2 = jax.block_until_ready(encoder_full(x2, pack_params(params2)))
    ref2 = encoder_full_ref(x2, params2)
    assert out2.shape == (B2, S2, H2)
    assert jnp.allclose(out2, ref2, atol=2e-2, rtol=2e-2), \
        float(jnp.max(jnp.abs(out2 - ref2)))

    print("KERNEL_OK")
</pallas_src>

<mosaic_0001>
module attributes {stable_mosaic.version = 11 : i64} {
  func.func @encoder_full_kernel(%arg0: i32, %arg1: memref<256x128xbf16, #tpu.memory_space<vmem>>, %arg2: memref<128x512xbf16, #tpu.memory_space<vmem>>, %arg3: memref<256x256xbf16, #tpu.memory_space<vmem>>, %arg4: memref<256x256xbf16, #tpu.memory_space<vmem>>, %arg5: memref<256x128xbf16, #tpu.memory_space<vmem>>, %arg6: memref<128x128xbf16, #tpu.memory_space<vmem>>, %arg7: memref<256x128xf32, #tpu.memory_space<vmem>>) attributes {dimension_semantics = [#tpu.dimension_semantics<parallel>], iteration_bounds = array<i64: 2>, scalar_prefetch = 0 : i64, scratch_operands = 0 : i64, tpu.core_type = #tpu.core_type<tc>, window_params = [{transform_indices = @transform_0, window_bounds = array<i64: 256, 128>}, {pipeline_mode = #tpu.pipeline_mode<synchronous>, transform_indices = @transform_1, window_bounds = array<i64: 128, 512>}, {pipeline_mode = #tpu.pipeline_mode<synchronous>, transform_indices = @transform_2, window_bounds = array<i64: 256, 256>}, {pipeline_mode = #tpu.pipeline_mode<synchronous>, transform_indices = @transform_3, window_bounds = array<i64: 256, 256>}, {pipeline_mode = #tpu.pipeline_mode<synchronous>, transform_indices = @transform_4, window_bounds = array<i64: 256, 128>}, {pipeline_mode = #tpu.pipeline_mode<synchronous>, transform_indices = @transform_5, window_bounds = array<i64: 128, 128>}, {transform_indices = @transform_6, window_bounds = array<i64: 256, 128>}]} {
    %c0 = arith.constant 0 : index
    %c0_0 = arith.constant 0 : index
    %0 = vector.load %arg1[%c0, %c0_0] : memref<256x128xbf16, #tpu.memory_space<vmem>>, vector<256x128xbf16>
    %c0_1 = arith.constant 0 : index
    %c0_2 = arith.constant 0 : index
    %1 = vector.load %arg2[%c0_1, %c0_2] : memref<128x512xbf16, #tpu.memory_space<vmem>>, vector<128x512xbf16>
    %cst = arith.constant dense<0.000000e+00> : vector<256x512xf32>
    %2 = tpu.matmul %0, %1, %cst {dimension_numbers = #tpu.dot_dimension_numbers<[1], [0], [0], [1], [0, 0, 1, 1], [], []>} : vector<256x128xbf16>, vector<128x512xbf16>, vector<256x512xf32> -> vector<256x512xf32>
    %3 = vector.extract_strided_slice %2 {offsets = [0, 256], sizes = [256, 256], strides = [1, 1]} : vector<256x512xf32> to vector<256x256xf32>
    %cst_3 = arith.constant 0.000000e+00 : f32
    %4 = vector.broadcast %cst_3 : f32 to vector<256x256xf32>
    %5 = arith.maximumf %3, %4 : vector<256x256xf32>
    %6 = arith.truncf %5 : vector<256x256xf32> to vector<256x256xbf16>
    %7 = vector.extract_strided_slice %2 {offsets = [0, 0], sizes = [256, 256], strides = [1, 1]} : vector<256x512xf32> to vector<256x256xf32>
    %8 = arith.truncf %7 : vector<256x256xf32> to vector<256x256xbf16>
    %c0_4 = arith.constant 0 : index
    %c0_5 = arith.constant 0 : index
    %9 = vector.load %arg3[%c0_4, %c0_5] : memref<256x256xbf16, #tpu.memory_space<vmem>>, vector<256x256xbf16>
    %cst_6 = arith.constant dense<0.000000e+00> : vector<256x256xf32>
    %10 = tpu.matmul %8, %9, %cst_6 {dimension_numbers = #tpu.dot_dimension_numbers<[1], [0], [0], [1], [0, 0, 1, 1], [], []>} : vector<256x256xbf16>, vector<256x256xbf16>, vector<256x256xf32> -> vector<256x256xf32>
    %11 = arith.truncf %10 : vector<256x256xf32> to vector<256x256xbf16>
    %cst_7 = arith.constant 5.000000e-01 : bf16
    %12 = vector.broadcast %cst_7 : bf16 to vector<256x256xbf16>
    %13 = arith.mulf %12, %11 : vector<256x256xbf16>
    %cst_8 = arith.constant 4.467770e-02 : bf16
    %14 = vector.broadcast %cst_8 : bf16 to vector<256x256xbf16>
    %15 = arith.mulf %14, %11 : vector<256x256xbf16>
    %16 = arith.mulf %15, %11 : vector<256x256xbf16>
    %17 = arith.mulf %16, %11 : vector<256x256xbf16>
    %18 = arith.addf %11, %17 : vector<256x256xbf16>
    %cst_9 = arith.constant 7.968750e-01 : bf16
    %19 = vector.broadcast %cst_9 : bf16 to vector<256x256xbf16>
    %20 = arith.mulf %19, %18 : vector<256x256xbf16>
    %21 = math.tanh %20 : vector<256x256xbf16>
    %cst_10 = arith.constant 1.000000e+00 : bf16
    %22 = vector.broadcast %cst_10 : bf16 to vector<256x256xbf16>
    %23 = arith.addf %22, %21 : vector<256x256xbf16>
    %24 = arith.mulf %13, %23 : vector<256x256xbf16>
    %c0_11 = arith.constant 0 : index
    %c0_12 = arith.constant 0 : index
    %25 = vector.load %arg4[%c0_11, %c0_12] : memref<256x256xbf16, #tpu.memory_space<vmem>>, vector<256x256xbf16>
    %cst_13 = arith.constant dense<0.000000e+00> : vector<256x256xf32>
    %26 = tpu.matmul %24, %25, %cst_13 {dimension_numbers = #tpu.dot_dimension_numbers<[1], [0], [0], [1], [0, 0, 1, 1], [], []>} : vector<256x256xbf16>, vector<256x256xbf16>, vector<256x256xf32> -> vector<256x256xf32>
    %27 = arith.truncf %26 : vector<256x256xf32> to vector<256x256xbf16>
    %28 = arith.addf %27, %6 : vector<256x256xbf16>
    %c0_14 = arith.constant 0 : index
    %c0_15 = arith.constant 0 : index
    %29 = vector.load %arg5[%c0_14, %c0_15] : memref<256x128xbf16, #tpu.memory_space<vmem>>, vector<256x128xbf16>
    %cst_16 = arith.constant dense<0.000000e+00> : vector<256x128xf32>
    %30 = tpu.matmul %28, %29, %cst_16 {dimension_numbers = #tpu.dot_dimension_numbers<[1], [0], [0], [1], [0, 0, 1, 1], [], []>} : vector<256x256xbf16>, vector<256x128xbf16>, vector<256x128xf32> -> vector<256x128xf32>
    %31 = arith.truncf %30 : vector<256x128xf32> to vector<256x128xbf16>
    %cst_17 = arith.constant 5.000000e-01 : bf16
    %32 = vector.broadcast %cst_17 : bf16 to vector<256x128xbf16>
    %33 = arith.mulf %32, %31 : vector<256x128xbf16>
    %cst_18 = arith.constant 4.467770e-02 : bf16
    %34 = vector.broadcast %cst_18 : bf16 to vector<256x128xbf16>
    %35 = arith.mulf %34, %31 : vector<256x128xbf16>
    %36 = arith.mulf %35, %31 : vector<256x128xbf16>
    %37 = arith.mulf %36, %31 : vector<256x128xbf16>
    %38 = arith.addf %31, %37 : vector<256x128xbf16>
    %cst_19 = arith.constant 7.968750e-01 : bf16
    %39 = vector.broadcast %cst_19 : bf16 to vector<256x128xbf16>
    %40 = arith.mulf %39, %38 : vector<256x128xbf16>
    %41 = math.tanh %40 : vector<256x128xbf16>
    %cst_20 = arith.constant 1.000000e+00 : bf16
    %42 = vector.broadcast %cst_20 : bf16 to vector<256x128xbf16>
    %43 = arith.addf %42, %41 : vector<256x128xbf16>
    %44 = arith.mulf %33, %43 : vector<256x128xbf16>
    %c0_21 = arith.constant 0 : index
    %c0_22 = arith.constant 0 : index
    %45 = vector.load %arg6[%c0_21, %c0_22] : memref<128x128xbf16, #tpu.memory_space<vmem>>, vector<128x128xbf16>
    %cst_23 = arith.constant dense<0.000000e+00> : vector<256x128xf32>
    %46 = tpu.matmul %44, %45, %cst_23 {dimension_numbers = #tpu.dot_dimension_numbers<[1], [0], [0], [1], [0, 0, 1, 1], [], []>} : vector<256x128xbf16>, vector<128x128xbf16>, vector<256x128xf32> -> vector<256x128xf32>
    %47 = arith.truncf %46 : vector<256x128xf32> to vector<256x128xbf16>
    %48 = arith.addf %47, %44 : vector<256x128xbf16>
    %cst_24 = arith.constant 0.000000e+00 : bf16
    %49 = vector.broadcast %cst_24 : bf16 to vector<256x128xbf16>
    %50 = arith.maximumf %48, %49 : vector<256x128xbf16>
    %51 = arith.extf %50 : vector<256x128xbf16> to vector<256x128xf32>
    %c0_25 = arith.constant 0 : index
    %c0_26 = arith.constant 0 : index
    %52 = vector.load %arg7[%c0_25, %c0_26] : memref<256x128xf32, #tpu.memory_space<vmem>>, vector<256x128xf32>
    tpu.vector_store %arg7[%c0_25, %c0_26], %51 {strides = array<i32>} : memref<256x128xf32, #tpu.memory_space<vmem>>, vector<256x128xf32>,
    return
  }
  func.func @transform_0(%arg0: i32) -> (i32, i32) {
    %c0_i32 = arith.constant 0 : i32
    %c0_i32_0 = arith.constant 0 : i32
    return %arg0, %c0_i32 : i32, i32
  }
  func.func @transform_1(%arg0: i32) -> (i32, i32) {
    %c0_i32 = arith.constant 0 : i32
    %c0_i32_0 = arith.constant 0 : i32
    %c0_i32_1 = arith.constant 0 : i32
    return %c0_i32, %c0_i32_0 : i32, i32
  }
  func.func @transform_2(%arg0: i32) -> (i32, i32) {
    %c0_i32 = arith.constant 0 : i32
    %c0_i32_0 = arith.constant 0 : i32
    %c0_i32_1 = arith.constant 0 : i32
    return %c0_i32, %c0_i32_0 : i32, i32
  }
  func.func @transform_3(%arg0: i32) -> (i32, i32) {
    %c0_i32 = arith.constant 0 : i32
    %c0_i32_0 = arith.constant 0 : i32
    %c0_i32_1 = arith.constant 0 : i32
    return %c0_i32, %c0_i32_0 : i32, i32
  }
  func.func @transform_4(%arg0: i32) -> (i32, i32) {
    %c0_i32 = arith.constant 0 : i32
    %c0_i32_0 = arith.constant 0 : i32
    %c0_i32_1 = arith.constant 0 : i32
    return %c0_i32, %c0_i32_0 : i32, i32
  }
  func.func @transform_5(%arg0: i32) -> (i32, i32) {
    %c0_i32 = arith.constant 0 : i32
    %c0_i32_0 = arith.constant 0 : i32
    %c0_i32_1 = arith.constant 0 : i32
    return %c0_i32, %c0_i32_0 : i32, i32
  }
  func.func @transform_6(%arg0: i32) -> (i32, i32) {
    %c0_i32 = arith.constant 0 : i32
    %c0_i32_0 = arith.constant 0 : i32
    return %arg0, %c0_i32 : i32, i32
  }
}

module attributes {stable_mosaic.version = 11 : i64} {
  func.func @encoder_full_kernel(%arg0: i32, %arg1: memref<256x128xbf16, #tpu.memory_space<vmem>>, %arg2: memref<128x512xbf16, #tpu.memory_space<vmem>>, %arg3: memref<256x256xbf16, #tpu.memory_space<vmem>>, %arg4: memref<256x256xbf16, #tpu.memory_space<vmem>>, %arg5: memref<256x128xbf16, #tpu.memory_space<vmem>>, %arg6: memref<128x128xbf16, #tpu.memory_space<vmem>>, %arg7: memref<256x128xf32, #tpu.memory_space<vmem>>) attributes {dimension_semantics = [#tpu.dimension_semantics<parallel>], iteration_bounds = array<i64: 2>, scalar_prefetch = 0 : i64, scratch_operands = 0 : i64, tpu.core_type = #tpu.core_type<tc>, window_params = [{transform_indices = @transform_0, window_bounds = array<i64: 256, 128>}, {pipeline_mode = #tpu.pipeline_mode<synchronous>, transform_indices = @transform_1, window_bounds = array<i64: 128, 512>}, {pipeline_mode = #tpu.pipeline_mode<synchronous>, transform_indices = @transform_2, window_bounds = array<i64: 256, 256>}, {pipeline_mode = #tpu.pipeline_mode<synchronous>, transform_indices = @transform_3, window_bounds = array<i64: 256, 256>}, {pipeline_mode = #tpu.pipeline_mode<synchronous>, transform_indices = @transform_4, window_bounds = array<i64: 256, 128>}, {pipeline_mode = #tpu.pipeline_mode<synchronous>, transform_indices = @transform_5, window_bounds = array<i64: 128, 128>}, {transform_indices = @transform_6, window_bounds = array<i64: 256, 128>}]} {
    %c0 = arith.constant 0 : index
    %c0_0 = arith.constant 0 : index
    %0 = vector.load %arg1[%c0, %c0_0] : memref<256x128xbf16, #tpu.memory_space<vmem>>, vector<256x128xbf16>
    %c0_1 = arith.constant 0 : index
    %c0_2 = arith.constant 0 : index
    %1 = vector.load %arg2[%c0_1, %c0_2] : memref<128x512xbf16, #tpu.memory_space<vmem>>, vector<128x512xbf16>
    %cst = arith.constant dense<0.000000e+00> : vector<256x512xf32>
    %2 = tpu.matmul %0, %1, %cst {dimension_numbers = #tpu.dot_dimension_numbers<[1], [0], [0], [1], [0, 0, 1, 1], [], []>} : vector<256x128xbf16>, vector<128x512xbf16>, vector<256x512xf32> -> vector<256x512xf32>
    %3 = vector.extract_strided_slice %2 {offsets = [0, 256], sizes = [256, 256], strides = [1, 1]} : vector<256x512xf32> to vector<256x256xf32>
    %cst_3 = arith.constant 0.000000e+00 : f32
    %4 = vector.broadcast %cst_3 : f32 to vector<256x256xf32>
    %5 = arith.maximumf %3, %4 : vector<256x256xf32>
    %6 = arith.truncf %5 : vector<256x256xf32> to vector<256x256xbf16>
    %7 = vector.extract_strided_slice %2 {offsets = [0, 0], sizes = [256, 256], strides = [1, 1]} : vector<256x512xf32> to vector<256x256xf32>
    %8 = arith.truncf %7 : vector<256x256xf32> to vector<256x256xbf16>
    %c0_4 = arith.constant 0 : index
    %c0_5 = arith.constant 0 : index
    %9 = vector.load %arg3[%c0_4, %c0_5] : memref<256x256xbf16, #tpu.memory_space<vmem>>, vector<256x256xbf16>
    %cst_6 = arith.constant dense<0.000000e+00> : vector<256x256xf32>
    %10 = tpu.matmul %8, %9, %cst_6 {dimension_numbers = #tpu.dot_dimension_numbers<[1], [0], [0], [1], [0, 0, 1, 1], [], []>} : vector<256x256xbf16>, vector<256x256xbf16>, vector<256x256xf32> -> vector<256x256xf32>
    %11 = arith.truncf %10 : vector<256x256xf32> to vector<256x256xbf16>
    %cst_7 = arith.constant 5.000000e-01 : bf16
    %12 = vector.broadcast %cst_7 : bf16 to vector<256x256xbf16>
    %13 = arith.mulf %12, %11 : vector<256x256xbf16>
    %cst_8 = arith.constant 4.467770e-02 : bf16
    %14 = vector.broadcast %cst_8 : bf16 to vector<256x256xbf16>
    %15 = arith.mulf %14, %11 : vector<256x256xbf16>
    %16 = arith.mulf %15, %11 : vector<256x256xbf16>
    %17 = arith.mulf %16, %11 : vector<256x256xbf16>
    %18 = arith.addf %11, %17 : vector<256x256xbf16>
    %cst_9 = arith.constant 7.968750e-01 : bf16
    %19 = vector.broadcast %cst_9 : bf16 to vector<256x256xbf16>
    %20 = arith.mulf %19, %18 : vector<256x256xbf16>
    %21 = math.tanh %20 : vector<256x256xbf16>
    %cst_10 = arith.constant 1.000000e+00 : bf16
    %22 = vector.broadcast %cst_10 : bf16 to vector<256x256xbf16>
    %23 = arith.addf %22, %21 : vector<256x256xbf16>
    %24 = arith.mulf %13, %23 : vector<256x256xbf16>
    %c0_11 = arith.constant 0 : index
    %c0_12 = arith.constant 0 : index
    %25 = vector.load %arg4[%c0_11, %c0_12] : memref<256x256xbf16, #tpu.memory_space<vmem>>, vector<256x256xbf16>
    %cst_13 = arith.constant dense<0.000000e+00> : vector<256x256xf32>
    %26 = tpu.matmul %24, %25, %cst_13 {dimension_numbers = #tpu.dot_dimension_numbers<[1], [0], [0], [1], [0, 0, 1, 1], [], []>} : vector<256x256xbf16>, vector<256x256xbf16>, vector<256x256xf32> -> vector<256x256xf32>
    %27 = arith.truncf %26 : vector<256x256xf32> to vector<256x256xbf16>
    %28 = arith.addf %27, %6 : vector<256x256xbf16>
    %c0_14 = arith.constant 0 : index
    %c0_15 = arith.constant 0 : index
    %29 = vector.load %arg5[%c0_14, %c0_15] : memref<256x128xbf16, #tpu.memory_space<vmem>>, vector<256x128xbf16>
    %cst_16 = arith.constant dense<0.000000e+00> : vector<256x128xf32>
    %30 = tpu.matmul %28, %29, %cst_16 {dimension_numbers = #tpu.dot_dimension_numbers<[1], [0], [0], [1], [0, 0, 1, 1], [], []>} : vector<256x256xbf16>, vector<256x128xbf16>, vector<256x128xf32> -> vector<256x128xf32>
    %31 = arith.truncf %30 : vector<256x128xf32> to vector<256x128xbf16>
    %cst_17 = arith.constant 5.000000e-01 : bf16
    %32 = vector.broadcast %cst_17 : bf16 to vector<256x128xbf16>
    %33 = arith.mulf %32, %31 : vector<256x128xbf16>
    %cst_18 = arith.constant 4.467770e-02 : bf16
    %34 = vector.broadcast %cst_18 : bf16 to vector<256x128xbf16>
    %35 = arith.mulf %34, %31 : vector<256x128xbf16>
    %36 = arith.mulf %35, %31 : vector<256x128xbf16>
    %37 = arith.mulf %36, %31 : vector<256x128xbf16>
    %38 = arith.addf %31, %37 : vector<256x128xbf16>
    %cst_19 = arith.constant 7.968750e-01 : bf16
    %39 = vector.broadcast %cst_19 : bf16 to vector<256x128xbf16>
    %40 = arith.mulf %39, %38 : vector<256x128xbf16>
    %41 = math.tanh %40 : vector<256x128xbf16>
    %cst_20 = arith.constant 1.000000e+00 : bf16
    %42 = vector.broadcast %cst_20 : bf16 to vector<256x128xbf16>
    %43 = arith.addf %42, %41 : vector<256x128xbf16>
    %44 = arith.mulf %33, %43 : vector<256x128xbf16>
    %c0_21 = arith.constant 0 : index
    %c0_22 = arith.constant 0 : index
    %45 = vector.load %arg6[%c0_21, %c0_22] : memref<128x128xbf16, #tpu.memory_space<vmem>>, vector<128x128xbf16>
    %cst_23 = arith.constant dense<0.000000e+00> : vector<256x128xf32>
    %46 = tpu.matmul %44, %45, %cst_23 {dimension_numbers = #tpu.dot_dimension_numbers<[1], [0], [0], [1], [0, 0, 1, 1], [], []>} : vector<256x128xbf16>, vector<128x128xbf16>, vector<256x128xf32> -> vector<256x128xf32>
    %47 = arith.truncf %46 : vector<256x128xf32> to vector<256x128xbf16>
    %48 = arith.addf %47, %44 : vector<256x128xbf16>
    %cst_24 = arith.constant 0.000000e+00 : bf16
    %49 = vector.broadcast %cst_24 : bf16 to vector<256x128xbf16>
    %50 = arith.maximumf %48, %49 : vector<256x128xbf16>
    %51 = arith.extf %50 : vector<256x128xbf16> to vector<256x128xf32>
    %c0_25 = arith.constant 0 : index
    %c0_26 = arith.constant 0 : index
    %52 = vector.load %arg7[%c0_25, %c0_26] : memref<256x128xf32, #tpu.memory_space<vmem>>, vector<256x128xf32>
    tpu.vector_store %arg7[%c0_25, %c0_26], %51 {strides = array<i32>} : memref<256x128xf32, #tpu.memory_space<vmem>>, vector<256x128xf32>,
    return
  }
  func.func @transform_0(%arg0: i32) -> (i32, i32) {
    %c0_i32 = arith.constant 0 : i32
    %c0_i32_0 = arith.constant 0 : i32
    return %arg0, %c0_i32 : i32, i32
  }
  func.func @transform_1(%arg0: i32) -> (i32, i32) {
    %c0_i32 = arith.constant 0 : i32
    %c0_i32_0 = arith.constant 0 : i32
    %c0_i32_1 = arith.constant 0 : i32
    return %c0_i32, %c0_i32_0 : i32, i32
  }
  func.func @transform_2(%arg0: i32) -> (i32, i32) {
    %c0_i32 = arith.constant 0 : i32
    %c0_i32_0 = arith.constant 0 : i32
    %c0_i32_1 = arith.constant 0 : i32
    return %c0_i32, %c0_i32_0 : i32, i32
  }
  func.func @transform_3(%arg0: i32) -> (i32, i32) {
    %c0_i32 = arith.constant 0 : i32
    %c0_i32_0 = arith.constant 0 : i32
    %c0_i32_1 = arith.constant 0 : i32
    return %c0_i32, %c0_i32_0 : i32, i32
  }
  func.func @transform_4(%arg0: i32) -> (i32, i32) {
    %c0_i32 = arith.constant 0 : i32
    %c0_i32_0 = arith.constant 0 : i32
    %c0_i32_1 = arith.constant 0 : i32
    return %c0_i32, %c0_i32_0 : i32, i32
  }
  func.func @transform_5(%arg0: i32) -> (i32, i32) {
    %c0_i32 = arith.constant 0 : i32
    %c0_i32_0 = arith.constant 0 : i32
    %c0_i32_1 = arith.constant 0 : i32
    return %c0_i32, %c0_i32_0 : i32, i32
  }
  func.func @transform_6(%arg0: i32) -> (i32, i32) {
    %c0_i32 = arith.constant 0 : i32
    %c0_i32_0 = arith.constant 0 : i32
    return %arg0, %c0_i32 : i32, i32
  }
}

</mosaic_0001>

<bundles_post_ra>
// kernel: tpu_custom_call.1
= control target key start
LH: loop header
LB: loop body
LE: loop exit
PB: predicated region body
PF: predicated region fallthrough
CT: control target
= control target key end

     0   :  { %11 = vsyncpa [#allocation3], 0  ;;  %s5222_s0 = inlined_call_operand.hbm [shape: bf16[512,128], index: 0, kind: input, shape index: {}]   ;;  %s5223_s1 = inlined_call_operand.hbm [shape: bf16[128,512], index: 1, kind: input, shape index: {}]   ;;  %s5224_s2 = inlined_call_operand.hbm [shape: bf16[256,256], index: 2, kind: input, shape index: {}]   ;;  %s5225_s3 = inlined_call_operand.hbm [shape: bf16[256,256], index: 3, kind: input, shape index: {}]   ;;  %s5226_s4 = inlined_call_operand.hbm [shape: bf16[256,128], index: 4, kind: input, shape index: {}]   ;;  %s5227_s5 = inlined_call_operand.hbm [shape: bf16[128,128], index: 5, kind: input, shape index: {}]   ;;  %s5228_s6 = inlined_call_operand.hbm [shape: f32[512,128], index: 6, kind: output, shape index: {}]  }
   0x1   :  { %13 = vsyncpa [#allocation3 + $0x1], 0 }
   0x2   :  { %14 = vsyncpa [#allocation6], 0 }
   0x3   :  { %15 = vsyncpa [#allocation9], 0 }
   0x4   :  { %16 = vsyncpa [#allocation12], 0 }
   0x5   :  { %17 = vsyncpa [#allocation4], 0 }
   0x6   :  { %19 = vsyncpa [#allocation4 + $0x1], 0  ;;  %s4308_s21 = smov 0   ;;  %s4310_s22 = smov 0  }
   0x7   :  { %s4312_s23 = smov 0   ;;  %s4314_s24 = smov 0  }
   0x8 LB: > { %s4257_s25 = smov [#allocation5]   ;;  %s4329_s27 = sadd.s32 4294967295, %s4255_s24   ;;  %s4255_s24 = sphi %s4314_s24, %s5253_s24   ;;  %s4251_s23 = sphi %s4312_s23, %s5252_s23   ;;  %s4247_s22 = sphi %s4310_s22, %s5251_s22   ;;  %s4243_s21 = sphi %s4308_s21, %s5250_s21  }
   0x9   : > { %s199_s26 = sshll.u32 %s4257_s25, 4  ;;  %p3260_p0 = scmp.ge.s32.totalorder %s4255_s24, 1  ;;  %s4334_s26 = int_to_ptr.vmem [resolvable:$true] %s199_s26 }
   0xa   : > { %p5229_p1 = scmp.eq.s32.totalorder %s4329_s27, 0  ;;  %p187_p2 = scmp.lt.s32.totalorder %s4255_s24, 3 }
   0xb   : > { %s4258_s30 = smov [#allocation8]   ;;  %s4259_s8 = smov [#allocation7]  }
   0xc   : > { %p4336_p3 = pnand %p3260_p0, %p187_p2  ;;  %s225_s7 = sshll.u32 %s4258_s30, 4  ;;  %s4349_s7 = int_to_ptr.vmem [resolvable:$true] %s225_s7 }
   0xd   : > { %s4351_s9 = sshll.u32 %s4259_s8, 4  ;;  %s4007_s12 = scalar_lea.hbm %s5223_s1, 4096  ;;  %s213_s9 = int_to_ptr.vmem [resolvable:$true] %s4351_s9 }
   0xe   : > { %s5232_s28 = scalar_select %p4336_p3, 1, 0 }
   0xf   : > { %p3645_p5 = pneg %p4336_p3  ;;  %p4008_p7 = scmp.ne.s32.totalorder %s5223_s1, %s4007_s12 }
  0x10   : > { %p4014_p11 = scmp.lt.u32.totalorder %s4007_s12, %s5223_s1 }
  0x11   : > { %p4345_p6 = pnand %p3645_p5, %p5229_p1 }
  0x13   : > { %p4361_p8 = pneg %p4345_p6 }
  0x15   : > { %p4010_p9 = pnand %p4361_p8, %p4008_p7 }
  0x17   : > { %p4011_p10 = pneg %p4010_p9 }
  0x19   : > { %p4016_p12 = pnand %p4014_p11, %p4011_p10 }
  0x1b   : > { %4019 = shalt.err (!%p4016_p12)
}
  0x1c   : > { %s4020_s18 = scalar_lea.vmem %s4334_s26, 4096  ;;  %p4028_p5 = scmp.lt.s32.totalorder %s4334_s26, %s4334_s26 }
  0x1d   : > { %p4021_p13 = scmp.ne.s32.totalorder %s4334_s26, %s4020_s18  ;;  %p4029_p4 = scmp.lt.s32.totalorder %s4020_s18, %s4020_s18 }
  0x1f   : > { %p4023_p0 = pnand %p4021_p13, %p4361_p8  ;;  %p4030_p7 = por %p4029_p4, %p4028_p5 }
  0x21   : > { %p4024_p2 = pneg %p4023_p0 }
  0x23   : > { %p4031_p9 = pnand %p4030_p7, %p4024_p2 }
  0x25   : > { %4034 = shalt.err (!%p4031_p9)
}
  0x26   : > { %s4260_s19 = smov 256   ;;  %s4261_s20 = smov 16  }
  0x27   : > { %3648 = dma.hbm_to_vmem [thread:$0]  (!%p4345_p6), %s5223_s1, 4096, %s4334_s26, [#allocation6], %s4260_s19, %s4260_s19, %s4261_s20  }
  0x28   : > { %s4035_s11 = scalar_lea.hbm %s5225_s3, 4096 }
  0x29   : > { %p4036_p4 = scmp.ne.s32.totalorder %s5225_s3, %s4035_s11  ;;  %p4042_p12 = scmp.lt.u32.totalorder %s4035_s11, %s5225_s3 }
  0x2b   : > { %p4038_p10 = pnand %p4036_p4, %p4361_p8 }
  0x2d   : > { %p4039_p11 = pneg %p4038_p10 }
  0x2f   : > { %p4044_p13 = pnand %p4042_p12, %p4039_p11 }
  0x31   : > { %4047 = shalt.err (!%p4044_p13)
}
  0x32   : > { %s4048_s26 = scalar_lea.vmem %s4349_s7, 4096  ;;  %p4056_p7 = scmp.lt.s32.totalorder %s4349_s7, %s4349_s7 }
  0x33   : > { %p4049_p0 = scmp.ne.s32.totalorder %s4349_s7, %s4048_s26  ;;  %p4057_p9 = scmp.lt.s32.totalorder %s4048_s26, %s4048_s26 }
  0x35   : > { %p4051_p2 = pnand %p4049_p0, %p4361_p8  ;;  %p4058_p4 = por %p4057_p9, %p4056_p7 }
  0x37   : > { %p4052_p5 = pneg %p4051_p2 }
  0x39   : > { %p4059_p10 = pnand %p4058_p4, %p4052_p5 }
  0x3b   : > { %4062 = shalt.err (!%p4059_p10)
}
  0x3c   : > { %s4262_s17 = smov 128   ;;  %s4263_s18 = smov 8  }
  0x3d   : > { %3654 = dma.hbm_to_vmem [thread:$0]  (!%p4345_p6), %s5225_s3, 4096, %s4349_s7, [#allocation9], %s4262_s17, %s4262_s17, %s4263_s18  }
  0x3e   : > { %s4063_s8 = scalar_lea.hbm %s5224_s2, 4096 }
  0x3f   : > { %p4064_p11 = scmp.ne.s32.totalorder %s5224_s2, %s4063_s8  ;;  %p4070_p0 = scmp.lt.u32.totalorder %s4063_s8, %s5224_s2 }
  0x41   : > { %p4066_p12 = pnand %p4064_p11, %p4361_p8 }
  0x43   : > { %p4067_p13 = pneg %p4066_p12 }
  0x45   : > { %p4072_p2 = pnand %p4070_p0, %p4067_p13 }
  0x47   : > { %4075 = shalt.err (!%p4072_p2)
}
  0x48   : > { %s4076_s14 = scalar_lea.vmem %s213_s9, 4096  ;;  %p4084_p4 = scmp.lt.s32.totalorder %s213_s9, %s213_s9 }
  0x49   : > { %p4077_p5 = scmp.ne.s32.totalorder %s213_s9, %s4076_s14  ;;  %p4085_p10 = scmp.lt.s32.totalorder %s4076_s14, %s4076_s14 }
  0x4b   : > { %p4079_p7 = pnand %p4077_p5, %p4361_p8  ;;  %p4086_p1 = por %p4085_p10, %p4084_p4 }
  0x4d   : > { %p4080_p9 = pneg %p4079_p7 }
  0x4f   : > { %p4087_p3 = pnand %p4086_p1, %p4080_p9 }
  0x51   : > { %4090 = shalt.err (!%p4087_p3)
}
  0x52   : > { %3651 = dma.hbm_to_vmem [thread:$0]  (!%p4345_p6), %s5224_s2, 4096, %s213_s9, [#allocation6], %s4262_s17, %s4262_s17, %s4263_s18  }
  0x53   : > { %s4264_s26 = smov [#allocation10]   ;;  %s4091_s30 = scalar_lea.hbm %s5226_s4, 2048 }
  0x54   : > { %s238_s19 = sshll.u32 %s4264_s26, 4  ;;  %p4092_p11 = scmp.ne.s32.totalorder %s5226_s4, %s4091_s30  ;;  %s239_s19 = int_to_ptr.vmem [resolvable:$true] %s238_s19 }
  0x55   : > { %p4098_p12 = scmp.lt.u32.totalorder %s4091_s30, %s5226_s4 }
  0x56   : > { %p4094_p1 = pnand %p4092_p11, %p4361_p8 }
  0x58   : > { %p4095_p3 = pneg %p4094_p1 }
  0x5a   : > { %p4100_p13 = pnand %p4098_p12, %p4095_p3 }
  0x5c   : > { %4103 = shalt.err (!%p4100_p13)
}
  0x5d   : > { %s4104_s9 = scalar_lea.vmem %s239_s19, 2048  ;;  %p4112_p7 = scmp.lt.s32.totalorder %s239_s19, %s239_s19 }
  0x5e   : > { %p4105_p0 = scmp.ne.s32.totalorder %s239_s19, %s4104_s9  ;;  %p4113_p9 = scmp.lt.s32.totalorder %s4104_s9, %s4104_s9 }
  0x60   : > { %p4107_p2 = pnand %p4105_p0, %p4361_p8  ;;  %p4114_p4 = por %p4113_p9, %p4112_p7 }
  0x62   : > { %p4108_p5 = pneg %p4107_p2 }
  0x64   : > { %p4115_p10 = pnand %p4114_p4, %p4108_p5 }
  0x66   : > { %4118 = shalt.err (!%p4115_p10)
}
  0x67   : > { %s4265_s17 = smov 64   ;;  %s4266_s18 = smov 4  }
  0x68   : > { %3657 = dma.hbm_to_vmem [thread:$0]  (!%p4345_p6), %s5226_s4, 2048, %s239_s19, [#allocation9], %s4265_s17, %s4265_s17, %s4266_s18  }
  0x69   : > { %s4267_s7 = smov [#allocation11]   ;;  %s4119_s25 = scalar_lea.hbm %s5227_s5, 1024 }
  0x6a   : > { %s251_s16 = sshll.u32 %s4267_s7, 4  ;;  %p4120_p11 = scmp.ne.s32.totalorder %s5227_s5, %s4119_s25  ;;  %s252_s16 = int_to_ptr.vmem [resolvable:$true] %s251_s16 }
  0x6b   : > { %p4126_p12 = scmp.lt.u32.totalorder %s4119_s25, %s5227_s5 }
  0x6c   : > { %p4122_p1 = pnand %p4120_p11, %p4361_p8 }
  0x6e   : > { %p4123_p3 = pneg %p4122_p1 }
  0x70   : > { %p4128_p13 = pnand %p4126_p12, %p4123_p3 }
  0x72   : > { %4131 = shalt.err (!%p4128_p13)
}
  0x73   : > { %s4132_s19 = scalar_lea.vmem %s252_s16, 1024  ;;  %p4140_p7 = scmp.lt.s32.totalorder %s252_s16, %s252_s16 }
  0x74   : > { %p4133_p0 = scmp.ne.s32.totalorder %s252_s16, %s4132_s19  ;;  %p4141_p9 = scmp.lt.s32.totalorder %s4132_s19, %s4132_s19 }
  0x76   : > { %p4135_p2 = pnand %p4133_p0, %p4361_p8  ;;  %p4142_p4 = por %p4141_p9, %p4140_p7 }
  0x78   : > { %p4136_p5 = pneg %p4135_p2 }
  0x7a   : > { %p4143_p10 = pnand %p4142_p4, %p4136_p5 }
  0x7c   : > { %4146 = shalt.err (!%p4143_p10)
}
  0x7d   : > { %3660 = dma.hbm_to_vmem [thread:$0]  (!%p4345_p6), %s5227_s5, 1024, %s252_s16, [#allocation12], %s4265_s17, %s4265_s17, %s4266_s18  }
  0x7e   : > { %s3259_s29 = sadd.s32 4294967294, %s4255_s24   ;;  %s4468_s15 = sadd.s32 1, %s4255_s24  }
  0x7f   : > { %s32_s13 = sadd.s32 1, %s4251_s23  ;;  %s29_s14 = ssub.s32 %s4255_s24, %s4468_s15 }
  0x80   : > { %p39_p8 = scmp.ne.s32.totalorder %s4251_s23, %s4247_s22  ;;  %p30_p11 = scmp.eq.s32.totalorder %s29_s14, 0 }
  0x81   : > { %p40_p1 = scmp.eq.s32.totalorder %s4255_s24, 0  ;;  %p45_p3 = scmp.ne.s32.totalorder %s4247_s22, %s4243_s21 }
  0x82   : > { %p174_p12 = scmp.eq.s32.totalorder %s4329_s27, 1  ;;  %p5235_p0 = scmp.eq.s32.totalorder %s4329_s27, 0 }
  0x83   : > { %s4480_s7 = scalar_select %p30_p11, %s4251_s23, %s32_s13  }
  0x84   : > { %p41_p13 = por %p40_p1, %p39_p8  ;;  %p4484_p2 = por %p5235_p0, %p45_p3 }
  0x85   : > { %p4488_p6 = por %p174_p12, %p39_p8  ;;  %p180_p5 = scmp.eq.s32.totalorder %s3259_s29, 1 }
  0x86   : > { %p3674_p7 = scmp.lt.s32.totalorder %s4255_s24, 2  ;;  %s265_s20 = sand.u32 1, %s4251_s23  }
  0x87   : > { %s5237_s16 = scalar_select %p4488_p6, 1, 0 }
  0x88   : > { %p4494_p9 = por %p180_p5, %p45_p3  ;;  %s3267_s30 = sshll.u32 %s265_s20, 7 }
  0x89   : > { %s3419_s8 = sshll.u32 %s4255_s24, 11  ;;  %s269_s12 = scalar_lea.vmem [#allocation2], %s3267_s30 }
  0x8a   : > { %s5238_s25 = scalar_select %p4494_p9, 1, 0 }
  0x8b   : > { %s4502_s19 = scalar_lea.hbm %s5222_s0, %s3419_s8  ;;  %s276_s9 = sshll.u32 %s269_s12, 4  ;;  %s4508_s9 = int_to_ptr.vmem [resolvable:$true] %s276_s9 }
  0x8c   : > { %p4504_p4 = pnand %p3674_p7, %p41_p13  ;;  %s4510_s13 = scalar_lea.sflag [#allocation3], %s265_s20 }
  0x8d   : > { %s4147_s14 = scalar_lea.hbm %s4502_s19, 2048  ;;  %s4152_s10 = scalar_lea.hbm %s5222_s0, 4096 }
  0x8e   : > { %p4148_p10 = scmp.ne.s32.totalorder %s4502_s19, %s4147_s14  ;;  %p4149_p8 = pneg %p4504_p4 }
  0x8f   : > { %p4153_p3 = scmp.lt.u32.totalorder %s4502_s19, %s5222_s0  ;;  %p4154_p12 = scmp.lt.u32.totalorder %s4152_s10, %s4147_s14 }
  0x90   : > { %p4150_p11 = pnand %p4149_p8, %p4148_p10  ;;  %p4156_p0 = scmp.lt.u32.totalorder %s4147_s14, %s4502_s19 }
  0x91   : > { %p4155_p13 = por %p4154_p12, %p4153_p3 }
  0x92   : > { %p4151_p1 = pneg %p4150_p11 }
  0x93   : > { %p4157_p5 = por %p4156_p0, %p4155_p13 }
  0x95   : > { %p4158_p7 = pnand %p4157_p5, %p4151_p1 }
  0x97   : > { %4161 = shalt.err (!%p4158_p7)
}
  0x98   : > { %s4162_s20 = scalar_lea.vmem %s4508_s9, 2048  ;;  %s4268_s30 = smov [#allocation2]  }
  0x99   : > { %p4163_p10 = scmp.ne.s32.totalorder %s4508_s9, %s4162_s20  ;;  %s4167_s8 = sshll.u32 %s4268_s30, 4  ;;  %s4168_s8 = int_to_ptr.vmem [resolvable:$false] %s4167_s8 }
  0x9a   : > { %s4169_s11 = scalar_lea.vmem %s4168_s8, 4096  ;;  %p4170_p6 = scmp.lt.s32.totalorder %s4508_s9, %s4168_s8 }
  0x9b   : > { %p4165_p11 = pnand %p4163_p10, %p4149_p8  ;;  %p4171_p3 = scmp.lt.s32.totalorder %s4169_s11, %s4162_s20 }
  0x9d   : > { %p4166_p9 = pneg %p4165_p11  ;;  %p4172_p12 = por %p4171_p3, %p4170_p6 }
  0x9f   : > { %p4173_p13 = pnand %p4172_p12, %p4166_p9 }
  0xa1   : > { %4176 = shalt.err (!%p4173_p13)
}
  0xa2   : > { %3664 = dma.hbm_to_vmem [thread:$0]  (!%p4504_p4), %s4502_s19, 2048, %s4508_s9, %s4510_s13, %s4265_s17, %s4265_s17, %s4266_s18  }
  0xa3   : > { %p5240_p8 = scmp.ne.s32.totalorder %s5232_s28, 0 }
  0xa4   : > { %s4544_s14 = sand.u32 (!%p5240_p8), 1, %s4247_s22  }
  0xa5   : > { %288 = sbr.rel (%p5240_p8) target bundleno = 1502 (0x5de), region = 44  ;;  %s3271_s10 = sshll.u32 (!%p5240_p8), %s4544_s14, 7 }
  0xa6   : > { %s291_s12 = scalar_lea.sflag (!%p5240_p8), [#allocation3], %s4544_s14  ;;  %s4548_s20 = scalar_lea.vmem (!%p5240_p8), [#allocation2], %s3271_s10 }
  0xac   : > { %4222 = dma.done.wait (%p4484_p2), %s291_s12, 2048  }
  0xad   : > { %4224 = vsyncadd (%p4484_p2), %s291_s12, 4294965248  ;;  %p5241_p6 = scmp.eq.s32.totalorder %s4329_s27, 0 }
  0xaf   : > { %4226 = dma.done.wait (%p5241_p6), [#allocation6], 8192   ;;  %p5242_p9 = pmov %p5241_p6 }
  0xb0   : > { %p5243_p4 = pmov %p5241_p6 }
  0xb1   : > { %4228 = vsyncadd (%p5242_p9), [#allocation6], 4294959104 }
  0xb2   : > { %4230 = dma.done.wait (%p5243_p4), [#allocation9], 6144   ;;  %p5244_p1 = pmov %p5243_p4 }
  0xb4   : > { %4232 = vsyncadd (%p5244_p1), [#allocation9], 4294961152  ;;  %p5245_p0 = pmov %p5244_p1 }
  0xb6   : > { %4234 = dma.done.wait (%p5245_p0), [#allocation12], 1024   ;;  %p5246_p5 = pmov %p5245_p0 }
  0xb7   : > { %v4269_v0 = vmov 0   ;;  %v3727_v1 = vld [vmem:[#allocation5 + $0x4] ss:$16 sps:$4 sm:$0xff]   ;;  %v3729_v2 = vld [vmem:[#allocation5] ss:$16 sps:$4 sm:$0xff]   ;;  %v4579_v24 = vld [vmem:[%s4548_s20 + $0x8] sm:$0xff]  }
  0xb8   : > { %4236 = vsyncadd (%p5246_p5), [#allocation12], 4294966272  ;;  %702 = vmatprep.mubr.bf16.mxu0 %v4269_v0  ;;  %822 = vmatprep.mubr.bf16.mxu1 %v4269_v0  ;;  %v3730_v3 = vld [vmem:[#allocation5 + $0x24] ss:$16 sps:$4 sm:$0xff]   ;;  %v3732_v4 = vld [vmem:[#allocation5 + $0x20] ss:$16 sps:$4 sm:$0xff]  }
  0xb9   : > { %670 = vmatprep.subr.bf16.mxu0 %v3727_v1  ;;  %3605 = vmatprep.subr.bf16.mxu1 %v3727_v1  ;;  %v3733_v5 = vld [vmem:[#allocation5 + $0x44] ss:$16 sps:$4 sm:$0xff]   ;;  %v3735_v6 = vld [vmem:[#allocation5 + $0x40] ss:$16 sps:$4 sm:$0xff]   ;;  %v4582_v25 = vld [vmem:[%s4548_s20 + $0x68] sm:$0xff]   ;;  %s3277_s28 = sshll.u32 %s4544_s14, 8 }
  0xba   : > { %671 = vmatpush1.bf16.msra.mxu0 %v3729_v2  ;;  %3613 = vmatpush1.bf16.msra.mxu1 %v3729_v2  ;;  %v3736_v7 = vld [vmem:[#allocation5 + $0x64] ss:$16 sps:$4 sm:$0xff]   ;;  %v3738_v8 = vld [vmem:[#allocation5 + $0x60] ss:$16 sps:$4 sm:$0xff]   ;;  %v4599_v36 = vld [vmem:[%s4548_s20 + $0x18] sm:$0xff]   ;;  %s5109_s17 = scalar_lea.vmem [#allocation13], %s3277_s28 }
  0xbb   : > { %672 = vmatprep.subr.bf16.mxu0 %v3730_v3  ;;  %3606 = vmatprep.subr.bf16.mxu1 %v3730_v3  ;;  %v3739_v9 = vld [vmem:[#allocation5 + $0x84] ss:$16 sps:$4 sm:$0xff]   ;;  %v3741_v10 = vld [vmem:[#allocation5 + $0x80] ss:$16 sps:$4 sm:$0xff]   ;;  %v4602_v37 = vld [vmem:[%s4548_s20 + $0x78] sm:$0xff]   ;;  %s3420_s18 = sshll.u32 %s4329_s27, 12 }
  0xbc   : > { %v3742_v11 = vld [vmem:[#allocation5 + $0xa4] ss:$16 sps:$4 sm:$0xff]   ;;  %v3744_v12 = vld [vmem:[#allocation5 + $0xa0] ss:$16 sps:$4 sm:$0xff]   ;;  %v4614_v47 = vld [vmem:[%s4548_s20 + $0x28] sm:$0xff]   ;;  %s3138_s26 = sshll.u32 %s5109_s17, 4  ;;  %s5172_s29 = scalar_lea.hbm %s5228_s6, %s3420_s18  ;;  %s5174_s26 = int_to_ptr.vmem [resolvable:$true] %s3138_s26 }
  0xbd   : > { %v3745_v13 = vld [vmem:[#allocation5 + $0xc4] ss:$16 sps:$4 sm:$0xff]   ;;  %v3747_v14 = vld [vmem:[#allocation5 + $0xc0] ss:$16 sps:$4 sm:$0xff]   ;;  %v4624_v57 = vld [vmem:[%s4548_s20 + $0x38] sm:$0xff]   ;;  %s3125_s27 = scalar_lea.sflag [#allocation4], %s4544_s14 }
  0xbe   : > { %673 = vmatpush1.bf16.msra.mxu0 %v3732_v4  ;;  %3614 = vmatpush1.bf16.msra.mxu1 %v3732_v4  ;;  %v3748_v15 = vld [vmem:[#allocation5 + $0xe4] ss:$16 sps:$4 sm:$0xff]   ;;  %v3750_v16 = vld [vmem:[#allocation5 + $0xe0] ss:$16 sps:$4 sm:$0xff]   ;;  %v4634_v60 = vld [vmem:[%s4548_s20 + $0x48] sm:$0xff]   ;;  %s4177_s13 = scalar_lea.vmem %s5174_s26, 4096 }
  0xbf   : > { %674 = vmatprep.subr.bf16.mxu0 %v3733_v5  ;;  %3607 = vmatprep.subr.bf16.mxu1 %v3733_v5  ;;  %v3769_v17 = vld [vmem:[#allocation7 + $0x4] ss:$8 sps:$4 sm:$0xff]   ;;  %v3767_v20 = vld [vmem:[#allocation7] ss:$8 sps:$4 sm:$0xff]   ;;  %v3772_v21 = vld [vmem:[#allocation7 + $0x14] ss:$8 sps:$4 sm:$0xff]   ;;  %p4178_p2 = scmp.ne.s32.totalorder %s5174_s26, %s4177_s13 }
  0xc0   : > { %v4569_v18 = vld [vmem:[%s4548_s20] sm:$0xff]   ;;  %v3770_v22 = vld [vmem:[#allocation7 + $0x10] ss:$8 sps:$4 sm:$0xff]   ;;  %v3778_v27 = vld [vmem:[#allocation7 + $0x34] ss:$8 sps:$4 sm:$0xff]   ;;  %p5247_p7 = scmp.ne.s32.totalorder %s5237_s16, 0 }
  0xc1   : > { %v4572_v19 = vld [vmem:[%s4548_s20 + $0x60] sm:$0xff]   ;;  %v4589_v28 = vld [vmem:[%s4548_s20 + $0x10] sm:$0xff]   ;;  %v4644_v1 = vld [vmem:[%s4548_s20 + $0x58] sm:$0xff]   ;;  %s4270_s30 = smov [#allocation13]  }
  0xc2   : > { %675 = vmatpush1.bf16.msra.mxu0 %v3735_v6  ;;  %3615 = vmatpush1.bf16.msra.mxu1 %v3735_v6  ;;  %v3775_v23 = vld [vmem:[#allocation7 + $0x24] ss:$8 sps:$4 sm:$0xff]   ;;  %v3773_v26 = vld [vmem:[#allocation7 + $0x20] ss:$8 sps:$4 sm:$0xff]   ;;  %v3776_v29 = vld [vmem:[#allocation7 + $0x30] ss:$8 sps:$4 sm:$0xff]   ;;  %p4179_p10 = pnand %p4178_p2, %p5247_p7 }
  0xc3   : > { %676 = vmatprep.subr.bf16.mxu0 %v3736_v7  ;;  %3608 = vmatprep.subr.bf16.mxu1 %v3736_v7  ;;  %v3781_v30 = vld [vmem:[#allocation7 + $0x44] ss:$8 sps:$4 sm:$0xff]   ;;  %v4592_v31 = vld [vmem:[%s4548_s20 + $0x70] sm:$0xff]   ;;  %v3779_v32 = vld [vmem:[#allocation7 + $0x40] ss:$8 sps:$4 sm:$0xff]   ;;  %s4181_s8 = sshll.u32 %s4270_s30, 4  ;;  %s4182_s8 = int_to_ptr.vmem [resolvable:$false] %s4181_s8 }
  0xc4   : > { %v3784_v33 = vld [vmem:[#allocation7 + $0x54] ss:$8 sps:$4 sm:$0xff]   ;;  %v3782_v34 = vld [vmem:[#allocation7 + $0x50] ss:$8 sps:$4 sm:$0xff]   ;;  %v3787_v35 = vld [vmem:[#allocation7 + $0x64] ss:$8 sps:$4 sm:$0xff]   ;;  %p4180_p11 = pneg %p4179_p10  ;;  %p4184_p3 = scmp.lt.s32.totalorder %s5174_s26, %s4182_s8 }
  0xc5   : > { %v3785_v38 = vld [vmem:[#allocation7 + $0x60] ss:$8 sps:$4 sm:$0xff]   ;;  %v3790_v39 = vld [vmem:[#allocation7 + $0x74] ss:$8 sps:$4 sm:$0xff]   ;;  %v3788_v40 = vld [vmem:[#allocation7 + $0x70] ss:$8 sps:$4 sm:$0xff]  }
  0xc6   : > { %677 = vmatpush1.bf16.msra.mxu0 %v3738_v8  ;;  %3616 = vmatpush1.bf16.msra.mxu1 %v3738_v8  ;;  %v3793_v41 = vld [vmem:[#allocation7 + $0x84] ss:$8 sps:$4 sm:$0xff]   ;;  %v3791_v43 = vld [vmem:[#allocation7 + $0x80] ss:$8 sps:$4 sm:$0xff]   ;;  %v3796_v44 = vld [vmem:[#allocation7 + $0x94] ss:$8 sps:$4 sm:$0xff]  }
  0xc7   : > { %678 = vmatprep.subr.bf16.mxu0 %v3739_v9  ;;  %3609 = vmatprep.subr.bf16.mxu1 %v3739_v9  ;;  %v4609_v42 = vld [vmem:[%s4548_s20 + $0x20] sm:$0xff]   ;;  %v3794_v45 = vld [vmem:[#allocation7 + $0x90] ss:$8 sps:$4 sm:$0xff]   ;;  %v3802_v49 = vld [vmem:[#allocation7 + $0xb4] ss:$8 sps:$4 sm:$0xff]   ;;  %s4183_s11 = scalar_lea.vmem %s4182_s8, 8192 }
  0xc8   : > { %v3799_v46 = vld [vmem:[#allocation7 + $0xa4] ss:$8 sps:$4 sm:$0xff]   ;;  %v3797_v48 = vld [vmem:[#allocation7 + $0xa0] ss:$8 sps:$4 sm:$0xff]   ;;  %v3800_v50 = vld [vmem:[#allocation7 + $0xb0] ss:$8 sps:$4 sm:$0xff]   ;;  %p4185_p12 = scmp.lt.s32.totalorder %s4183_s11, %s4177_s13 }
  0xc9   : > { %v3805_v51 = vld [vmem:[#allocation7 + $0xc4] ss:$8 sps:$4 sm:$0xff]   ;;  %v4619_v52 = vld [vmem:[%s4548_s20 + $0x30] sm:$0xff]   ;;  %v3803_v53 = vld [vmem:[#allocation7 + $0xc0] ss:$8 sps:$4 sm:$0xff]  }
  0xca   : > { %679 = vmatpush1.bf16.msra.mxu0 %v3741_v10  ;;  %3617 = vmatpush1.bf16.msra.mxu1 %v3741_v10  ;;  %v3808_v54 = vld [vmem:[#allocation7 + $0xd4] ss:$8 sps:$4 sm:$0xff]   ;;  %v3806_v55 = vld [vmem:[#allocation7 + $0xd0] ss:$8 sps:$4 sm:$0xff]   ;;  %v3811_v56 = vld [vmem:[#allocation7 + $0xe4] ss:$8 sps:$4 sm:$0xff]   ;;  %p4186_p13 = por %p4185_p12, %p4184_p3 }
  0xcb   : > { %680 = vmatprep.subr.bf16.mxu0 %v3742_v11  ;;  %3610 = vmatprep.subr.bf16.mxu1 %v3742_v11  ;;  %v3809_v58 = vld [vmem:[#allocation7 + $0xe0] ss:$8 sps:$4 sm:$0xff]   ;;  %v4639_v61 = vld [vmem:[%s4548_s20 + $0x50] sm:$0xff]   ;;  %v3817_v2 = vld [vmem:[#allocation5 + $0xc] ss:$16 sps:$4 sm:$0xff]  }
  0xcc   : > { %v4629_v59 = vld [vmem:[%s4548_s20 + $0x40] sm:$0xff]   ;;  %v3812_v62 = vld [vmem:[#allocation7 + $0xf0] ss:$8 sps:$4 sm:$0xff]   ;;  %v3814_v63 = vld [vmem:[#allocation7 + $0xf4] ss:$8 sps:$4 sm:$0xff]   ;;  %p4187_p8 = pnand %p4186_p13, %p4180_p11 }
  0xcd   : > { %v3815_v3 = vld [vmem:[#allocation5 + $0x8] ss:$16 sps:$4 sm:$0xff]   ;;  %v3820_v4 = vld [vmem:[#allocation5 + $0x2c] ss:$16 sps:$4 sm:$0xff]  }
  0xce   : > { %681 = vmatpush1.bf16.msra.mxu0 %v3744_v12  ;;  %3618 = vmatpush1.bf16.msra.mxu1 %v3744_v12  ;;  %v3818_v5 = vld [vmem:[#allocation5 + $0x28] ss:$16 sps:$4 sm:$0xff]   ;;  %v3823_v6 = vld [vmem:[#allocation5 + $0x4c] ss:$16 sps:$4 sm:$0xff]  }
  0xcf   : > { %682 = vmatprep.subr.bf16.mxu0 %v3745_v13  ;;  %3611 = vmatprep.subr.bf16.mxu1 %v3745_v13  ;;  %v3821_v7 = vld [vmem:[#allocation5 + $0x48] ss:$16 sps:$4 sm:$0xff]   ;;  %v3826_v8 = vld [vmem:[#allocation5 + $0x6c] ss:$16 sps:$4 sm:$0xff]  }
  0xd0   : > { %v3824_v9 = vld [vmem:[#allocation5 + $0x68] ss:$16 sps:$4 sm:$0xff]   ;;  %v3829_v10 = vld [vmem:[#allocation5 + $0x8c] ss:$16 sps:$4 sm:$0xff]  }
  0xd1   : > { %v3827_v11 = vld [vmem:[#allocation5 + $0x88] ss:$16 sps:$4 sm:$0xff]   ;;  %v3832_v12 = vld [vmem:[#allocation5 + $0xac] ss:$16 sps:$4 sm:$0xff]  }
  0xd2   : > { %683 = vmatpush1.bf16.msra.mxu0 %v3747_v14  ;;  %3619 = vmatpush1.bf16.msra.mxu1 %v3747_v14  ;;  %v3830_v13 = vld [vmem:[#allocation5 + $0xa8] ss:$16 sps:$4 sm:$0xff]   ;;  %v3835_v14 = vld [vmem:[#allocation5 + $0xcc] ss:$16 sps:$4 sm:$0xff]  }
  0xd3   : > { %684 = vmatprep.subr.bf16.mxu0 %v3748_v15  ;;  %3612 = vmatprep.subr.bf16.mxu1 %v3748_v15  ;;  %v3833_v15 = vld [vmem:[#allocation5 + $0xc8] ss:$16 sps:$4 sm:$0xff]  }
  0xd6   : > { %685 = vmatpush1.bf16.msra.mxu0 %v3750_v16  ;;  %3620 = vmatpush1.bf16.msra.mxu1 %v3750_v16  ;;  %v3838_v16 = vld [vmem:[#allocation5 + $0xec] ss:$16 sps:$4 sm:$0xff]  }
  0xd7   : > { %1376 = vmatprep.subr.bf16.mxu0 %v3769_v17  ;;  %863 = vmatprep.subr.bf16.mxu1 %v3817_v2  ;;  %v3836_v17 = vld [vmem:[#allocation5 + $0xe8] ss:$16 sps:$4 sm:$0xff]  }
  0xd9   : > { %703 = vmatmul.mubr.bf16.vlgmr.msra.gmra.mrb[0].mxu0 %v4569_v18  ;;  %823 = vmatmul.mubr.bf16.vlgmr.msra.gmra.mrb[0].mxu1 %v4572_v19 }
  0xda   : > { %712 = vmatprep.mubr.bf16.mxu0 %v4269_v0  ;;  %832 = vmatprep.mubr.bf16.mxu1 %v4269_v0 }
  0xdb   : > { %1377 = vmatpush1.bf16.msra.mxu0 %v3767_v20  ;;  %864 = vmatpush1.bf16.msra.mxu1 %v3815_v3  ;;  %v3839_v20 = vld [vmem:[#allocation8] ss:$8 sps:$4 sm:$0xff]   ;;  %v3854_v3 = vld [vmem:[#allocation8 + $0x50] ss:$8 sps:$4 sm:$0xff]  }
  0xdc   : > { %1378 = vmatprep.subr.bf16.mxu0 %v3772_v21  ;;  %865 = vmatprep.subr.bf16.mxu1 %v3820_v4  ;;  %v3841_v21 = vld [vmem:[#allocation8 + $0x4] ss:$8 sps:$4 sm:$0xff]  }
  0xdd   : > { %v3859_v4 = vld [vmem:[#allocation8 + $0x64] ss:$8 sps:$4 sm:$0xff]  }
  0xdf   : > { %1379 = vmatpush1.bf16.msra.mxu0 %v3770_v22  ;;  %866 = vmatpush1.bf16.msra.mxu1 %v3818_v5  ;;  %v3842_v22 = vld [vmem:[#allocation8 + $0x10] ss:$8 sps:$4 sm:$0xff]  }
  0xe0   : > { %1380 = vmatprep.subr.bf16.mxu0 %v3775_v23  ;;  %867 = vmatprep.subr.bf16.mxu1 %v3823_v6  ;;  %v3844_v23 = vld [vmem:[#allocation8 + $0x14] ss:$8 sps:$4 sm:$0xff]  }
  0xe1   : > { %713 = vmatmul.mubr.bf16.gmra.mrb[4].mxu0 %v4579_v24  ;;  %833 = vmatmul.mubr.bf16.gmra.mrb[4].mxu1 %v4582_v25 }
  0xe2   : > { %722 = vmatprep.mubr.bf16.mxu0 %v4269_v0  ;;  %842 = vmatprep.mubr.bf16.mxu1 %v4269_v0 }
  0xe3   : > { %1381 = vmatpush1.bf16.msra.mxu0 %v3773_v26  ;;  %868 = vmatpush1.bf16.msra.mxu1 %v3821_v7 }
  0xe4   : > { %1382 = vmatprep.subr.bf16.mxu0 %v3778_v27  ;;  %869 = vmatprep.subr.bf16.mxu1 %v3826_v8 }
  0xe7   : > { %1383 = vmatpush1.bf16.msra.mxu0 %v3776_v29  ;;  %870 = vmatpush1.bf16.msra.mxu1 %v3824_v9  ;;  %v3847_v29 = vld [vmem:[#allocation8 + $0x24] ss:$8 sps:$4 sm:$0xff]  }
  0xe8   : > { %1384 = vmatprep.subr.bf16.mxu0 %v3781_v30  ;;  %871 = vmatprep.subr.bf16.mxu1 %v3829_v10 }
  0xe9   : > { %723 = vmatmul.mubr.bf16.gmra.mrb[8].mxu0 %v4589_v28  ;;  %843 = vmatmul.mubr.bf16.gmra.mrb[8].mxu1 %v4592_v31 }
  0xea   : > { %732 = vmatprep.mubr.bf16.mxu0 %v4269_v0  ;;  %852 = vmatprep.mubr.bf16.mxu1 %v4269_v0 }
  0xeb   : > { %1385 = vmatpush1.bf16.msra.mxu0 %v3779_v32  ;;  %872 = vmatpush1.bf16.msra.mxu1 %v3827_v11  ;;  %v3857_v11 = vld [vmem:[#allocation8 + $0x60] ss:$8 sps:$4 sm:$0xff]  }
  0xec   : > { %1386 = vmatprep.subr.bf16.mxu0 %v3784_v33  ;;  %873 = vmatprep.subr.bf16.mxu1 %v3832_v12 }
  0xef   : > { %1387 = vmatpush1.bf16.msra.mxu0 %v3782_v34  ;;  %874 = vmatpush1.bf16.msra.mxu1 %v3830_v13  ;;  %v3845_v34 = vld [vmem:[#allocation8 + $0x20] ss:$8 sps:$4 sm:$0xff]  }
  0xf0   : > { %1388 = vmatprep.subr.bf16.mxu0 %v3787_v35  ;;  %875 = vmatprep.subr.bf16.mxu1 %v3835_v14 }
  0xf1   : > { %733 = vmatmul.mubr.bf16.gmra.mrb[12].mxu0 %v4599_v36  ;;  %853 = vmatmul.mubr.bf16.gmra.mrb[12].mxu1 %v4602_v37 }
  0xf2   : > { %742 = vmatprep.mubr.bf16.mxu0 %v4269_v0  ;;  %895 = vmatprep.mubr.bf16.mxu1 %v4269_v0 }
  0xf3   : > { %1389 = vmatpush1.bf16.msra.mxu0 %v3785_v38  ;;  %876 = vmatpush1.bf16.msra.mxu1 %v3833_v15 }
  0xf4   : > { %1390 = vmatprep.subr.bf16.mxu0 %v3790_v39  ;;  %877 = vmatprep.subr.bf16.mxu1 %v3838_v16  ;;  %v3862_v16 = vld [vmem:[#allocation8 + $0x74] ss:$8 sps:$4 sm:$0xff]  }
  0xf7   : > { %1391 = vmatpush1.bf16.msra.mxu0 %v3788_v40  ;;  %878 = vmatpush1.bf16.msra.mxu1 %v3836_v17 }
  0xf8   : > { %1392 = vmatprep.subr.bf16.mxu0 %v3793_v41  ;;  %2081 = vmatprep.subr.bf16.mxu1 %v3841_v21  ;;  %v3865_v21 = vld [vmem:[#allocation8 + $0x84] ss:$8 sps:$4 sm:$0xff]  }
  0xf9   : > { %743 = vmatmul.mubr.bf16.gmra.mrb[16].mxu0 %v4609_v42 }
  0xfa   : > { %752 = vmatprep.mubr.bf16.mxu0 %v4269_v0  ;;  %896 = vmatmul.mubr.bf16.vlgmr.msra.gmra.mrb[16].mxu1 %v4569_v18 }
  0xfb   : > { %1393 = vmatpush1.bf16.msra.mxu0 %v3791_v43  ;;  %905 = vmatprep.mubr.bf16.mxu1 %v4269_v0 }
  0xfc   : > { %1394 = vmatprep.subr.bf16.mxu0 %v3796_v44  ;;  %2082 = vmatpush1.bf16.msra.mxu1 %v3839_v20  ;;  %v3848_v44 = vld [vmem:[#allocation8 + $0x30] ss:$8 sps:$4 sm:$0xff]  }
  0xfd   : > { %2083 = vmatprep.subr.bf16.mxu1 %v3844_v23  ;;  %v3860_v20 = vld [vmem:[#allocation8 + $0x70] ss:$8 sps:$4 sm:$0xff]  }
  0xff   : > { %1395 = vmatpush1.bf16.msra.mxu0 %v3794_v45  ;;  %v3853_v45 = vld [vmem:[#allocation8 + $0x44] ss:$8 sps:$4 sm:$0xff]  }
 0x100   : > { %1396 = vmatprep.subr.bf16.mxu0 %v3799_v46  ;;  %2084 = vmatpush1.bf16.msra.mxu1 %v3842_v22 }
 0x101   : > { %753 = vmatmul.mubr.bf16.gmra.mrb[20].mxu0 %v4614_v47  ;;  %2085 = vmatprep.subr.bf16.mxu1 %v3847_v29 }
 0x102   : > { %762 = vmatprep.mubr.bf16.mxu0 %v4269_v0  ;;  %906 = vmatmul.mubr.bf16.gmra.mrb[20].mxu1 %v4579_v24  ;;  %v3850_v24 = vld [vmem:[#allocation8 + $0x34] ss:$8 sps:$4 sm:$0xff]  }
 0x103   : > { %1397 = vmatpush1.bf16.msra.mxu0 %v3797_v48  ;;  %915 = vmatprep.mubr.bf16.mxu1 %v4269_v0 }
 0x104   : > { %1398 = vmatprep.subr.bf16.mxu0 %v3802_v49  ;;  %2086 = vmatpush1.bf16.msra.mxu1 %v3845_v34  ;;  %v3863_v34 = vld [vmem:[#allocation8 + $0x80] ss:$8 sps:$4 sm:$0xff]  }
 0x105   : > { %2087 = vmatprep.subr.bf16.mxu1 %v3850_v24 }
 0x107   : > { %1399 = vmatpush1.bf16.msra.mxu0 %v3800_v50 }
 0x108   : > { %1400 = vmatprep.subr.bf16.mxu0 %v3805_v51  ;;  %2088 = vmatpush1.bf16.msra.mxu1 %v3848_v44  ;;  %v3868_v44 = vld [vmem:[#allocation8 + $0x94] ss:$8 sps:$4 sm:$0xff]  }
 0x109   : > { %763 = vmatmul.mubr.bf16.gmra.mrb[24].mxu0 %v4619_v52  ;;  %2089 = vmatprep.subr.bf16.mxu1 %v3853_v45 }
 0x10a   : > { %772 = vmatprep.mubr.bf16.mxu0 %v4269_v0  ;;  %916 = vmatmul.mubr.bf16.gmra.mrb[24].mxu1 %v4589_v28 }
 0x10b   : > { %1401 = vmatpush1.bf16.msra.mxu0 %v3803_v53  ;;  %925 = vmatprep.mubr.bf16.mxu1 %v4269_v0 }
 0x10c   : > { %1402 = vmatprep.subr.bf16.mxu0 %v3808_v54  ;;  %v3851_v54 = vld [vmem:[#allocation8 + $0x40] ss:$8 sps:$4 sm:$0xff]  }
 0x10d   : > { %2090 = vmatpush1.bf16.msra.mxu1 %v3851_v54 }
 0x10f   : > { %1403 = vmatpush1.bf16.msra.mxu0 %v3806_v55 }
 0x110   : > { %1404 = vmatprep.subr.bf16.mxu0 %v3811_v56 }
 0x111   : > { %773 = vmatmul.mubr.bf16.gmra.mrb[28].mxu0 %v4624_v57 }
 0x112   : > { %782 = vmatprep.mubr.bf16.mxu0 %v4269_v0  ;;  %926 = vmatmul.mubr.bf16.gmra.mrb[28].mxu1 %v4599_v36 }
 0x113   : > { %1405 = vmatpush1.bf16.msra.mxu0 %v3809_v58  ;;  %935 = vmatprep.mubr.bf16.mxu1 %v4269_v0 }
 0x114   : > { %1406 = vmatprep.subr.bf16.mxu0 %v3814_v63  ;;  %v3856_v63 = vld [vmem:[#allocation8 + $0x54] ss:$8 sps:$4 sm:$0xff]  }
 0x115   : > { %2091 = vmatprep.subr.bf16.mxu1 %v3856_v63 }
 0x116   : > { %2092 = vmatpush1.bf16.msra.mxu1 %v3854_v3  ;;  %v3874_v3 = vld [vmem:[#allocation8 + $0xb4] ss:$8 sps:$4 sm:$0xff]  }
 0x117   : > { %1407 = vmatpush1.bf16.msra.mxu0 %v3812_v62  ;;  %2093 = vmatprep.subr.bf16.mxu1 %v3859_v4 }
 0x119   : > { %783 = vmatmul.mubr.bf16.gmra.mrb[32].mxu0 %v4629_v59 }
 0x11a   : > { %792 = vmatprep.mubr.bf16.mxu0 %v4269_v0  ;;  %2094 = vmatpush1.bf16.msra.mxu1 %v3857_v11 }
 0x11b   : > { %2095 = vmatprep.subr.bf16.mxu1 %v3862_v16  ;;  %936 = vmatmul.mubr.bf16.gmra.mrb[32].mxu1 %v4609_v42 }
 0x11c   : > { %945 = vmatprep.mubr.bf16.mxu1 %v4269_v0 }
 0x11e   : > { %2096 = vmatpush1.bf16.msra.mxu1 %v3860_v20 }
 0x11f   : > { %2097 = vmatprep.subr.bf16.mxu1 %v3865_v21 }
 0x121   : > { %793 = vmatmul.mubr.bf16.gmra.mrb[36].mxu0 %v4634_v60 }
 0x122   : > { %802 = vmatprep.mubr.bf16.mxu0 %v4269_v0  ;;  %2098 = vmatpush1.bf16.msra.mxu1 %v3863_v34 }
 0x123   : > { %2099 = vmatprep.subr.bf16.mxu1 %v3868_v44  ;;  %946 = vmatmul.mubr.bf16.gmra.mrb[36].mxu1 %v4614_v47 }
 0x124   : > { %955 = vmatprep.mubr.bf16.mxu1 %v4269_v0 }
 0x129   : > { %803 = vmatmul.mubr.bf16.gmra.mrb[40].mxu0 %v4639_v61 }
 0x12a   : > { %812 = vmatprep.mubr.bf16.mxu0 %v4269_v0 }
 0x12b   : > { %956 = vmatmul.mubr.bf16.gmra.mrb[40].mxu1 %v4619_v52 }
 0x12c   : > { %965 = vmatprep.mubr.bf16.mxu1 %v4269_v0 }
 0x131   : > { %813 = vmatmul.mubr.bf16.gmra.mrb[44].mxu0 %v4644_v1 }
 0x133   : > { %966 = vmatmul.mubr.bf16.gmra.mrb[44].mxu1 %v4624_v57 }
 0x134   : > { %975 = vmatprep.mubr.bf16.mxu1 %v4269_v0 }
 0x13b   : > { %976 = vmatmul.mubr.bf16.gmra.mrb[48].mxu1 %v4629_v59 }
 0x13c   : > { %985 = vmatprep.mubr.bf16.mxu1 %v4269_v0 }
 0x143   : > { %986 = vmatmul.mubr.bf16.gmra.mrb[52].mxu1 %v4634_v60 }
 0x144   : > { %995 = vmatprep.mubr.bf16.mxu1 %v4269_v0 }
 0x14b   : > { %996 = vmatmul.mubr.bf16.gmra.mrb[56].mxu1 %v4639_v61 }
 0x14c   : > { %1005 = vmatprep.mubr.bf16.mxu1 %v4269_v0 }
 0x153   : > { %1006 = vmatmul.mubr.bf16.gmra.mrb[60].mxu1 %v4644_v1 }
 0x154   : > { %1015 = vmatprep.mubr.bf16.mxu1 %v4269_v0 }
 0x15b   : > { %1016 = vmatmul.mubr.bf16.gmra.mrb[64].mxu1 %v4572_v19  ;;  %v3878_v19 = vld [vmem:[#allocation8 + $0xd0] ss:$8 sps:$4 sm:$0xff]  }
 0x15c   : > { %1025 = vmatprep.mubr.bf16.mxu1 %v4269_v0 }
 0x163   : > { %1026 = vmatmul.mubr.bf16.gmra.mrb[68].mxu1 %v4582_v25  ;;  %v3881_v25 = vld [vmem:[#allocation8 + $0xe0] ss:$8 sps:$4 sm:$0xff]  }
 0x164   : > { %1035 = vmatprep.mubr.bf16.mxu1 %v4269_v0 }
 0x16b   : > { %1036 = vmatmul.mubr.bf16.gmra.mrb[72].mxu1 %v4592_v31  ;;  %v3884_v31 = vld [vmem:[#allocation8 + $0xf0] ss:$8 sps:$4 sm:$0xff]  }
 0x16c   : > { %1045 = vmatprep.mubr.bf16.mxu1 %v4269_v0 }
 0x173   : > { %1046 = vmatmul.mubr.bf16.gmra.mrb[76].mxu1 %v4602_v37 }
 0x1ac   : > { %v704_v26 = vpop.f32.mrb[0].mxu0  ;;  %v4649_v27 = vpop.f32.mrb[0].mxu1 }
 0x1ad   : > { %v706_v30 = vpop.f32.mrb[1].mxu0  ;;  %v4652_v32 = vpop.f32.mrb[1].mxu1 }
 0x1ae   : > { %v708_v33 = vpop.f32.mrb[2].mxu0  ;;  %v4655_v18 = vpop.f32.mrb[2].mxu1 }
 0x1af   : > { %v1152_v35 = vpack.c.bf16 %v708_v33, %v704_v26  ;;  %v710_v38 = vpop.f32.mrb[3].mxu0  ;;  %v1176_v39 = vpack.c.bf16 %v4655_v18, %v4649_v27  ;;  %v4659_v40 = vpop.f32.mrb[3].mxu1  ;;  %v3886_v27 = vld [vmem:[#allocation8 + $0xf4] ss:$8 sps:$4 sm:$0xff]  }
 0x1b0   : > { %v1153_v41 = vpack.c.bf16 %v710_v38, %v706_v30  ;;  %v1177_v43 = vpack.c.bf16 %v4659_v40, %v4652_v32  ;;  %v3883_v32 = vld [vmem:[#allocation8 + $0xe4] ss:$8 sps:$4 sm:$0xff]  }
 0x1b2   : > { %1408 = vmatprep.mubr.bf16.mxu0 %v1153_v41 }
 0x1b3   : > { %1409 = vmatmul.mubr.bf16.vlgmr.msra.gmra.mrb[48].mxu0 %v1152_v35 }
 0x1b4   : > { %v714_v46 = vpop.f32.mrb[4].mxu0  ;;  %v4663_v48 = vpop.f32.mrb[4].mxu1 }
 0x1b5   : > { %v716_v49 = vpop.f32.mrb[5].mxu0  ;;  %v4666_v50 = vpop.f32.mrb[5].mxu1 }
 0x1b6   : > { %v718_v51 = vpop.f32.mrb[6].mxu0  ;;  %v4669_v53 = vpop.f32.mrb[6].mxu1 }
 0x1b7   : > { %v1154_v55 = vpack.c.bf16 %v718_v51, %v714_v46  ;;  %v720_v56 = vpop.f32.mrb[7].mxu0  ;;  %v1178_v58 = vpack.c.bf16 %v4669_v53, %v4663_v48  ;;  %v4673_v62 = vpop.f32.mrb[7].mxu1  ;;  %v3866_v46 = vld [vmem:[#allocation8 + $0x90] ss:$8 sps:$4 sm:$0xff]  }
 0x1b8   : > { %v1155_v28 = vpack.c.bf16 %v720_v56, %v716_v49  ;;  %v1179_v2 = vpack.c.bf16 %v4673_v62, %v4666_v50  ;;  %v3871_v49 = vld [vmem:[#allocation8 + $0xa4] ss:$8 sps:$4 sm:$0xff]   ;;  %2100 = vmatpush1.bf16.msra.mxu1 %v3866_v46  ;;  %v3869_v56 = vld [vmem:[#allocation8 + $0xa0] ss:$8 sps:$4 sm:$0xff]  }
 0x1b9   : > { %2101 = vmatprep.subr.bf16.mxu1 %v3871_v49 }
 0x1ba   : > { %1418 = vmatprep.mubr.bf16.mxu0 %v1155_v28 }
 0x1bb   : > { %1419 = vmatmul.mubr.bf16.gmra.mrb[52].mxu0 %v1154_v55 }
 0x1bc   : > { %v724_v5 = vpop.f32.mrb[8].mxu0  ;;  %v4677_v6 = vpop.f32.mrb[8].mxu1  ;;  %2102 = vmatpush1.bf16.msra.mxu1 %v3869_v56 }
 0x1bd   : > { %v726_v7 = vpop.f32.mrb[9].mxu0  ;;  %v4680_v8 = vpop.f32.mrb[9].mxu1  ;;  %2103 = vmatprep.subr.bf16.mxu1 %v3874_v3 }
 0x1be   : > { %v728_v9 = vpop.f32.mrb[10].mxu0  ;;  %v4683_v10 = vpop.f32.mrb[10].mxu1 }
 0x1bf   : > { %v1156_v12 = vpack.c.bf16 %v728_v9, %v724_v5  ;;  %v730_v13 = vpop.f32.mrb[11].mxu0  ;;  %v1180_v14 = vpack.c.bf16 %v4683_v10, %v4677_v6  ;;  %v4687_v15 = vpop.f32.mrb[11].mxu1  ;;  %v3872_v5 = vld [vmem:[#allocation8 + $0xb0] ss:$8 sps:$4 sm:$0xff]  }
 0x1c0   : > { %v1157_v36 = vpack.c.bf16 %v730_v13, %v726_v7  ;;  %v1181_v17 = vpack.c.bf16 %v4687_v15, %v4680_v8  ;;  %2104 = vmatpush1.bf16.msra.mxu1 %v3872_v5 }
 0x1c2   : > { %1428 = vmatprep.mubr.bf16.mxu0 %v1157_v36 }
 0x1c3   : > { %1429 = vmatmul.mubr.bf16.gmra.mrb[56].mxu0 %v1156_v12 }
 0x1c4   : > { %v734_v22 = vpop.f32.mrb[12].mxu0  ;;  %v4691_v23 = vpop.f32.mrb[12].mxu1 }
 0x1c5   : > { %v736_v26 = vpop.f32.mrb[13].mxu0  ;;  %v4694_v29 = vpop.f32.mrb[13].mxu1 }
 0x1c6   : > { %v738_v30 = vpop.f32.mrb[14].mxu0  ;;  %v4697_v33 = vpop.f32.mrb[14].mxu1 }
 0x1c7   : > { %v1158_v35 = vpack.c.bf16 %v738_v30, %v734_v22  ;;  %v740_v38 = vpop.f32.mrb[15].mxu0  ;;  %v1182_v24 = vpack.c.bf16 %v4697_v33, %v4691_v23  ;;  %v4701_v41 = vpop.f32.mrb[15].mxu1 }
 0x1c8   : > { %v1159_v42 = vpack.c.bf16 %v740_v38, %v736_v26  ;;  %v1183_v45 = vpack.c.bf16 %v4701_v41, %v4694_v29  ;;  %v3887_v41 = vld [vmem:[#allocation10 + $0x40] sm:$0xff]  }
 0x1c9   : > { %3421 = vmatprep.subr.bf16.mxu0 %v3887_v41 }
 0x1ca   : > { %1438 = vmatprep.mubr.bf16.mxu0 %v1159_v42 }
 0x1cb   : > { %1439 = vmatmul.mubr.bf16.gmra.mrb[60].mxu0 %v1158_v35 }
 0x1cc   : > { %v744_v51 = vpop.f32.mrb[16].mxu0 }
 0x1cd   : > { %v746_v54 = vpop.f32.mrb[17].mxu0  ;;  %v897_v18 = vpop.f32.mrb[16].mxu1 }
 0x1ce   : > { %v748_v55 = vpop.f32.mrb[18].mxu0  ;;  %v1056_v40 = vmax.f32 %v897_v18, 0.0 }
 0x1cf   : > { %v1160_v63 = vpack.c.bf16 %v748_v55, %v744_v51  ;;  %v750_v28 = vpop.f32.mrb[19].mxu0 }
 0x1d0   : > { %v1161_v4 = vpack.c.bf16 %v750_v28, %v746_v54 }
 0x1d2   : > { %1448 = vmatprep.mubr.bf16.mxu0 %v1161_v4 }
 0x1d3   : > { %1449 = vmatmul.mubr.bf16.gmra.mrb[64].mxu0 %v1160_v63 }
 0x1d4   : > { %v754_v7 = vpop.f32.mrb[20].mxu0 }
 0x1d5   : > { %v756_v47 = vpop.f32.mrb[21].mxu0 }
 0x1d6   : > { %v758_v9 = vpop.f32.mrb[22].mxu0 }
 0x1d7   : > { %v1162_v11 = vpack.c.bf16 %v758_v9, %v754_v7  ;;  %v760_v12 = vpop.f32.mrb[23].mxu0 }
 0x1d8   : > { %v1163_v13 = vpack.c.bf16 %v760_v12, %v756_v47 }
 0x1da   : > { %1458 = vmatprep.mubr.bf16.mxu0 %v1163_v13  ;;  %v3875_v13 = vld [vmem:[#allocation8 + $0xc0] ss:$8 sps:$4 sm:$0xff]  }
 0x1db   : > { %1459 = vmatmul.mubr.bf16.gmra.mrb[68].mxu0 %v1162_v11 }
 0x1dc   : > { %v764_v16 = vpop.f32.mrb[24].mxu0 }
 0x1dd   : > { %v766_v36 = vpop.f32.mrb[25].mxu0 }
 0x1de   : > { %v768_v20 = vpop.f32.mrb[26].mxu0 }
 0x1df   : > { %v1164_v21 = vpack.c.bf16 %v768_v20, %v764_v16  ;;  %v770_v22 = vpop.f32.mrb[27].mxu0  ;;  %v3877_v16 = vld [vmem:[#allocation8 + $0xc4] ss:$8 sps:$4 sm:$0xff]  }
 0x1e0   : > { %v1165_v52 = vpack.c.bf16 %v770_v22, %v766_v36  ;;  %2105 = vmatprep.subr.bf16.mxu1 %v3877_v16 }
 0x1e1   : > { %2106 = vmatpush1.bf16.msra.mxu1 %v3875_v13 }
 0x1e2   : > { %1468 = vmatprep.mubr.bf16.mxu0 %v1165_v52 }
 0x1e3   : > { %1469 = vmatmul.mubr.bf16.gmra.mrb[72].mxu0 %v1164_v21  ;;  %v3880_v21 = vld [vmem:[#allocation8 + $0xd4] ss:$8 sps:$4 sm:$0xff]  }
 0x1e4   : > { %v774_v26 = vpop.f32.mrb[28].mxu0  ;;  %2107 = vmatprep.subr.bf16.mxu1 %v3880_v21 }
 0x1e5   : > { %v776_v30 = vpop.f32.mrb[29].mxu0  ;;  %2108 = vmatpush1.bf16.msra.mxu1 %v3878_v19 }
 0x1e6   : > { %v778_v34 = vpop.f32.mrb[30].mxu0  ;;  %2109 = vmatprep.subr.bf16.mxu1 %v3883_v32 }
 0x1e7   : > { %v1166_v35 = vpack.c.bf16 %v778_v34, %v774_v26  ;;  %v780_v38 = vpop.f32.mrb[31].mxu0 }
 0x1e8   : > { %v1167_v44 = vpack.c.bf16 %v780_v38, %v776_v30 }
 0x1e9   : > { %2110 = vmatpush1.bf16.msra.mxu1 %v3881_v25 }
 0x1ea   : > { %1478 = vmatprep.mubr.bf16.mxu0 %v1167_v44  ;;  %2111 = vmatprep.subr.bf16.mxu1 %v3886_v27 }
 0x1eb   : > { %1479 = vmatmul.mubr.bf16.gmra.mrb[76].mxu0 %v1166_v35 }
 0x1ec   : > { %v784_v57 = vpop.f32.mrb[32].mxu0 }
 0x1ed   : > { %v786_v42 = vpop.f32.mrb[33].mxu0  ;;  %2112 = vmatpush1.bf16.msra.mxu1 %v3884_v31 }
 0x1ee   : > { %v788_v46 = vpop.f32.mrb[34].mxu0 }
 0x1ef   : > { %v1168_v49 = vpack.c.bf16 %v788_v46, %v784_v57  ;;  %v790_v51 = vpop.f32.mrb[35].mxu0 }
 0x1f0   : > { %v1169_v54 = vpack.c.bf16 %v790_v51, %v786_v42 }
 0x1f2   : > { %1488 = vmatprep.mubr.bf16.mxu0 %v1169_v54 }
 0x1f3   : > { %1489 = vmatmul.mubr.bf16.gmra.mrb[80].mxu0 %v1168_v49 }
 0x1f4   : > { %v794_v59 = vpop.f32.mrb[36].mxu0 }
 0x1f5   : > { %v796_v55 = vpop.f32.mrb[37].mxu0 }
 0x1f6   : > { %v798_v56 = vpop.f32.mrb[38].mxu0 }
 0x1f7   : > { %v1170_v63 = vpack.c.bf16 %v798_v56, %v794_v59  ;;  %v800_v28 = vpop.f32.mrb[39].mxu0 }
 0x1f8   : > { %v1171_v3 = vpack.c.bf16 %v800_v28, %v796_v55 }
 0x1fa   : > { %1498 = vmatprep.mubr.bf16.mxu0 %v1171_v3 }
 0x1fb   : > { %1499 = vmatmul.mubr.bf16.gmra.mrb[84].mxu0 %v1170_v63 }
 0x1fc   : > { %v804_v60 = vpop.f32.mrb[40].mxu0 }
 0x1fd   : > { %v806_v4 = vpop.f32.mrb[41].mxu0 }
 0x1fe   : > { %v808_v5 = vpop.f32.mrb[42].mxu0 }
 0x1ff   : > { %v1172_v7 = vpack.c.bf16 %v808_v5, %v804_v60  ;;  %v810_v47 = vpop.f32.mrb[43].mxu0 }
 0x200   : > { %v1173_v9 = vpack.c.bf16 %v810_v47, %v806_v4  ;;  %v3890_v47 = vld [vmem:[#allocation10 + $0x8] sm:$0xff]  }
 0x202   : > { %1508 = vmatprep.mubr.bf16.mxu0 %v1173_v9 }
 0x203   : > { %1509 = vmatmul.mubr.bf16.gmra.mrb[88].mxu0 %v1172_v7  ;;  %v3889_v7 = vld [vmem:[#allocation10 + $0x48] sm:$0xff]  }
 0x204   : > { %v814_v61 = vpop.f32.mrb[44].mxu0 }
 0x205   : > { %v816_v11 = vpop.f32.mrb[45].mxu0 }
 0x206   : > { %v818_v12 = vpop.f32.mrb[46].mxu0 }
 0x207   : > { %v1174_v36 = vpack.c.bf16 %v818_v12, %v814_v61  ;;  %v820_v1 = vpop.f32.mrb[47].mxu0 }
 0x208   : > { %v1175_v20 = vpack.c.bf16 %v820_v1, %v816_v11 }
 0x20a   : > { %1518 = vmatprep.mubr.bf16.mxu0 %v1175_v20 }
 0x20b   : > { %1519 = vmatmul.mubr.bf16.gmra.mrb[92].mxu0 %v1174_v36 }
 0x20c   : > { %1528 = vmatprep.mubr.bf16.mxu0 %v1177_v43 }
 0x213   : > { %1529 = vmatmul.mubr.bf16.gmra.mrb[96].mxu0 %v1176_v39  ;;  %v899_v39 = vpop.f32.mrb[17].mxu1 }
 0x214   : > { %1538 = vmatprep.mubr.bf16.mxu0 %v1179_v2  ;;  %v1057_v37 = vmax.f32 %v899_v39, 0.0  ;;  %v901_v43 = vpop.f32.mrb[18].mxu1 }
 0x215   : > { %v903_v48 = vpop.f32.mrb[19].mxu1  ;;  %v1058_v50 = vmax.f32 %v901_v43, 0.0 }
 0x216   : > { %v1059_v53 = vmax.f32 %v903_v48, 0.0  ;;  %v907_v2 = vpop.f32.mrb[20].mxu1 }
 0x217   : > { %v909_v6 = vpop.f32.mrb[21].mxu1  ;;  %v1060_v8 = vmax.f32 %v907_v2, 0.0 }
 0x218   : > { %v4752_v62 = vpack.c.bf16 %v1059_v53, %v1057_v37  ;;  %v1061_v10 = vmax.f32 %v909_v6, 0.0 }
 0x21b   : > { %1539 = vmatmul.mubr.bf16.gmra.mrb[100].mxu0 %v1178_v58  ;;  %v4750_v58 = vpack.c.bf16 %v1058_v50, %v1056_v40 }
 0x21c   : > { %1548 = vmatprep.mubr.bf16.mxu0 %v1181_v17 }
 0x223   : > { %1549 = vmatmul.mubr.bf16.gmra.mrb[104].mxu0 %v1180_v14  ;;  %v911_v14 = vpop.f32.mrb[22].mxu1 }
 0x224   : > { %1558 = vmatprep.mubr.bf16.mxu0 %v1183_v45  ;;  %v913_v15 = vpop.f32.mrb[23].mxu1  ;;  %v1062_v17 = vmax.f32 %v911_v14, 0.0  ;;  %v3888_v45 = vld [vmem:[#allocation10] sm:$0xff]  }
 0x225   : > { %v1063_v23 = vmax.f32 %v913_v15, 0.0  ;;  %v917_v52 = vpop.f32.mrb[24].mxu1  ;;  %3422 = vmatpush3.bf16.msra.mxu0 %v3888_v45 }
 0x226   : > { %v4754_v29 = vpack.c.bf16 %v1062_v17, %v1060_v8  ;;  %v1064_v30 = vmax.f32 %v917_v52, 0.0  ;;  %v919_v34 = vpop.f32.mrb[25].mxu1  ;;  %3423 = vmatprep.subr.bf16.mxu0 %v3889_v7  ;;  %v3892_v7 = vld [vmem:[#allocation10 + $0x10] sm:$0xff]  }
 0x227   : > { %v4756_v33 = vpack.c.bf16 %v1063_v23, %v1061_v10  ;;  %v1065_v44 = vmax.f32 %v919_v34, 0.0  ;;  %v921_v57 = vpop.f32.mrb[26].mxu1 }
 0x228   : > { %v1066_v46 = vmax.f32 %v921_v57, 0.0  ;;  %v923_v49 = vpop.f32.mrb[27].mxu1 }
 0x229   : > { %v1067_v54 = vmax.f32 %v923_v49, 0.0  ;;  %v927_v5 = vpop.f32.mrb[28].mxu1  ;;  %3424 = vmatpush3.bf16.msra.mxu0 %v3890_v47  ;;  %v3893_v47 = vld [vmem:[#allocation10 + $0x58] sm:$0xff]  }
 0x22a   : > { %v4764_v55 = vpack.c.bf16 %v1066_v46, %v1064_v30  ;;  %v1068_v11 = vmax.f32 %v927_v5, 0.0  ;;  %v929_v12 = vpop.f32.mrb[29].mxu1  ;;  %v3891_v5 = vld [vmem:[#allocation10 + $0x50] sm:$0xff]  }
 0x22b   : > { %1559 = vmatmul.mubr.bf16.gmra.mrb[108].mxu0 %v1182_v24  ;;  %v4767_v63 = vpack.c.bf16 %v1067_v54, %v1065_v44  ;;  %v931_v1 = vpop.f32.mrb[30].mxu1  ;;  %v1069_v27 = vmax.f32 %v929_v12, 0.0  ;;  %3425 = vmatprep.subr.bf16.mxu0 %v3891_v5 }
 0x22c   : > { %v1070_v21 = vmax.f32 %v931_v1, 0.0  ;;  %v933_v32 = vpop.f32.mrb[31].mxu1 }
 0x22d   : > { %v1071_v43 = vmax.f32 %v933_v32, 0.0  ;;  %v937_v8 = vpop.f32.mrb[32].mxu1  ;;  %3426 = vmatpush3.bf16.msra.mxu0 %v3892_v7 }
 0x22e   : > { %v4780_v40 = vpack.c.bf16 %v1070_v21, %v1068_v11  ;;  %v1072_v15 = vmax.f32 %v937_v8, 0.0  ;;  %v939_v17 = vpop.f32.mrb[33].mxu1  ;;  %3427 = vmatprep.subr.bf16.mxu0 %v3893_v47 }
 0x22f   : > { %v4785_v6 = vpack.c.bf16 %v1071_v43, %v1069_v27  ;;  %v941_v45 = vpop.f32.mrb[34].mxu1  ;;  %v1073_v44 = vmax.f32 %v939_v17, 0.0  ;;  %v3894_v43 = vld [vmem:[#allocation10 + $0x18] sm:$0xff]  }
 0x230   : > { %v943_v30 = vpop.f32.mrb[35].mxu1 }
 0x231   : > { %v1075_v54 = vmax.f32 %v943_v30, 0.0  ;;  %3428 = vmatpush3.bf16.msra.mxu0 %v3894_v43 }
 0x286   : > { %v1410_v24 = vpop.f32.mrb[48].mxu0 }
 0x287   : > { %v1412_v22 = vpop.f32.mrb[49].mxu0 }
 0x288   : > { %v1414_v26 = vpop.f32.mrb[50].mxu0 }
 0x289   : > { %v4758_v35 = vpack.c.bf16 %v1414_v26, %v1410_v24  ;;  %v1416_v38 = vpop.f32.mrb[51].mxu0  ;;  %v1074_v26 = vmax.f32 %v941_v45, 0.0 }
 0x28a   : > { %v4760_v42 = vpack.c.bf16 %v1416_v38, %v1412_v22 }
 0x28b   : > { %v1633_v51 = vmul.bf16 1027030327, %v4758_v35  ;;  %v4796_v49 = vpack.c.bf16 %v1074_v26, %v1072_v15  ;;  %v3896_v26 = vld [vmem:[#allocation10 + $0x20] sm:$0xff]  }
 0x28c   : > { %v1634_v59 = vmul.bf16 1027030327, %v4760_v42  ;;  %v1602_v12 = vmul.bf16 1056980736, %v4760_v42 }
 0x28d   : > { %v1665_v56 = vmul.bf16 %v1633_v51, %v4758_v35 }
 0x28e   : > { %v1666_v28 = vmul.bf16 %v1634_v59, %v4760_v42  ;;  %v1420_v3 = vpop.f32.mrb[52].mxu0 }
 0x28f   : > { %v1697_v60 = vmul.bf16 %v1665_v56, %v4758_v35  ;;  %v1422_v4 = vpop.f32.mrb[53].mxu0 }
 0x290   : > { %v1424_v9 = vpop.f32.mrb[54].mxu0  ;;  %v1698_v61 = vmul.bf16 %v1666_v28, %v4760_v42 }
 0x291   : > { %v1729_v13 = vadd.bf16 %v1697_v60, %v4758_v35  ;;  %v4773_v16 = vpack.c.bf16 %v1424_v9, %v1420_v3  ;;  %v1426_v36 = vpop.f32.mrb[55].mxu0  ;;  %v4801_v60 = vpack.c.bf16 %v1075_v54, %v1073_v44 }
 0x292   : > { %v4775_v20 = vpack.c.bf16 %v1426_v36, %v1422_v4  ;;  %v1730_v19 = vadd.bf16 %v1698_v61, %v4760_v42  ;;  %v947_v4 = vpop.f32.mrb[36].mxu1  ;;  %v1601_v61 = vmul.bf16 1056980736, %v4758_v35 }
 0x293   : > { %v1761_v25 = vmul.bf16 1061961548, %v1729_v13  ;;  %v1635_v31 = vmul.bf16 1027030327, %v4773_v16  ;;  %v949_v36 = vpop.f32.mrb[37].mxu1 }
 0x294   : > { %v1636_v18 = vmul.bf16 1027030327, %v4775_v20  ;;  %v1762_v39 = vmul.bf16 1061961548, %v1730_v19  ;;  %v951_v27 = vpop.f32.mrb[38].mxu1 }
 0x295   : > { %3911 = vtanh.bf16 %v1761_v25  ;;  %v1667_v37 = vmul.bf16 %v1635_v31, %v4773_v16  ;;  %v1076_v31 = vmax.f32 %v947_v4, 0.0  ;;  %v953_v42 = vpop.f32.mrb[39].mxu1  ;;  %v1604_v54 = vmul.bf16 1056980736, %v4775_v20 }
 0x296   : > { %v1668_v48 = vmul.bf16 %v1636_v18, %v4775_v20  ;;  %v1430_v50 = vpop.f32.mrb[56].mxu0  ;;  %3913 = vtanh.bf16 %v1762_v39  ;;  %v957_v44 = vpop.f32.mrb[40].mxu1 }
 0x297   : > { %v1432_v53 = vpop.f32.mrb[57].mxu0  ;;  %v1699_v2 = vmul.bf16 %v1667_v37, %v4773_v16  ;;  %v1078_v37 = vmax.f32 %v951_v27, 0.0 }
 0x298   : > { %v1434_v10 = vpop.f32.mrb[58].mxu0  ;;  %v1700_v14 = vmul.bf16 %v1668_v48, %v4775_v20 }
 0x299   : > { %v4788_v23 = vpack.c.bf16 %v1434_v10, %v1430_v50  ;;  %v1436_v24 = vpop.f32.mrb[59].mxu0  ;;  %v1731_v41 = vadd.bf16 %v1699_v2, %v4773_v16  ;;  %v3895_v2 = vld [vmem:[#allocation10 + $0x60] sm:$0xff]  }
 0x29a   : > { %v4791_v22 = vpack.c.bf16 %v1436_v24, %v1432_v53  ;;  %v1732_v52 = vadd.bf16 %v1700_v14, %v4775_v20  ;;  %v1077_v53 = vmax.f32 %v949_v36, 0.0  ;;  %v4815_v24 = vpack.c.bf16 %v1078_v37, %v1076_v31  ;;  %3429 = vmatprep.subr.bf16.mxu0 %v3895_v2 }
 0x29b   : > { %v1637_v34 = vmul.bf16 1027030327, %v4788_v23  ;;  %v1763_v38 = vmul.bf16 1061961548, %v1731_v41  ;;  %v1079_v41 = vmax.f32 %v953_v42, 0.0  ;;  %3430 = vmatpush3.bf16.msra.mxu0 %v3896_v26 }
 0x29c   : > { %v1638_v57 = vmul.bf16 1027030327, %v4791_v22  ;;  %v1764_v46 = vmul.bf16 1061961548, %v1732_v52 }
 0x29d   : > { %v1669_v51 = vmul.bf16 %v1637_v34, %v4788_v23  ;;  %3915 = vtanh.bf16 %v1763_v38  ;;  %v4819_v38 = vpack.c.bf16 %v1079_v41, %v1077_v53  ;;  %v3900_v53 = vld [vmem:[#allocation10 + $0x30] sm:$0xff]  }
 0x29e   : > { %v1670_v59 = vmul.bf16 %v1638_v57, %v4791_v22  ;;  %v1440_v56 = vpop.f32.mrb[60].mxu0  ;;  %3917 = vtanh.bf16 %v1764_v46  ;;  %v3897_v57 = vld [vmem:[#allocation10 + $0x68] sm:$0xff]  }
 0x29f   : > { %v1442_v28 = vpop.f32.mrb[61].mxu0  ;;  %v1701_v3 = vmul.bf16 %v1669_v51, %v4788_v23  ;;  %3431 = vmatprep.subr.bf16.mxu0 %v3897_v57 }
 0x2a0   : > { %v3912_v9 = vpop.eup %3911  ;;  %v1444_v11 = vpop.f32.mrb[62].mxu0  ;;  %v1702_v13 = vmul.bf16 %v1670_v59, %v4791_v22  ;;  %v1603_v59 = vmul.bf16 1056980736, %v4773_v16  ;;  %v3898_v16 = vld [vmem:[#allocation10 + $0x28] sm:$0xff]  }
 0x2a1   : > { %v3914_v1 = vpop.eup %3913  ;;  %v4806_v19 = vpack.c.bf16 %v1444_v11, %v1440_v56  ;;  %v1446_v21 = vpop.f32.mrb[63].mxu0  ;;  %v1825_v32 = vadd.bf16 1065369472, %v3912_v9  ;;  %v1733_v25 = vadd.bf16 %v1701_v3, %v4788_v23  ;;  %v1080_v9 = vmax.f32 %v957_v44, 0.0  ;;  %3432 = vmatpush3.bf16.msra.mxu0 %v3898_v16 }
 0x2a2   : > { %v4809_v18 = vpack.c.bf16 %v1446_v21, %v1442_v28  ;;  %v1826_v39 = vadd.bf16 1065369472, %v3914_v1  ;;  %v1734_v35 = vadd.bf16 %v1702_v13, %v4791_v22  ;;  %v959_v28 = vpop.f32.mrb[41].mxu1 }
 0x2a3   : > { %v1639_v48 = vmul.bf16 1027030327, %v4806_v19  ;;  %v1765_v50 = vmul.bf16 1061961548, %v1733_v25  ;;  %v1857_v14 = vmul.bf16 %v1825_v32, %v1601_v61  ;;  %v961_v61 = vpop.f32.mrb[42].mxu1  ;;  %v1081_v32 = vmax.f32 %v959_v28, 0.0 }
 0x2a4   : > { %v1640_v8 = vmul.bf16 1027030327, %v4809_v18  ;;  %v1858_v10 = vmul.bf16 %v1826_v39, %v1602_v12  ;;  %v1766_v15 = vmul.bf16 1061961548, %v1734_v35  ;;  %v1082_v20 = vmax.f32 %v961_v61, 0.0  ;;  %v963_v36 = vpop.f32.mrb[43].mxu1 }
 0x2a5   : > { %v1671_v17 = vmul.bf16 %v1639_v48, %v4806_v19  ;;  %3919 = vtanh.bf16 %v1765_v50  ;;  %v3899_v25 = vld [vmem:[#allocation10 + $0x70] sm:$0xff]   ;;  %v1083_v43 = vmax.f32 %v963_v36, 0.0 }
 0x2a6   : > { %v1672_v45 = vmul.bf16 %v1640_v8, %v4809_v18  ;;  %v1450_v52 = vpop.f32.mrb[64].mxu0  ;;  %2113 = vmatprep.mubr.bf16.mxu1 %v1858_v10  ;;  %3921 = vtanh.bf16 %v1766_v15  ;;  %v4833_v42 = vpack.c.bf16 %v1082_v20, %v1080_v9  ;;  %3433 = vmatprep.subr.bf16.mxu0 %v3899_v25  ;;  %v3901_v15 = vld [vmem:[#allocation10 + $0x78] sm:$0xff]  }
 0x2a7   : > { %v1452_v30 = vpop.f32.mrb[65].mxu0  ;;  %2114 = vmatmul.mubr.bf16.vlgmr.msra.gmra.mrb[80].mxu1 %v1857_v14  ;;  %v1703_v34 = vmul.bf16 %v1671_v17, %v4806_v19  ;;  %v4837_v10 = vpack.c.bf16 %v1083_v43, %v1081_v32  ;;  %v967_v14 = vpop.f32.mrb[44].mxu1  ;;  %3434 = vmatpush3.bf16.msra.mxu0 %v3900_v53  ;;  %v1608_v43 = vmul.bf16 1056980736, %v4809_v18 }
 0x2a8   : > { %v3916_v46 = vpop.eup %3915  ;;  %v1454_v51 = vpop.f32.mrb[66].mxu0  ;;  %v1704_v56 = vmul.bf16 %v1672_v45, %v4809_v18  ;;  %v1606_v45 = vmul.bf16 1056980736, %v4791_v22  ;;  %3435 = vmatprep.subr.bf16.mxu0 %v3901_v15 }
 0x2a9   : > { %v3918_v3 = vpop.eup %3917  ;;  %v4824_v4 = vpack.c.bf16 %v1454_v51, %v1450_v52  ;;  %v1456_v5 = vpop.f32.mrb[67].mxu0  ;;  %v1827_v7 = vadd.bf16 1065369472, %v3916_v46  ;;  %v1735_v47 = vadd.bf16 %v1703_v34, %v4806_v19  ;;  %v1605_v52 = vmul.bf16 1056980736, %v4788_v23  ;;  %v3902_v23 = vld [vmem:[#allocation10 + $0x38] sm:$0xff]  }
 0x2aa   : > { %v4827_v11 = vpack.c.bf16 %v1456_v5, %v1452_v30  ;;  %v1828_v12 = vadd.bf16 1065369472, %v3918_v3  ;;  %v1736_v13 = vadd.bf16 %v1704_v56, %v4809_v18  ;;  %v969_v30 = vpop.f32.mrb[45].mxu1 }
 0x2ab   : > { %v1641_v1 = vmul.bf16 1027030327, %v4824_v4  ;;  %v1767_v21 = vmul.bf16 1061961548, %v1735_v47  ;;  %v1859_v39 = vmul.bf16 %v1827_v7, %v1603_v59  ;;  %v971_v59 = vpop.f32.mrb[46].mxu1  ;;  %v1085_v9 = vmax.f32 %v969_v30, 0.0  ;;  %3436 = vmatpush3.bf16.msra.mxu0 %v3902_v23 }
 0x2ac   : > { %v1642_v31 = vmul.bf16 1027030327, %v4827_v11  ;;  %v1860_v27 = vmul.bf16 %v1828_v12, %v1604_v54  ;;  %v1768_v35 = vmul.bf16 1061961548, %v1736_v13  ;;  %v1084_v54 = vmax.f32 %v967_v14, 0.0  ;;  %v973_v5 = vpop.f32.mrb[47].mxu1 }
 0x2ad   : > { %v1673_v37 = vmul.bf16 %v1641_v1, %v4824_v4  ;;  %3923 = vtanh.bf16 %v1767_v21  ;;  %v1086_v22 = vmax.f32 %v971_v59, 0.0  ;;  %v1087_v1 = vmax.f32 %v973_v5, 0.0 }
 0x2ae   : > { %v1674_v48 = vmul.bf16 %v1642_v31, %v4827_v11  ;;  %v1460_v50 = vpop.f32.mrb[68].mxu0  ;;  %2123 = vmatprep.mubr.bf16.mxu1 %v1860_v27  ;;  %3925 = vtanh.bf16 %v1768_v35 }
 0x2af   : > { %v1462_v2 = vpop.f32.mrb[69].mxu0  ;;  %2124 = vmatmul.mubr.bf16.gmra.mrb[84].mxu1 %v1859_v39  ;;  %v1705_v8 = vmul.bf16 %v1673_v37, %v4824_v4  ;;  %v4851_v16 = vpack.c.bf16 %v1086_v22, %v1084_v54  ;;  %v4855_v27 = vpack.c.bf16 %v1087_v1, %v1085_v9  ;;  %v977_v39 = vpop.f32.mrb[48].mxu1  ;;  %v1609_v1 = vmul.bf16 1056980736, %v4824_v4 }
 0x2b0   : > { %v3920_v17 = vpop.eup %3919  ;;  %v1464_v41 = vpop.f32.mrb[70].mxu0  ;;  %v1706_v26 = vmul.bf16 %v1674_v48, %v4827_v11  ;;  %v1607_v48 = vmul.bf16 1056980736, %v4806_v19 }
 0x2b1   : > { %v3922_v34 = vpop.eup %3921  ;;  %v4842_v44 = vpack.c.bf16 %v1464_v41, %v1460_v50  ;;  %v1466_v57 = vpop.f32.mrb[71].mxu0  ;;  %v1829_v46 = vadd.bf16 1065369472, %v3920_v17  ;;  %v1737_v51 = vadd.bf16 %v1705_v8, %v4824_v4  ;;  %v1088_v41 = vmax.f32 %v977_v39, 0.0 }
 0x2b2   : > { %v4845_v56 = vpack.c.bf16 %v1466_v57, %v1462_v2  ;;  %v1830_v28 = vadd.bf16 1065369472, %v3922_v34  ;;  %v1738_v3 = vadd.bf16 %v1706_v26, %v4827_v11  ;;  %v979_v53 = vpop.f32.mrb[49].mxu1 }
 0x2b3   : > { %v1643_v7 = vmul.bf16 1027030327, %v4842_v44  ;;  %v1769_v47 = vmul.bf16 1061961548, %v1737_v51  ;;  %v1861_v13 = vmul.bf16 %v1829_v46, %v1605_v52  ;;  %v1089_v46 = vmax.f32 %v979_v53, 0.0 }
 0x2b4   : > { %v1644_v61 = vmul.bf16 1027030327, %v4845_v56  ;;  %v1862_v12 = vmul.bf16 %v1830_v28, %v1606_v45  ;;  %v1770_v20 = vmul.bf16 1061961548, %v1738_v3  ;;  %v981_v45 = vpop.f32.mrb[50].mxu1 }
 0x2b5   : > { %v1675_v36 = vmul.bf16 %v1643_v7, %v4842_v44  ;;  %3927 = vtanh.bf16 %v1769_v47  ;;  %v1090_v18 = vmax.f32 %v981_v45, 0.0  ;;  %v983_v34 = vpop.f32.mrb[51].mxu1 }
 0x2b6   : > { %v1676_v21 = vmul.bf16 %v1644_v61, %v4845_v56  ;;  %v1470_v32 = vpop.f32.mrb[72].mxu0  ;;  %2133 = vmatprep.mubr.bf16.mxu1 %v1862_v12  ;;  %3929 = vtanh.bf16 %v1770_v20  ;;  %v1091_v5 = vmax.f32 %v983_v34, 0.0  ;;  %v987_v12 = vpop.f32.mrb[52].mxu1 }
 0x2b7   : > { %v1472_v25 = vpop.f32.mrb[73].mxu0  ;;  %2134 = vmatmul.mubr.bf16.gmra.mrb[88].mxu1 %v1861_v13  ;;  %v1707_v31 = vmul.bf16 %v1675_v36, %v4842_v44  ;;  %v4869_v22 = vpack.c.bf16 %v1090_v18, %v1088_v41  ;;  %v1610_v36 = vmul.bf16 1056980736, %v4827_v11 }
 0x2b8   : > { %v3924_v35 = vpop.eup %3923  ;;  %v1474_v37 = vpop.f32.mrb[74].mxu0  ;;  %v1708_v50 = vmul.bf16 %v1676_v21, %v4845_v56  ;;  %v4873_v61 = vpack.c.bf16 %v1091_v5, %v1089_v46 }
 0x2b9   : > { %v3926_v2 = vpop.eup %3925  ;;  %v4860_v8 = vpack.c.bf16 %v1474_v37, %v1470_v32  ;;  %v1476_v14 = vpop.f32.mrb[75].mxu0  ;;  %v1831_v15 = vadd.bf16 1065369472, %v3924_v35  ;;  %v1739_v17 = vadd.bf16 %v1707_v31, %v4842_v44 }
 0x2ba   : > { %v4863_v52 = vpack.c.bf16 %v1476_v14, %v1472_v25  ;;  %v1832_v26 = vadd.bf16 1065369472, %v3926_v2  ;;  %v1740_v30 = vadd.bf16 %v1708_v50, %v4845_v56  ;;  %v989_v32 = vpop.f32.mrb[53].mxu1 }
 0x2bb   : > { %v1645_v19 = vmul.bf16 1027030327, %v4860_v8  ;;  %v1771_v57 = vmul.bf16 1061961548, %v1739_v17  ;;  %v1863_v59 = vmul.bf16 %v1831_v15, %v1607_v48  ;;  %v991_v48 = vpop.f32.mrb[54].mxu1  ;;  %v1093_v17 = vmax.f32 %v989_v32, 0.0 }
 0x2bc   : > { %v1646_v51 = vmul.bf16 1027030327, %v4863_v52  ;;  %v1864_v54 = vmul.bf16 %v1832_v26, %v1608_v43  ;;  %v1772_v28 = vmul.bf16 1061961548, %v1740_v30  ;;  %v1092_v43 = vmax.f32 %v987_v12, 0.0  ;;  %v993_v14 = vpop.f32.mrb[55].mxu1 }
 0x2bd   : > { %v1677_v3 = vmul.bf16 %v1645_v19, %v4860_v8  ;;  %3931 = vtanh.bf16 %v1771_v57  ;;  %v1094_v11 = vmax.f32 %v991_v48, 0.0  ;;  %v1095_v19 = vmax.f32 %v993_v14, 0.0 }
 0x2be   : > { %v1678_v23 = vmul.bf16 %v1646_v51, %v4863_v52  ;;  %v1480_v7 = vpop.f32.mrb[76].mxu0  ;;  %2143 = vmatprep.mubr.bf16.mxu1 %v1864_v54  ;;  %3933 = vtanh.bf16 %v1772_v28  ;;  %v997_v28 = vpop.f32.mrb[56].mxu1 }
 0x2bf   : > { %v1482_v47 = vpop.f32.mrb[77].mxu0  ;;  %2144 = vmatmul.mubr.bf16.gmra.mrb[92].mxu1 %v1863_v59  ;;  %v1709_v9 = vmul.bf16 %v1677_v3, %v4860_v8  ;;  %v4887_v34 = vpack.c.bf16 %v1094_v11, %v1092_v43  ;;  %v4891_v59 = vpack.c.bf16 %v1095_v19, %v1093_v17 }
 0x2c0   : > { %v3928_v13 = vpop.eup %3927  ;;  %v1484_v20 = vpop.f32.mrb[78].mxu0  ;;  %v1710_v21 = vmul.bf16 %v1678_v23, %v4863_v52  ;;  %v1612_v23 = vmul.bf16 1056980736, %v4845_v56 }
 0x2c1   : > { %v3930_v25 = vpop.eup %3929  ;;  %v4878_v31 = vpack.c.bf16 %v1484_v20, %v1480_v7  ;;  %v1486_v39 = vpop.f32.mrb[79].mxu0  ;;  %v1833_v35 = vadd.bf16 1065369472, %v3928_v13  ;;  %v1741_v37 = vadd.bf16 %v1709_v9, %v4860_v8  ;;  %v1611_v7 = vmul.bf16 1056980736, %v4842_v44 }
 0x2c2   : > { %v4881_v50 = vpack.c.bf16 %v1486_v39, %v1482_v47  ;;  %v1834_v53 = vadd.bf16 1065369472, %v3930_v25  ;;  %v1742_v2 = vadd.bf16 %v1710_v21, %v4863_v52  ;;  %v999_v9 = vpop.f32.mrb[57].mxu1  ;;  %v1096_v21 = vmax.f32 %v997_v28, 0.0 }
 0x2c3   : > { %v1647_v4 = vmul.bf16 1027030327, %v4878_v31  ;;  %v1773_v15 = vmul.bf16 1061961548, %v1741_v37  ;;  %v1865_v26 = vmul.bf16 %v1833_v35, %v1609_v1  ;;  %v1001_v32 = vpop.f32.mrb[58].mxu1  ;;  %v1097_v48 = vmax.f32 %v999_v9, 0.0 }
 0x2c4   : > { %v1648_v41 = vmul.bf16 1027030327, %v4881_v50  ;;  %v1866_v45 = vmul.bf16 %v1834_v53, %v1610_v36  ;;  %v1774_v30 = vmul.bf16 1061961548, %v1742_v2  ;;  %v1098_v56 = vmax.f32 %v1001_v32, 0.0  ;;  %v1003_v37 = vpop.f32.mrb[59].mxu1 }
 0x2c5   : > { %v1679_v18 = vmul.bf16 %v1647_v4, %v4878_v31  ;;  %3935 = vtanh.bf16 %v1773_v15  ;;  %v1099_v17 = vmax.f32 %v1003_v37, 0.0  ;;  %v1007_v19 = vpop.f32.mrb[60].mxu1 }
 0x2c6   : > { %v1680_v57 = vmul.bf16 %v1648_v41, %v4881_v50  ;;  %v1490_v46 = vpop.f32.mrb[80].mxu0  ;;  %2153 = vmatprep.mubr.bf16.mxu1 %v1866_v45  ;;  %3937 = vtanh.bf16 %v1774_v30  ;;  %v4905_v15 = vpack.c.bf16 %v1098_v56, %v1096_v21 }
 0x2c7   : > { %v1492_v51 = vpop.f32.mrb[81].mxu0  ;;  %2154 = vmatmul.mubr.bf16.gmra.mrb[96].mxu1 %v1865_v26  ;;  %v1711_v54 = vmul.bf16 %v1679_v18, %v4878_v31  ;;  %v4909_v18 = vpack.c.bf16 %v1099_v17, %v1097_v48 }
 0x2c8   : > { %v3932_v3 = vpop.eup %3931  ;;  %v1494_v5 = vpop.f32.mrb[82].mxu0  ;;  %v1712_v47 = vmul.bf16 %v1680_v57, %v4881_v50 }
 0x2c9   : > { %v3934_v12 = vpop.eup %3933  ;;  %v4896_v13 = vpack.c.bf16 %v1494_v5, %v1490_v46  ;;  %v1496_v20 = vpop.f32.mrb[83].mxu0  ;;  %v1835_v36 = vadd.bf16 1065369472, %v3932_v3  ;;  %v1743_v1 = vadd.bf16 %v1711_v54, %v4878_v31  ;;  %v1613_v54 = vmul.bf16 1056980736, %v4860_v8 }
 0x2ca   : > { %v4899_v25 = vpack.c.bf16 %v1496_v20, %v1492_v51  ;;  %v1836_v39 = vadd.bf16 1065369472, %v3934_v12  ;;  %v1744_v35 = vadd.bf16 %v1712_v47, %v4881_v50  ;;  %v1614_v51 = vmul.bf16 1056980736, %v4863_v52  ;;  %v1009_v3 = vpop.f32.mrb[61].mxu1 }
 0x2cb   : > { %v1649_v44 = vmul.bf16 1027030327, %v4896_v13  ;;  %v1775_v43 = vmul.bf16 1061961548, %v1743_v1  ;;  %v1867_v11 = vmul.bf16 %v1835_v36, %v1611_v7  ;;  %v1100_v12 = vmax.f32 %v1007_v19, 0.0  ;;  %v1011_v20 = vpop.f32.mrb[62].mxu1 }
 0x2cc   : > { %v1650_v53 = vmul.bf16 1027030327, %v4899_v25  ;;  %v1868_v2 = vmul.bf16 %v1836_v39, %v1612_v23  ;;  %v1776_v14 = vmul.bf16 1061961548, %v1744_v35  ;;  %v1102_v52 = vmax.f32 %v1011_v20, 0.0  ;;  %v1013_v32 = vpop.f32.mrb[63].mxu1 }
 0x2cd   : > { %v1681_v4 = vmul.bf16 %v1649_v44, %v4896_v13  ;;  %3939 = vtanh.bf16 %v1775_v43  ;;  %v1101_v35 = vmax.f32 %v1009_v3, 0.0  ;;  %v1616_v19 = vmul.bf16 1056980736, %v4881_v50 }
 0x2ce   : > { %v1682_v41 = vmul.bf16 %v1650_v53, %v4899_v25  ;;  %v1500_v45 = vpop.f32.mrb[84].mxu0  ;;  %2163 = vmatprep.mubr.bf16.mxu1 %v1868_v2  ;;  %3941 = vtanh.bf16 %v1776_v14  ;;  %v4923_v53 = vpack.c.bf16 %v1102_v52, %v1100_v12  ;;  %v1103_v2 = vmax.f32 %v1013_v32, 0.0 }
 0x2cf   : > { %v1502_v26 = vpop.f32.mrb[85].mxu0  ;;  %2164 = vmatmul.mubr.bf16.gmra.mrb[100].mxu1 %v1867_v11  ;;  %v1713_v30 = vmul.bf16 %v1681_v4, %v4896_v13 }
 0x2d0   : > { %v3936_v57 = vpop.eup %3935  ;;  %v1504_v46 = vpop.f32.mrb[86].mxu0  ;;  %v1714_v28 = vmul.bf16 %v1682_v41, %v4899_v25  ;;  %v4927_v41 = vpack.c.bf16 %v1103_v2, %v1101_v35 }
 0x2d1   : > { %v3938_v5 = vpop.eup %3937  ;;  %v4914_v23 = vpack.c.bf16 %v1504_v46, %v1500_v45  ;;  %v1506_v7 = vpop.f32.mrb[87].mxu0  ;;  %v1837_v47 = vadd.bf16 1065369472, %v3936_v57  ;;  %v1745_v9 = vadd.bf16 %v1713_v30, %v4896_v13  ;;  %v1615_v57 = vmul.bf16 1056980736, %v4878_v31 }
 0x2d2   : > { %v4917_v36 = vpack.c.bf16 %v1506_v7, %v1502_v26  ;;  %v1838_v1 = vadd.bf16 1065369472, %v3938_v5  ;;  %v1746_v21 = vadd.bf16 %v1714_v28, %v4899_v25  ;;  %v1017_v45 = vpop.f32.mrb[64].mxu1 }
 0x2d3   : > { %v1651_v8 = vmul.bf16 1027030327, %v4914_v23  ;;  %v1777_v39 = vmul.bf16 1061961548, %v1745_v9  ;;  %v1869_v44 = vmul.bf16 %v1837_v47, %v1613_v54  ;;  %v1104_v47 = vmax.f32 %v1017_v45, 0.0 }
 0x2d4   : > { %v1652_v56 = vmul.bf16 1027030327, %v4917_v36  ;;  %v1870_v37 = vmul.bf16 %v1838_v1, %v1614_v51  ;;  %v1778_v43 = vmul.bf16 1061961548, %v1746_v21  ;;  %v1019_v51 = vpop.f32.mrb[65].mxu1 }
 0x2d5   : > { %v1683_v48 = vmul.bf16 %v1651_v8, %v4914_v23  ;;  %3943 = vtanh.bf16 %v1777_v39  ;;  %v1021_v9 = vpop.f32.mrb[66].mxu1  ;;  %v1105_v32 = vmax.f32 %v1019_v51, 0.0 }
 0x2d6   : > { %v1684_v11 = vmul.bf16 %v1652_v56, %v4917_v36  ;;  %v1510_v14 = vpop.f32.mrb[88].mxu0  ;;  %2173 = vmatprep.mubr.bf16.mxu1 %v1870_v37  ;;  %3945 = vtanh.bf16 %v1778_v43  ;;  %v1106_v50 = vmax.f32 %v1021_v9, 0.0  ;;  %v1023_v21 = vpop.f32.mrb[67].mxu1 }
 0x2d7   : > { %v1512_v4 = vpop.f32.mrb[89].mxu0  ;;  %2174 = vmatmul.mubr.bf16.gmra.mrb[104].mxu1 %v1869_v44  ;;  %v1715_v17 = vmul.bf16 %v1683_v48, %v4914_v23  ;;  %v1107_v43 = vmax.f32 %v1023_v21, 0.0 }
 0x2d8   : > { %v3940_v26 = vpop.eup %3939  ;;  %v1514_v30 = vpop.f32.mrb[90].mxu0  ;;  %v1716_v46 = vmul.bf16 %v1684_v11, %v4917_v36  ;;  %v4941_v44 = vpack.c.bf16 %v1106_v50, %v1104_v47 }
 0x2d9   : > { %v3942_v54 = vpop.eup %3941  ;;  %v4932_v28 = vpack.c.bf16 %v1514_v30, %v1510_v14  ;;  %v1516_v3 = vpop.f32.mrb[91].mxu0  ;;  %v1839_v5 = vadd.bf16 1065369472, %v3940_v26  ;;  %v1747_v7 = vadd.bf16 %v1715_v17, %v4914_v23  ;;  %v1618_v30 = vmul.bf16 1056980736, %v4899_v25 }
 0x2da   : > { %v4935_v12 = vpack.c.bf16 %v1516_v3, %v1512_v4  ;;  %v1840_v20 = vadd.bf16 1065369472, %v3942_v54  ;;  %v1748_v1 = vadd.bf16 %v1716_v46, %v4917_v36  ;;  %v4945_v4 = vpack.c.bf16 %v1107_v43, %v1105_v32  ;;  %v1027_v17 = vpop.f32.mrb[68].mxu1 }
 0x2db   : > { %v1653_v31 = vmul.bf16 1027030327, %v4932_v28  ;;  %v1779_v52 = vmul.bf16 1061961548, %v1747_v7  ;;  %v1871_v35 = vmul.bf16 %v1839_v5, %v1615_v57  ;;  %v1029_v46 = vpop.f32.mrb[69].mxu1  ;;  %v1108_v47 = vmax.f32 %v1027_v17, 0.0 }
 0x2dc   : > { %v1654_v8 = vmul.bf16 1027030327, %v4935_v12  ;;  %v1872_v39 = vmul.bf16 %v1840_v20, %v1616_v19  ;;  %v1780_v56 = vmul.bf16 1061961548, %v1748_v1  ;;  %v1617_v19 = vmul.bf16 1056980736, %v4896_v13 }
 0x2dd   : > { %v1685_v37 = vmul.bf16 %v1653_v31, %v4932_v28  ;;  %3947 = vtanh.bf16 %v1779_v52  ;;  %v1031_v9 = vpop.f32.mrb[70].mxu1  ;;  %v1109_v52 = vmax.f32 %v1029_v46, 0.0 }
 0x2de   : > { %v1686_v48 = vmul.bf16 %v1654_v8, %v4935_v12  ;;  %v1520_v2 = vpop.f32.mrb[92].mxu0  ;;  %2183 = vmatprep.mubr.bf16.mxu1 %v1872_v39  ;;  %3949 = vtanh.bf16 %v1780_v56  ;;  %v1110_v25 = vmax.f32 %v1031_v9, 0.0  ;;  %v1033_v21 = vpop.f32.mrb[71].mxu1 }
 0x2df   : > { %v1522_v11 = vpop.f32.mrb[93].mxu0  ;;  %2184 = vmatmul.mubr.bf16.gmra.mrb[108].mxu1 %v1871_v35  ;;  %v1717_v14 = vmul.bf16 %v1685_v37, %v4932_v28  ;;  %v1111_v43 = vmax.f32 %v1033_v21, 0.0 }
 0x2e0   : > { %v3944_v45 = vpop.eup %3943  ;;  %v1524_v26 = vpop.f32.mrb[94].mxu0  ;;  %v1718_v57 = vmul.bf16 %v1686_v48, %v4935_v12  ;;  %v4959_v37 = vpack.c.bf16 %v1110_v25, %v1108_v47 }
 0x2e1   : > { %v3946_v51 = vpop.eup %3945  ;;  %v4950_v54 = vpack.c.bf16 %v1524_v26, %v1520_v2  ;;  %v1526_v3 = vpop.f32.mrb[95].mxu0  ;;  %v1841_v5 = vadd.bf16 1065369472, %v3944_v45  ;;  %v1749_v7 = vadd.bf16 %v1717_v14, %v4932_v28  ;;  %v4963_v17 = vpack.c.bf16 %v1111_v43, %v1109_v52 }
 0x2e2   : > { %v4953_v20 = vpack.c.bf16 %v1526_v3, %v1522_v11  ;;  %v1842_v1 = vadd.bf16 1065369472, %v3946_v51  ;;  %v1750_v50 = vadd.bf16 %v1718_v57, %v4935_v12  ;;  %v1037_v45 = vpop.f32.mrb[72].mxu1  ;;  %v1619_v57 = vmul.bf16 1056980736, %v4914_v23 }
 0x2e3   : > { %v1655_v13 = vmul.bf16 1027030327, %v4950_v54  ;;  %v1781_v31 = vmul.bf16 1061961548, %v1749_v7  ;;  %v1873_v39 = vmul.bf16 %v1841_v5, %v1617_v19  ;;  %v1620_v19 = vmul.bf16 1056980736, %v4917_v36 }
 0x2e4   : > { %v1656_v32 = vmul.bf16 1027030327, %v4953_v20  ;;  %v1874_v8 = vmul.bf16 %v1842_v1, %v1618_v30  ;;  %v1782_v35 = vmul.bf16 1061961548, %v1750_v50  ;;  %v1039_v51 = vpop.f32.mrb[73].mxu1  ;;  %v1112_v1 = vmax.f32 %v1037_v45, 0.0 }
 0x2e5   : > { %v1687_v56 = vmul.bf16 %v1655_v13, %v4950_v54  ;;  %3951 = vtanh.bf16 %v1781_v31  ;;  %v1041_v50 = vpop.f32.mrb[74].mxu1 }
 0x2e6   : > { %v1688_v48 = vmul.bf16 %v1656_v32, %v4953_v20  ;;  %v1530_v2 = vpop.f32.mrb[96].mxu0  ;;  %2193 = vmatprep.mubr.bf16.mxu1 %v1874_v8  ;;  %3953 = vtanh.bf16 %v1782_v35  ;;  %v1114_v36 = vmax.f32 %v1041_v50, 0.0  ;;  %v1043_v31 = vpop.f32.mrb[75].mxu1  ;;  %v1113_v32 = vmax.f32 %v1039_v51, 0.0 }
 0x2e7   : > { %v1532_v11 = vpop.f32.mrb[97].mxu0  ;;  %2194 = vmatmul.mubr.bf16.gmra.mrb[112].mxu1 %v1873_v39  ;;  %v1719_v14 = vmul.bf16 %v1687_v56, %v4950_v54  ;;  %v1047_v51 = vpop.f32.mrb[76].mxu1 }
 0x2e8   : > { %v3948_v26 = vpop.eup %3947  ;;  %v1534_v30 = vpop.f32.mrb[98].mxu0  ;;  %v1720_v46 = vmul.bf16 %v1688_v48, %v4953_v20  ;;  %v4977_v48 = vpack.c.bf16 %v1114_v36, %v1112_v1  ;;  %v1622_v36 = vmul.bf16 1056980736, %v4935_v12 }
 0x2e9   : > { %v3950_v3 = vpop.eup %3949  ;;  %v4968_v5 = vpack.c.bf16 %v1534_v30, %v1530_v2  ;;  %v1536_v7 = vpop.f32.mrb[99].mxu0  ;;  %v1843_v47 = vadd.bf16 1065369472, %v3948_v26  ;;  %v1751_v9 = vadd.bf16 %v1719_v14, %v4950_v54  ;;  %v1115_v2 = vmax.f32 %v1043_v31, 0.0 }
 0x2ea   : > { %v4971_v25 = vpack.c.bf16 %v1536_v7, %v1532_v11  ;;  %v1844_v21 = vadd.bf16 1065369472, %v3950_v3  ;;  %v1752_v13 = vadd.bf16 %v1720_v46, %v4953_v20 }
 0x2eb   : > { %v1657_v23 = vmul.bf16 1027030327, %v4968_v5  ;;  %v1783_v52 = vmul.bf16 1061961548, %v1751_v9  ;;  %v1875_v35 = vmul.bf16 %v1843_v47, %v1619_v57  ;;  %v4981_v30 = vpack.c.bf16 %v1115_v2, %v1113_v32 }
 0x2ec   : > { %v1658_v8 = vmul.bf16 1027030327, %v4971_v25  ;;  %v1876_v39 = vmul.bf16 %v1844_v21, %v1620_v19  ;;  %v1784_v56 = vmul.bf16 1061961548, %v1752_v13  ;;  %v1621_v9 = vmul.bf16 1056980736, %v4932_v28 }
 0x2ed   : > { %v1689_v43 = vmul.bf16 %v1657_v23, %v4968_v5  ;;  %3955 = vtanh.bf16 %v1783_v52  ;;  %v1049_v21 = vpop.f32.mrb[77].mxu1 }
 0x2ee   : > { %v1690_v11 = vmul.bf16 %v1658_v8, %v4971_v25  ;;  %v1540_v14 = vpop.f32.mrb[100].mxu0  ;;  %2203 = vmatprep.mubr.bf16.mxu1 %v1876_v39  ;;  %3957 = vtanh.bf16 %v1784_v56  ;;  %v1051_v52 = vpop.f32.mrb[78].mxu1  ;;  %v1116_v39 = vmax.f32 %v1047_v51, 0.0 }
 0x2ef   : > { %v1542_v45 = vpop.f32.mrb[101].mxu0  ;;  %2204 = vmatmul.mubr.bf16.gmra.mrb[116].mxu1 %v1875_v35  ;;  %v1721_v26 = vmul.bf16 %v1689_v43, %v4968_v5  ;;  %v1117_v43 = vmax.f32 %v1049_v21, 0.0 }
 0x2f0   : > { %v3952_v19 = vpop.eup %3951  ;;  %v1544_v57 = vpop.f32.mrb[102].mxu0  ;;  %v1722_v46 = vmul.bf16 %v1690_v11, %v4971_v25 }
 0x2f1   : > { %v3954_v3 = vpop.eup %3953  ;;  %v4984_v7 = vpack.c.bf16 %v1544_v57, %v1540_v14  ;;  %v1546_v47 = vpop.f32.mrb[103].mxu0  ;;  %v1845_v1 = vadd.bf16 1065369472, %v3952_v19  ;;  %v1753_v50 = vadd.bf16 %v1721_v26, %v4968_v5  ;;  %v1118_v14 = vmax.f32 %v1051_v52, 0.0 }
 0x2f2   : > { %v4988_v13 = vpack.c.bf16 %v1546_v47, %v1542_v45  ;;  %v1846_v31 = vadd.bf16 1065369472, %v3954_v3  ;;  %v1754_v23 = vadd.bf16 %v1722_v46, %v4971_v25  ;;  %v1053_v45 = vpop.f32.mrb[79].mxu1 }
 0x2f3   : > { %v1659_v32 = vmul.bf16 1027030327, %v4984_v7  ;;  %v1785_v8 = vmul.bf16 1061961548, %v1753_v50  ;;  %v1877_v11 = vmul.bf16 %v1845_v1, %v1621_v9  ;;  %v1119_v19 = vmax.f32 %v1053_v45, 0.0 }
 0x2f4   : > { %v1660_v35 = vmul.bf16 1027030327, %v4988_v13  ;;  %v1878_v56 = vmul.bf16 %v1846_v31, %v1622_v36  ;;  %v1786_v28 = vmul.bf16 1061961548, %v1754_v23  ;;  %v4997_v51 = vpack.c.bf16 %v1118_v14, %v1116_v39 }
 0x2f5   : > { %v1691_v2 = vmul.bf16 %v1659_v32, %v4984_v7  ;;  %3959 = vtanh.bf16 %v1785_v8  ;;  %v5000_v9 = vpack.c.bf16 %v1119_v19, %v1117_v43  ;;  %v1624_v32 = vmul.bf16 1056980736, %v4953_v20 }
 0x2f6   : > { %v1692_v12 = vmul.bf16 %v1660_v35, %v4988_v13  ;;  %v1550_v26 = vpop.f32.mrb[104].mxu0  ;;  %2213 = vmatprep.mubr.bf16.mxu1 %v1878_v56  ;;  %3961 = vtanh.bf16 %v1786_v28  ;;  %v1623_v56 = vmul.bf16 1056980736, %v4950_v54 }
 0x2f7   : > { %v1552_v57 = vpop.f32.mrb[105].mxu0  ;;  %2214 = vmatmul.mubr.bf16.gmra.mrb[120].mxu1 %v1877_v11  ;;  %v1723_v46 = vmul.bf16 %v1691_v2, %v4984_v7 }
 0x2f8   : > { %v3956_v3 = vpop.eup %3955  ;;  %v1554_v47 = vpop.f32.mrb[106].mxu0  ;;  %v1724_v50 = vmul.bf16 %v1692_v12, %v4988_v13 }
 0x2f9   : > { %v3958_v1 = vpop.eup %3957  ;;  %v5002_v21 = vpack.c.bf16 %v1554_v47, %v1550_v26  ;;  %v1556_v36 = vpop.f32.mrb[107].mxu0  ;;  %v1847_v31 = vadd.bf16 1065369472, %v3956_v3  ;;  %v1755_v23 = vadd.bf16 %v1723_v46, %v4984_v7 }
 0x2fa   : > { %v5005_v52 = vpack.c.bf16 %v1556_v36, %v1552_v57  ;;  %v1848_v8 = vadd.bf16 1065369472, %v3958_v1  ;;  %v1756_v39 = vadd.bf16 %v1724_v50, %v4988_v13 }
 0x2fb   : > { %v1661_v35 = vmul.bf16 1027030327, %v5002_v21  ;;  %v1787_v28 = vmul.bf16 1061961548, %v1755_v23  ;;  %v1879_v45 = vmul.bf16 %v1847_v31, %v1623_v56  ;;  %v1626_v23 = vmul.bf16 1056980736, %v4971_v25 }
 0x2fc   : > { %v1662_v43 = vmul.bf16 1027030327, %v5005_v52  ;;  %v1880_v2 = vmul.bf16 %v1848_v8, %v1624_v32  ;;  %v1788_v11 = vmul.bf16 1061961548, %v1756_v39 }
 0x2fd   : > { %v1693_v14 = vmul.bf16 %v1661_v35, %v5002_v21  ;;  %3963 = vtanh.bf16 %v1787_v28  ;;  %v1625_v35 = vmul.bf16 1056980736, %v4968_v5 }
 0x2fe   : > { %v1694_v12 = vmul.bf16 %v1662_v43, %v5005_v52  ;;  %v1560_v26 = vpop.f32.mrb[108].mxu0  ;;  %2223 = vmatprep.mubr.bf16.mxu1 %v1880_v2  ;;  %3965 = vtanh.bf16 %v1788_v11 }
 0x2ff   : > { %v1562_v20 = vpop.f32.mrb[109].mxu0  ;;  %2224 = vmatmul.mubr.bf16.gmra.mrb[124].mxu1 %v1879_v45  ;;  %v1725_v19 = vmul.bf16 %v1693_v14, %v5002_v21 }
 0x300   : > { %v3960_v57 = vpop.eup %3959  ;;  %v1564_v54 = vpop.f32.mrb[110].mxu0  ;;  %v1726_v46 = vmul.bf16 %v1694_v12, %v5005_v52 }
 0x301   : > { %v3962_v3 = vpop.eup %3961  ;;  %v1599_v47 = vpack.c.bf16 %v1564_v54, %v1560_v26  ;;  %v1566_v50 = vpop.f32.mrb[111].mxu0  ;;  %v1849_v1 = vadd.bf16 1065369472, %v3960_v57  ;;  %v1757_v36 = vadd.bf16 %v1725_v19, %v5002_v21  ;;  %v1628_v54 = vmul.bf16 1056980736, %v4988_v13 }
 0x302   : > { %v1600_v31 = vpack.c.bf16 %v1566_v50, %v1562_v20  ;;  %v1850_v32 = vadd.bf16 1065369472, %v3962_v3  ;;  %v1758_v8 = vadd.bf16 %v1726_v46, %v5005_v52  ;;  %v1627_v3 = vmul.bf16 1056980736, %v4984_v7 }
 0x303   : > { %v1663_v39 = vmul.bf16 1027030327, %v1599_v47  ;;  %v1789_v56 = vmul.bf16 1061961548, %v1757_v36  ;;  %v1881_v14 = vmul.bf16 %v1849_v1, %v1625_v35  ;;  %v1630_v35 = vmul.bf16 1056980736, %v5005_v52 }
 0x304   : > { %v1664_v28 = vmul.bf16 1027030327, %v1600_v31  ;;  %v1882_v43 = vmul.bf16 %v1850_v32, %v1626_v23  ;;  %v1790_v2 = vmul.bf16 1061961548, %v1758_v8  ;;  %v1629_v13 = vmul.bf16 1056980736, %v5002_v21 }
 0x305   : > { %v1695_v11 = vmul.bf16 %v1663_v39, %v1599_v47  ;;  %3967 = vtanh.bf16 %v1789_v56  ;;  %v3903_v52 = vld [vmem:[#allocation11] sm:$0xff]  }
 0x306   : > { %v1696_v45 = vmul.bf16 %v1664_v28, %v1600_v31  ;;  %2233 = vmatprep.mubr.bf16.mxu1 %v1882_v43  ;;  %3969 = vtanh.bf16 %v1790_v2  ;;  %3557 = vmatprep.subr.bf16.mxu1 %v3903_v52 }
 0x307   : > { %2234 = vmatmul.mubr.bf16.gmra.mrb[128].mxu1 %v1881_v14  ;;  %v1727_v12 = vmul.bf16 %v1695_v11, %v1599_v47  ;;  %v1632_v14 = vmul.bf16 1056980736, %v1600_v31 }
 0x308   : > { %v3964_v26 = vpop.eup %3963  ;;  %v1728_v25 = vmul.bf16 %v1696_v45, %v1600_v31  ;;  %3558 = vmatpush3.bf16.msra.mxu1 %v3903_v52 }
 0x309   : > { %v3966_v20 = vpop.eup %3965  ;;  %v1851_v19 = vadd.bf16 1065369472, %v3964_v26  ;;  %v1759_v57 = vadd.bf16 %v1727_v12, %v1599_v47  ;;  %v1631_v12 = vmul.bf16 1056980736, %v1599_v47 }
 0x30a   : > { %v1852_v5 = vadd.bf16 1065369472, %v3966_v20  ;;  %v1760_v46 = vadd.bf16 %v1728_v25, %v1600_v31 }
 0x30b   : > { %v1791_v50 = vmul.bf16 1061961548, %v1759_v57  ;;  %v1883_v23 = vmul.bf16 %v1851_v19, %v1627_v3  ;;  %v3904_v57 = vld [vmem:[#allocation11 + $0x8] sm:$0xff]  }
 0x30c   : > { %v1884_v36 = vmul.bf16 %v1852_v5, %v1628_v54  ;;  %v1792_v1 = vmul.bf16 1061961548, %v1760_v46  ;;  %3559 = vmatprep.subr.bf16.mxu1 %v3904_v57 }
 0x30d   : > { %3971 = vtanh.bf16 %v1791_v50  ;;  %3560 = vmatpush3.bf16.msra.mxu1 %v3904_v57 }
 0x30e   : > { %2243 = vmatprep.mubr.bf16.mxu1 %v1884_v36  ;;  %3973 = vtanh.bf16 %v1792_v1 }
 0x30f   : > { %2244 = vmatmul.mubr.bf16.gmra.mrb[132].mxu1 %v1883_v23 }
 0x310   : > { %v3968_v32 = vpop.eup %3967 }
 0x311   : > { %v3970_v8 = vpop.eup %3969  ;;  %v1853_v39 = vadd.bf16 1065369472, %v3968_v32 }
 0x312   : > { %v1854_v56 = vadd.bf16 1065369472, %v3970_v8 }
 0x313   : > { %v1885_v43 = vmul.bf16 %v1853_v39, %v1629_v13 }
 0x314   : > { %v1886_v28 = vmul.bf16 %v1854_v56, %v1630_v35 }
 0x316   : > { %2253 = vmatprep.mubr.bf16.mxu1 %v1886_v28 }
 0x317   : > { %2254 = vmatmul.mubr.bf16.gmra.mrb[136].mxu1 %v1885_v43 }
 0x318   : > { %v3972_v7 = vpop.eup %3971 }
 0x319   : > { %v3974_v2 = vpop.eup %3973  ;;  %v1855_v11 = vadd.bf16 1065369472, %v3972_v7 }
 0x31a   : > { %v1856_v45 = vadd.bf16 1065369472, %v3974_v2 }
 0x31b   : > { %v1887_v25 = vmul.bf16 %v1855_v11, %v1631_v12 }
 0x31c   : > { %v1888_v26 = vmul.bf16 %v1856_v45, %v1632_v14 }
 0x31e   : > { %2263 = vmatprep.mubr.bf16.mxu1 %v1888_v26 }
 0x31f   : > { %2264 = vmatmul.mubr.bf16.gmra.mrb[140].mxu1 %v1887_v25 }
 0x37a   : > { %v2115_v20 = vpop.f32.mrb[80].mxu1 }
 0x37b   : > { %v2117_v19 = vpop.f32.mrb[81].mxu1 }
 0x37c   : > { %v2119_v54 = vpop.f32.mrb[82].mxu1 }
 0x37d   : > { %v2274_v21 = vpack.c.bf16 %v2119_v54, %v2115_v20  ;;  %v2121_v5 = vpop.f32.mrb[83].mxu1 }
 0x37e   : > { %v2275_v46 = vpack.c.bf16 %v2121_v5, %v2117_v19 }
 0x37f   : > { %v2306_v3 = vadd.bf16 %v2274_v21, %v4750_v58 }
 0x380   : > { %v2307_v31 = vadd.bf16 %v2275_v46, %v4752_v62 }
 0x382   : > { %v2125_v47 = vpop.f32.mrb[84].mxu1  ;;  %2498 = vmatprep.mubr.bf16.mxu0 %v2307_v31 }
 0x383   : > { %v2127_v50 = vpop.f32.mrb[85].mxu1  ;;  %2499 = vmatmul.mubr.bf16.vlgmr.msra.gmra.mrb[112].mxu0 %v2306_v3 }
 0x384   : > { %v2129_v36 = vpop.f32.mrb[86].mxu1 }
 0x385   : > { %v2276_v1 = vpack.c.bf16 %v2129_v36, %v2125_v47  ;;  %v2131_v23 = vpop.f32.mrb[87].mxu1 }
 0x386   : > { %v2277_v32 = vpack.c.bf16 %v2131_v23, %v2127_v50 }
 0x387   : > { %v2308_v8 = vadd.bf16 %v2276_v1, %v4754_v29 }
 0x388   : > { %v2309_v39 = vadd.bf16 %v2277_v32, %v4756_v33 }
 0x38a   : > { %v2135_v35 = vpop.f32.mrb[88].mxu1  ;;  %2506 = vmatprep.mubr.bf16.mxu0 %v2309_v39 }
 0x38b   : > { %v2137_v56 = vpop.f32.mrb[89].mxu1  ;;  %2507 = vmatmul.mubr.bf16.gmra.mrb[116].mxu0 %v2308_v8 }
 0x38c   : > { %v2139_v58 = vpop.f32.mrb[90].mxu1 }
 0x38d   : > { %v2278_v13 = vpack.c.bf16 %v2139_v58, %v2135_v35  ;;  %v2141_v62 = vpop.f32.mrb[91].mxu1 }
 0x38e   : > { %v2279_v28 = vpack.c.bf16 %v2141_v62, %v2137_v56 }
 0x38f   : > { %v2310_v43 = vadd.bf16 %v2278_v13, %v4764_v55 }
 0x390   : > { %v2311_v7 = vadd.bf16 %v2279_v28, %v4767_v63 }
 0x392   : > { %v2145_v2 = vpop.f32.mrb[92].mxu1  ;;  %2514 = vmatprep.mubr.bf16.mxu0 %v2311_v7 }
 0x393   : > { %v2147_v11 = vpop.f32.mrb[93].mxu1  ;;  %2515 = vmatmul.mubr.bf16.gmra.mrb[120].mxu0 %v2310_v43 }
 0x394   : > { %v2149_v14 = vpop.f32.mrb[94].mxu1 }
 0x395   : > { %v2280_v29 = vpack.c.bf16 %v2149_v14, %v2145_v2  ;;  %v2151_v45 = vpop.f32.mrb[95].mxu1 }
 0x396   : > { %v2281_v33 = vpack.c.bf16 %v2151_v45, %v2147_v11 }
 0x397   : > { %v2312_v12 = vadd.bf16 %v2280_v29, %v4780_v40 }
 0x398   : > { %v2313_v26 = vadd.bf16 %v2281_v33, %v4785_v6 }
 0x39a   : > { %v2155_v25 = vpop.f32.mrb[96].mxu1  ;;  %2522 = vmatprep.mubr.bf16.mxu0 %v2313_v26 }
 0x39b   : > { %v2157_v20 = vpop.f32.mrb[97].mxu1  ;;  %2523 = vmatmul.mubr.bf16.gmra.mrb[124].mxu0 %v2312_v12 }
 0x39c   : > { %v2159_v19 = vpop.f32.mrb[98].mxu1 }
 0x39d   : > { %v2282_v55 = vpack.c.bf16 %v2159_v19, %v2155_v25  ;;  %v2161_v52 = vpop.f32.mrb[99].mxu1 }
 0x39e   : > { %v2283_v63 = vpack.c.bf16 %v2161_v52, %v2157_v20 }
 0x39f   : > { %v2314_v57 = vadd.bf16 %v2282_v55, %v4796_v49 }
 0x3a0   : > { %v2315_v54 = vadd.bf16 %v2283_v63, %v4801_v60 }
 0x3a2   : > { %v2165_v21 = vpop.f32.mrb[100].mxu1  ;;  %2530 = vmatprep.mubr.bf16.mxu0 %v2315_v54 }
 0x3a3   : > { %v2167_v5 = vpop.f32.mrb[101].mxu1  ;;  %2531 = vmatmul.mubr.bf16.gmra.mrb[128].mxu0 %v2314_v57 }
 0x3a4   : > { %v2169_v46 = vpop.f32.mrb[102].mxu1 }
 0x3a5   : > { %v2284_v40 = vpack.c.bf16 %v2169_v46, %v2165_v21  ;;  %v2171_v3 = vpop.f32.mrb[103].mxu1 }
 0x3a6   : > { %v2285_v6 = vpack.c.bf16 %v2171_v3, %v2167_v5 }
 0x3a7   : > { %v2316_v31 = vadd.bf16 %v2284_v40, %v4815_v24 }
 0x3a8   : > { %v2317_v47 = vadd.bf16 %v2285_v6, %v4819_v38  ;;  %v3905_v6 = vld [vmem:[#allocation11 + $0x10] sm:$0xff]  }
 0x3a9   : > { %3561 = vmatprep.subr.bf16.mxu1 %v3905_v6 }
 0x3aa   : > { %v2175_v50 = vpop.f32.mrb[104].mxu1  ;;  %2538 = vmatprep.mubr.bf16.mxu0 %v2317_v47  ;;  %3562 = vmatpush3.bf16.msra.mxu1 %v3905_v6 }
 0x3ab   : > { %v2177_v36 = vpop.f32.mrb[105].mxu1  ;;  %2539 = vmatmul.mubr.bf16.gmra.mrb[132].mxu0 %v2316_v31 }
 0x3ac   : > { %v2179_v1 = vpop.f32.mrb[106].mxu1 }
 0x3ad   : > { %v2286_v49 = vpack.c.bf16 %v2179_v1, %v2175_v50  ;;  %v2181_v23 = vpop.f32.mrb[107].mxu1 }
 0x3ae   : > { %v2287_v60 = vpack.c.bf16 %v2181_v23, %v2177_v36 }
 0x3af   : > { %v2318_v32 = vadd.bf16 %v2286_v49, %v4833_v42 }
 0x3b0   : > { %v2319_v8 = vadd.bf16 %v2287_v60, %v4837_v10 }
 0x3b2   : > { %v2185_v39 = vpop.f32.mrb[108].mxu1  ;;  %2546 = vmatprep.mubr.bf16.mxu0 %v2319_v8 }
 0x3b3   : > { %v2187_v35 = vpop.f32.mrb[109].mxu1  ;;  %2547 = vmatmul.mubr.bf16.gmra.mrb[136].mxu0 %v2318_v32 }
 0x3b4   : > { %v2189_v56 = vpop.f32.mrb[110].mxu1 }
 0x3b5   : > { %v2288_v24 = vpack.c.bf16 %v2189_v56, %v2185_v39  ;;  %v2191_v58 = vpop.f32.mrb[111].mxu1 }
 0x3b6   : > { %v2289_v38 = vpack.c.bf16 %v2191_v58, %v2187_v35 }
 0x3b7   : > { %v2320_v13 = vadd.bf16 %v2288_v24, %v4851_v16  ;;  %v3906_v24 = vld [vmem:[#allocation11 + $0x18] sm:$0xff]  }
 0x3b8   : > { %v2321_v62 = vadd.bf16 %v2289_v38, %v4855_v27  ;;  %3563 = vmatprep.subr.bf16.mxu1 %v3906_v24 }
 0x3b9   : > { %3564 = vmatpush3.bf16.msra.mxu1 %v3906_v24 }
 0x3ba   : > { %v2195_v28 = vpop.f32.mrb[112].mxu1  ;;  %2554 = vmatprep.mubr.bf16.mxu0 %v2321_v62  ;;  %v3907_v62 = vld [vmem:[#allocation11 + $0x20] sm:$0xff]  }
 0x3bb   : > { %v2197_v43 = vpop.f32.mrb[113].mxu1  ;;  %2555 = vmatmul.mubr.bf16.gmra.mrb[140].mxu0 %v2320_v13  ;;  %3565 = vmatprep.subr.bf16.mxu1 %v3907_v62 }
 0x3bc   : > { %v2199_v7 = vpop.f32.mrb[114].mxu1 }
 0x3bd   : > { %v2290_v42 = vpack.c.bf16 %v2199_v7, %v2195_v28  ;;  %v2201_v2 = vpop.f32.mrb[115].mxu1  ;;  %3566 = vmatpush3.bf16.msra.mxu1 %v3907_v62 }
 0x3be   : > { %v2291_v10 = vpack.c.bf16 %v2201_v2, %v2197_v43 }
 0x3bf   : > { %v2322_v11 = vadd.bf16 %v2290_v42, %v4869_v22 }
 0x3c0   : > { %v2323_v14 = vadd.bf16 %v2291_v10, %v4873_v61 }
 0x3c2   : > { %v2205_v29 = vpop.f32.mrb[116].mxu1  ;;  %2562 = vmatprep.mubr.bf16.mxu0 %v2323_v14  ;;  %v3909_v14 = vld [vmem:[#allocation11 + $0x30] sm:$0xff]  }
 0x3c3   : > { %v2207_v45 = vpop.f32.mrb[117].mxu1  ;;  %2563 = vmatmul.mubr.bf16.gmra.mrb[144].mxu0 %v2322_v11 }
 0x3c4   : > { %v2209_v33 = vpop.f32.mrb[118].mxu1 }
 0x3c5   : > { %v2292_v16 = vpack.c.bf16 %v2209_v33, %v2205_v29  ;;  %v2211_v12 = vpop.f32.mrb[119].mxu1 }
 0x3c6   : > { %v2293_v27 = vpack.c.bf16 %v2211_v12, %v2207_v45 }
 0x3c7   : > { %v2324_v26 = vadd.bf16 %v2292_v16, %v4887_v34 }
 0x3c8   : > { %v2325_v25 = vadd.bf16 %v2293_v27, %v4891_v59 }
 0x3ca   : > { %v2215_v20 = vpop.f32.mrb[120].mxu1  ;;  %2570 = vmatprep.mubr.bf16.mxu0 %v2325_v25 }
 0x3cb   : > { %v2217_v19 = vpop.f32.mrb[121].mxu1  ;;  %2571 = vmatmul.mubr.bf16.gmra.mrb[148].mxu0 %v2324_v26 }
 0x3cc   : > { %v2219_v55 = vpop.f32.mrb[122].mxu1 }
 0x3cd   : > { %v2294_v22 = vpack.c.bf16 %v2219_v55, %v2215_v20  ;;  %v2221_v52 = vpop.f32.mrb[123].mxu1 }
 0x3ce   : > { %v2295_v61 = vpack.c.bf16 %v2221_v52, %v2217_v19 }
 0x3cf   : > { %v2326_v63 = vadd.bf16 %v2294_v22, %v4905_v15 }
 0x3d0   : > { %v2327_v57 = vadd.bf16 %v2295_v61, %v4909_v18 }
 0x3d2   : > { %v2225_v54 = vpop.f32.mrb[124].mxu1  ;;  %2578 = vmatprep.mubr.bf16.mxu0 %v2327_v57 }
 0x3d3   : > { %v2227_v21 = vpop.f32.mrb[125].mxu1  ;;  %2579 = vmatmul.mubr.bf16.gmra.mrb[152].mxu0 %v2326_v63 }
 0x3d4   : > { %v2229_v5 = vpop.f32.mrb[126].mxu1 }
 0x3d5   : > { %v2296_v34 = vpack.c.bf16 %v2229_v5, %v2225_v54  ;;  %v2231_v46 = vpop.f32.mrb[127].mxu1 }
 0x3d6   : > { %v2297_v59 = vpack.c.bf16 %v2231_v46, %v2227_v21 }
 0x3d7   : > { %v2328_v40 = vadd.bf16 %v2296_v34, %v4923_v53 }
 0x3d8   : > { %v2329_v3 = vadd.bf16 %v2297_v59, %v4927_v41 }
 0x3da   : > { %v2235_v31 = vpop.f32.mrb[128].mxu1  ;;  %2586 = vmatprep.mubr.bf16.mxu0 %v2329_v3 }
 0x3db   : > { %v2237_v47 = vpop.f32.mrb[129].mxu1  ;;  %2587 = vmatmul.mubr.bf16.gmra.mrb[156].mxu0 %v2328_v40 }
 0x3dc   : > { %v2239_v15 = vpop.f32.mrb[130].mxu1 }
 0x3dd   : > { %v2298_v18 = vpack.c.bf16 %v2239_v15, %v2235_v31  ;;  %v2241_v50 = vpop.f32.mrb[131].mxu1 }
 0x3de   : > { %v2299_v36 = vpack.c.bf16 %v2241_v50, %v2237_v47 }
 0x3df   : > { %v2330_v1 = vadd.bf16 %v2298_v18, %v4941_v44 }
 0x3e0   : > { %v2331_v49 = vadd.bf16 %v2299_v36, %v4945_v4 }
 0x3e2   : > { %v2245_v23 = vpop.f32.mrb[132].mxu1  ;;  %2594 = vmatprep.mubr.bf16.mxu0 %v2331_v49 }
 0x3e3   : > { %v2247_v53 = vpop.f32.mrb[133].mxu1  ;;  %2595 = vmatmul.mubr.bf16.gmra.mrb[160].mxu0 %v2330_v1 }
 0x3e4   : > { %v2249_v41 = vpop.f32.mrb[134].mxu1 }
 0x3e5   : > { %v2300_v60 = vpack.c.bf16 %v2249_v41, %v2245_v23  ;;  %v2251_v32 = vpop.f32.mrb[135].mxu1 }
 0x3e6   : > { %v2301_v8 = vpack.c.bf16 %v2251_v32, %v2247_v53 }
 0x3e7   : > { %v2332_v39 = vadd.bf16 %v2300_v60, %v4959_v37 }
 0x3e8   : > { %v2333_v35 = vadd.bf16 %v2301_v8, %v4963_v17  ;;  %v3908_v17 = vld [vmem:[#allocation11 + $0x28] sm:$0xff]  }
 0x3e9   : > { %3567 = vmatprep.subr.bf16.mxu1 %v3908_v17 }
 0x3ea   : > { %v2255_v56 = vpop.f32.mrb[136].mxu1  ;;  %2602 = vmatprep.mubr.bf16.mxu0 %v2333_v35  ;;  %3568 = vmatpush3.bf16.msra.mxu1 %v3908_v17 }
 0x3eb   : > { %v2257_v58 = vpop.f32.mrb[137].mxu1  ;;  %2603 = vmatmul.mubr.bf16.gmra.mrb[164].mxu0 %v2332_v39  ;;  %3569 = vmatprep.subr.bf16.mxu1 %v3909_v14 }
 0x3ec   : > { %v2259_v44 = vpop.f32.mrb[138].mxu1 }
 0x3ed   : > { %v2302_v4 = vpack.c.bf16 %v2259_v44, %v2255_v56  ;;  %v2261_v38 = vpop.f32.mrb[139].mxu1 }
 0x3ee   : > { %v2303_v13 = vpack.c.bf16 %v2261_v38, %v2257_v58  ;;  %3570 = vmatpush3.bf16.msra.mxu1 %v3909_v14 }
 0x3ef   : > { %v2334_v28 = vadd.bf16 %v2302_v4, %v4977_v48 }
 0x3f0   : > { %v2335_v43 = vadd.bf16 %v2303_v13, %v4981_v30  ;;  %v3910_v30 = vld [vmem:[#allocation11 + $0x38] sm:$0xff]  }
 0x3f1   : > { %3571 = vmatprep.subr.bf16.mxu1 %v3910_v30 }
 0x3f2   : > { %v2265_v37 = vpop.f32.mrb[140].mxu1  ;;  %2610 = vmatprep.mubr.bf16.mxu0 %v2335_v43  ;;  %3572 = vmatpush3.bf16.msra.mxu1 %v3910_v30 }
 0x3f3   : > { %v2267_v7 = vpop.f32.mrb[141].mxu1  ;;  %2611 = vmatmul.mubr.bf16.gmra.mrb[168].mxu0 %v2334_v28 }
 0x3f4   : > { %v2269_v42 = vpop.f32.mrb[142].mxu1 }
 0x3f5   : > { %v2304_v2 = vpack.c.bf16 %v2269_v42, %v2265_v37  ;;  %v2271_v10 = vpop.f32.mrb[143].mxu1 }
 0x3f6   : > { %v2305_v11 = vpack.c.bf16 %v2271_v10, %v2267_v7 }
 0x3f7   : > { %v2336_v29 = vadd.bf16 %v2304_v2, %v4997_v51 }
 0x3f8   : > { %v2337_v48 = vadd.bf16 %v2305_v11, %v5000_v9 }
 0x3fa   : > { %2618 = vmatprep.mubr.bf16.mxu0 %v2337_v48 }
 0x3fb   : > { %2619 = vmatmul.mubr.bf16.gmra.mrb[172].mxu0 %v2336_v29 }
 0x456   : > { %v3437_v45 = vpop.f32.mrb[112].mxu0 }
 0x457   : > { %v3438_v33 = vpop.f32.mrb[113].mxu0 }
 0x458   : > { %v3439_v16 = vadd.f32 %v3438_v33, %v3437_v45  ;;  %v3440_v12 = vpop.f32.mrb[114].mxu0 }
 0x459   : > { %v3441_v27 = vpop.f32.mrb[115].mxu0 }
 0x45a   : > { %v3442_v26 = vadd.f32 %v3441_v27, %v3440_v12 }
 0x45c   : > { %v2627_v25 = vpack.c.bf16 %v3442_v26, %v3439_v16 }
 0x45e   : > { %v2659_v20 = vmul.bf16 1027030327, %v2627_v25  ;;  %v3443_v19 = vpop.f32.mrb[116].mxu0  ;;  %v2643_v56 = vmul.bf16 1056980736, %v2627_v25 }
 0x45f   : > { %v3444_v55 = vpop.f32.mrb[117].mxu0 }
 0x460   : > { %v3445_v51 = vadd.f32 %v3444_v55, %v3443_v19  ;;  %v3446_v22 = vpop.f32.mrb[118].mxu0  ;;  %v2675_v9 = vmul.bf16 %v2659_v20, %v2627_v25 }
 0x461   : > { %v3447_v52 = vpop.f32.mrb[119].mxu0 }
 0x462   : > { %v3448_v61 = vadd.f32 %v3447_v52, %v3446_v22  ;;  %v2691_v63 = vmul.bf16 %v2675_v9, %v2627_v25 }
 0x464   : > { %v2628_v57 = vpack.c.bf16 %v3448_v61, %v3445_v51  ;;  %v2707_v54 = vadd.bf16 %v2691_v63, %v2627_v25 }
 0x466   : > { %v2660_v21 = vmul.bf16 1027030327, %v2628_v57  ;;  %v3449_v5 = vpop.f32.mrb[120].mxu0  ;;  %v2723_v34 = vmul.bf16 1061961548, %v2707_v54 }
 0x467   : > { %v3450_v46 = vpop.f32.mrb[121].mxu0  ;;  %v2644_v11 = vmul.bf16 1056980736, %v2628_v57 }
 0x468   : > { %v2676_v59 = vmul.bf16 %v2660_v21, %v2628_v57  ;;  %v3451_v40 = vadd.f32 %v3450_v46, %v3449_v5  ;;  %v3452_v3 = vpop.f32.mrb[122].mxu0  ;;  %3975 = vtanh.bf16 %v2723_v34 }
 0x469   : > { %v3453_v6 = vpop.f32.mrb[123].mxu0 }
 0x46a   : > { %v2692_v31 = vmul.bf16 %v2676_v59, %v2628_v57  ;;  %v3454_v47 = vadd.f32 %v3453_v6, %v3452_v3 }
 0x46c   : > { %v2708_v15 = vadd.bf16 %v2692_v31, %v2628_v57  ;;  %v2629_v18 = vpack.c.bf16 %v3454_v47, %v3451_v40 }
 0x46e   : > { %v2724_v50 = vmul.bf16 1061961548, %v2708_v15  ;;  %v2661_v36 = vmul.bf16 1027030327, %v2629_v18  ;;  %v3455_v1 = vpop.f32.mrb[124].mxu0 }
 0x46f   : > { %v3456_v49 = vpop.f32.mrb[125].mxu0  ;;  %v2645_v22 = vmul.bf16 1056980736, %v2629_v18 }
 0x470   : > { %3977 = vtanh.bf16 %v2724_v50  ;;  %v3457_v23 = vadd.f32 %v3456_v49, %v3455_v1  ;;  %v3458_v53 = vpop.f32.mrb[126].mxu0  ;;  %v2677_v41 = vmul.bf16 %v2661_v36, %v2629_v18 }
 0x471   : > { %v3459_v60 = vpop.f32.mrb[127].mxu0 }
 0x472   : > { %v3460_v32 = vadd.f32 %v3459_v60, %v3458_v53  ;;  %v2693_v8 = vmul.bf16 %v2677_v41, %v2629_v18 }
 0x473   : > { %v3976_v39 = vpop.eup %3975 }
 0x474   : > { %v2630_v35 = vpack.c.bf16 %v3460_v32, %v3457_v23  ;;  %v2755_v24 = vadd.bf16 1065369472, %v3976_v39  ;;  %v2709_v58 = vadd.bf16 %v2693_v8, %v2629_v18 }
 0x476   : > { %v2662_v44 = vmul.bf16 1027030327, %v2630_v35  ;;  %v3461_v4 = vpop.f32.mrb[128].mxu0  ;;  %v5056_v38 = vmul.bf16 %v2755_v24, %v2643_v56  ;;  %v2725_v13 = vmul.bf16 1061961548, %v2709_v58 }
 0x477   : > { %v3462_v62 = vpop.f32.mrb[129].mxu0  ;;  %v2646_v47 = vmul.bf16 1056980736, %v2630_v35 }
 0x478   : > { %v3463_v28 = vadd.f32 %v3462_v62, %v3461_v4  ;;  %v3464_v43 = vpop.f32.mrb[130].mxu0  ;;  %3573 = vmatprep.mubr.bf16.mxu1 %v5056_v38  ;;  %3979 = vtanh.bf16 %v2725_v13  ;;  %v2678_v37 = vmul.bf16 %v2662_v44, %v2630_v35 }
 0x479   : > { %v3465_v17 = vpop.f32.mrb[131].mxu0 }
 0x47a   : > { %v3466_v7 = vadd.f32 %v3465_v17, %v3464_v43  ;;  %v2694_v42 = vmul.bf16 %v2678_v37, %v2630_v35 }
 0x47b   : > { %v3978_v2 = vpop.eup %3977 }
 0x47c   : > { %v2631_v10 = vpack.c.bf16 %v3466_v7, %v3463_v28  ;;  %v2756_v14 = vadd.bf16 1065369472, %v3978_v2  ;;  %v2710_v29 = vadd.bf16 %v2694_v42, %v2630_v35 }
 0x47e   : > { %v2663_v48 = vmul.bf16 1027030327, %v2631_v10  ;;  %v3467_v30 = vpop.f32.mrb[132].mxu0  ;;  %v5059_v45 = vmul.bf16 %v2756_v14, %v2644_v11  ;;  %v2726_v33 = vmul.bf16 1061961548, %v2710_v29 }
 0x47f   : > { %v3468_v16 = vpop.f32.mrb[133].mxu0  ;;  %v2647_v35 = vmul.bf16 1056980736, %v2631_v10 }
 0x480   : > { %v3469_v12 = vadd.f32 %v3468_v16, %v3467_v30  ;;  %v3470_v27 = vpop.f32.mrb[134].mxu0  ;;  %3574 = vmatmul.mubr.bf16.vlgmr.msra.gmra.mrb[144].mxu1 %v5059_v45  ;;  %3981 = vtanh.bf16 %v2726_v33  ;;  %v2679_v26 = vmul.bf16 %v2663_v48, %v2631_v10 }
 0x481   : > { %v3471_v25 = vpop.f32.mrb[135].mxu0 }
 0x482   : > { %v3472_v20 = vadd.f32 %v3471_v25, %v3470_v27  ;;  %v2695_v19 = vmul.bf16 %v2679_v26, %v2631_v10 }
 0x483   : > { %v3980_v55 = vpop.eup %3979 }
 0x484   : > { %v2632_v51 = vpack.c.bf16 %v3472_v20, %v3469_v12  ;;  %v2757_v9 = vadd.bf16 1065369472, %v3980_v55  ;;  %v2711_v52 = vadd.bf16 %v2695_v19, %v2631_v10 }
 0x486   : > { %v2664_v61 = vmul.bf16 1027030327, %v2632_v51  ;;  %v3473_v63 = vpop.f32.mrb[136].mxu0  ;;  %v5062_v57 = vmul.bf16 %v2757_v9, %v2645_v22  ;;  %v2727_v54 = vmul.bf16 1061961548, %v2711_v52 }
 0x487   : > { %v3474_v21 = vpop.f32.mrb[137].mxu0  ;;  %v2648_v10 = vmul.bf16 1056980736, %v2632_v51 }
 0x488   : > { %v3475_v5 = vadd.f32 %v3474_v21, %v3473_v63  ;;  %v3476_v34 = vpop.f32.mrb[138].mxu0  ;;  %3577 = vmatprep.mubr.bf16.mxu1 %v5062_v57  ;;  %3983 = vtanh.bf16 %v2727_v54  ;;  %v2680_v46 = vmul.bf16 %v2664_v61, %v2632_v51 }
 0x489   : > { %v3477_v59 = vpop.f32.mrb[139].mxu0 }
 0x48a   : > { %v3478_v40 = vadd.f32 %v3477_v59, %v3476_v34  ;;  %v2696_v3 = vmul.bf16 %v2680_v46, %v2632_v51 }
 0x48b   : > { %v3982_v6 = vpop.eup %3981 }
 0x48c   : > { %v2633_v31 = vpack.c.bf16 %v3478_v40, %v3475_v5  ;;  %v2758_v15 = vadd.bf16 1065369472, %v3982_v6  ;;  %v2712_v18 = vadd.bf16 %v2696_v3, %v2632_v51 }
 0x48e   : > { %v2665_v50 = vmul.bf16 1027030327, %v2633_v31  ;;  %v3479_v36 = vpop.f32.mrb[140].mxu0  ;;  %v5065_v1 = vmul.bf16 %v2758_v15, %v2646_v47  ;;  %v2728_v49 = vmul.bf16 1061961548, %v2712_v18 }
 0x48f   : > { %v3480_v23 = vpop.f32.mrb[141].mxu0  ;;  %v2649_v51 = vmul.bf16 1056980736, %v2633_v31 }
 0x490   : > { %v3481_v53 = vadd.f32 %v3480_v23, %v3479_v36  ;;  %v3482_v41 = vpop.f32.mrb[142].mxu0  ;;  %3578 = vmatmul.mubr.bf16.gmra.mrb[148].mxu1 %v5065_v1  ;;  %3985 = vtanh.bf16 %v2728_v49  ;;  %v2681_v60 = vmul.bf16 %v2665_v50, %v2633_v31 }
 0x491   : > { %v3483_v32 = vpop.f32.mrb[143].mxu0 }
 0x492   : > { %v3484_v8 = vadd.f32 %v3483_v32, %v3482_v41  ;;  %v2697_v39 = vmul.bf16 %v2681_v60, %v2633_v31 }
 0x493   : > { %v3984_v56 = vpop.eup %3983 }
 0x494   : > { %v2634_v24 = vpack.c.bf16 %v3484_v8, %v3481_v53  ;;  %v2759_v58 = vadd.bf16 1065369472, %v3984_v56  ;;  %v2713_v44 = vadd.bf16 %v2697_v39, %v2633_v31 }
 0x496   : > { %v2666_v4 = vmul.bf16 1027030327, %v2634_v24  ;;  %v3485_v13 = vpop.f32.mrb[144].mxu0  ;;  %v5068_v62 = vmul.bf16 %v2759_v58, %v2647_v35  ;;  %v2729_v28 = vmul.bf16 1061961548, %v2713_v44 }
 0x497   : > { %v3486_v43 = vpop.f32.mrb[145].mxu0  ;;  %v2650_v31 = vmul.bf16 1056980736, %v2634_v24 }
 0x498   : > { %v3487_v37 = vadd.f32 %v3486_v43, %v3485_v13  ;;  %v3488_v17 = vpop.f32.mrb[146].mxu0  ;;  %3581 = vmatprep.mubr.bf16.mxu1 %v5068_v62  ;;  %3987 = vtanh.bf16 %v2729_v28  ;;  %v2682_v7 = vmul.bf16 %v2666_v4, %v2634_v24 }
 0x499   : > { %v3489_v42 = vpop.f32.mrb[147].mxu0 }
 0x49a   : > { %v3490_v2 = vadd.f32 %v3489_v42, %v3488_v17  ;;  %v2698_v11 = vmul.bf16 %v2682_v7, %v2634_v24 }
 0x49b   : > { %v3986_v14 = vpop.eup %3985 }
 0x49c   : > { %v2635_v29 = vpack.c.bf16 %v3490_v2, %v3487_v37  ;;  %v2760_v48 = vadd.bf16 1065369472, %v3986_v14  ;;  %v2714_v30 = vadd.bf16 %v2698_v11, %v2634_v24 }
 0x49e   : > { %v2667_v33 = vmul.bf16 1027030327, %v2635_v29  ;;  %v3491_v16 = vpop.f32.mrb[148].mxu0  ;;  %v5071_v12 = vmul.bf16 %v2760_v48, %v2648_v10  ;;  %v2730_v27 = vmul.bf16 1061961548, %v2714_v30 }
 0x49f   : > { %v3492_v26 = vpop.f32.mrb[149].mxu0  ;;  %v2651_v24 = vmul.bf16 1056980736, %v2635_v29 }
 0x4a0   : > { %v3493_v25 = vadd.f32 %v3492_v26, %v3491_v16  ;;  %v3494_v20 = vpop.f32.mrb[150].mxu0  ;;  %3582 = vmatmul.mubr.bf16.gmra.mrb[152].mxu1 %v5071_v12  ;;  %3989 = vtanh.bf16 %v2730_v27  ;;  %v2683_v19 = vmul.bf16 %v2667_v33, %v2635_v29 }
 0x4a1   : > { %v3495_v55 = vpop.f32.mrb[151].mxu0 }
 0x4a2   : > { %v3496_v22 = vadd.f32 %v3495_v55, %v3494_v20  ;;  %v2699_v9 = vmul.bf16 %v2683_v19, %v2635_v29 }
 0x4a3   : > { %v3988_v52 = vpop.eup %3987 }
 0x4a4   : > { %v2636_v61 = vpack.c.bf16 %v3496_v22, %v3493_v25  ;;  %v2761_v63 = vadd.bf16 1065369472, %v3988_v52  ;;  %v2715_v54 = vadd.bf16 %v2699_v9, %v2635_v29 }
 0x4a6   : > { %v2668_v21 = vmul.bf16 1027030327, %v2636_v61  ;;  %v3497_v5 = vpop.f32.mrb[152].mxu0  ;;  %v5074_v34 = vmul.bf16 %v2761_v63, %v2649_v51  ;;  %v2731_v46 = vmul.bf16 1061961548, %v2715_v54 }
 0x4a7   : > { %v3498_v59 = vpop.f32.mrb[153].mxu0  ;;  %v2652_v29 = vmul.bf16 1056980736, %v2636_v61 }
 0x4a8   : > { %v3499_v40 = vadd.f32 %v3498_v59, %v3497_v5  ;;  %v3500_v3 = vpop.f32.mrb[154].mxu0  ;;  %3585 = vmatprep.mubr.bf16.mxu1 %v5074_v34  ;;  %3991 = vtanh.bf16 %v2731_v46  ;;  %v2684_v6 = vmul.bf16 %v2668_v21, %v2636_v61 }
 0x4a9   : > { %v3501_v47 = vpop.f32.mrb[155].mxu0 }
 0x4aa   : > { %v3502_v15 = vadd.f32 %v3501_v47, %v3500_v3  ;;  %v2700_v18 = vmul.bf16 %v2684_v6, %v2636_v61 }
 0x4ab   : > { %v3990_v50 = vpop.eup %3989 }
 0x4ac   : > { %v2637_v36 = vpack.c.bf16 %v3502_v15, %v3499_v40  ;;  %v2762_v49 = vadd.bf16 1065369472, %v3990_v50  ;;  %v2716_v23 = vadd.bf16 %v2700_v18, %v2636_v61 }
 0x4ae   : > { %v2669_v53 = vmul.bf16 1027030327, %v2637_v36  ;;  %v3503_v41 = vpop.f32.mrb[156].mxu0  ;;  %v5077_v60 = vmul.bf16 %v2762_v49, %v2650_v31  ;;  %v2732_v32 = vmul.bf16 1061961548, %v2716_v23 }
 0x4af   : > { %v3504_v8 = vpop.f32.mrb[157].mxu0  ;;  %v2653_v61 = vmul.bf16 1056980736, %v2637_v36 }
 0x4b0   : > { %v3505_v39 = vadd.f32 %v3504_v8, %v3503_v41  ;;  %v3506_v56 = vpop.f32.mrb[158].mxu0  ;;  %3586 = vmatmul.mubr.bf16.gmra.mrb[156].mxu1 %v5077_v60  ;;  %3993 = vtanh.bf16 %v2732_v32  ;;  %v2685_v35 = vmul.bf16 %v2669_v53, %v2637_v36 }
 0x4b1   : > { %v3507_v58 = vpop.f32.mrb[159].mxu0 }
 0x4b2   : > { %v3508_v44 = vadd.f32 %v3507_v58, %v3506_v56  ;;  %v2701_v4 = vmul.bf16 %v2685_v35, %v2637_v36 }
 0x4b3   : > { %v3992_v13 = vpop.eup %3991 }
 0x4b4   : > { %v2638_v28 = vpack.c.bf16 %v3508_v44, %v3505_v39  ;;  %v2763_v43 = vadd.bf16 1065369472, %v3992_v13  ;;  %v2717_v37 = vadd.bf16 %v2701_v4, %v2637_v36 }
 0x4b6   : > { %v2670_v17 = vmul.bf16 1027030327, %v2638_v28  ;;  %v3509_v7 = vpop.f32.mrb[160].mxu0  ;;  %v5080_v42 = vmul.bf16 %v2763_v43, %v2651_v24  ;;  %v2733_v2 = vmul.bf16 1061961548, %v2717_v37 }
 0x4b7   : > { %v3510_v11 = vpop.f32.mrb[161].mxu0  ;;  %v2654_v36 = vmul.bf16 1056980736, %v2638_v28 }
 0x4b8   : > { %v3511_v14 = vadd.f32 %v3510_v11, %v3509_v7  ;;  %v3512_v10 = vpop.f32.mrb[162].mxu0  ;;  %3589 = vmatprep.mubr.bf16.mxu1 %v5080_v42  ;;  %3995 = vtanh.bf16 %v2733_v2  ;;  %v2686_v48 = vmul.bf16 %v2670_v17, %v2638_v28 }
 0x4b9   : > { %v3513_v30 = vpop.f32.mrb[163].mxu0 }
 0x4ba   : > { %v3514_v33 = vadd.f32 %v3513_v30, %v3512_v10  ;;  %v2702_v16 = vmul.bf16 %v2686_v48, %v2638_v28 }
 0x4bb   : > { %v3994_v27 = vpop.eup %3993 }
 0x4bc   : > { %v2639_v26 = vpack.c.bf16 %v3514_v33, %v3511_v14  ;;  %v2764_v25 = vadd.bf16 1065369472, %v3994_v27  ;;  %v2718_v20 = vadd.bf16 %v2702_v16, %v2638_v28 }
 0x4be   : > { %v2671_v19 = vmul.bf16 1027030327, %v2639_v26  ;;  %v3515_v55 = vpop.f32.mrb[164].mxu0  ;;  %v5083_v22 = vmul.bf16 %v2764_v25, %v2652_v29  ;;  %v2734_v9 = vmul.bf16 1061961548, %v2718_v20 }
 0x4bf   : > { %v3516_v52 = vpop.f32.mrb[165].mxu0  ;;  %v2655_v28 = vmul.bf16 1056980736, %v2639_v26 }
 0x4c0   : > { %v3517_v51 = vadd.f32 %v3516_v52, %v3515_v55  ;;  %v3518_v63 = vpop.f32.mrb[166].mxu0  ;;  %3590 = vmatmul.mubr.bf16.gmra.mrb[160].mxu1 %v5083_v22  ;;  %3997 = vtanh.bf16 %v2734_v9  ;;  %v2687_v54 = vmul.bf16 %v2671_v19, %v2639_v26 }
 0x4c1   : > { %v3519_v21 = vpop.f32.mrb[167].mxu0 }
 0x4c2   : > { %v3520_v5 = vadd.f32 %v3519_v21, %v3518_v63  ;;  %v2703_v46 = vmul.bf16 %v2687_v54, %v2639_v26 }
 0x4c3   : > { %v3996_v59 = vpop.eup %3995 }
 0x4c4   : > { %v2640_v40 = vpack.c.bf16 %v3520_v5, %v3517_v51  ;;  %v2765_v3 = vadd.bf16 1065369472, %v3996_v59  ;;  %v2719_v6 = vadd.bf16 %v2703_v46, %v2639_v26 }
 0x4c6   : > { %v2672_v47 = vmul.bf16 1027030327, %v2640_v40  ;;  %v3521_v15 = vpop.f32.mrb[168].mxu0  ;;  %v5086_v18 = vmul.bf16 %v2765_v3, %v2653_v61  ;;  %v2735_v50 = vmul.bf16 1061961548, %v2719_v6 }
 0x4c7   : > { %v3522_v31 = vpop.f32.mrb[169].mxu0  ;;  %v2656_v55 = vmul.bf16 1056980736, %v2640_v40 }
 0x4c8   : > { %v3523_v49 = vadd.f32 %v3522_v31, %v3521_v15  ;;  %v3524_v23 = vpop.f32.mrb[170].mxu0  ;;  %3593 = vmatprep.mubr.bf16.mxu1 %v5086_v18  ;;  %3999 = vtanh.bf16 %v2735_v50  ;;  %v2688_v53 = vmul.bf16 %v2672_v47, %v2640_v40 }
 0x4c9   : > { %v3525_v41 = vpop.f32.mrb[171].mxu0 }
 0x4ca   : > { %v3526_v32 = vadd.f32 %v3525_v41, %v3524_v23  ;;  %v2704_v8 = vmul.bf16 %v2688_v53, %v2640_v40 }
 0x4cb   : > { %v3998_v39 = vpop.eup %3997 }
 0x4cc   : > { %v2641_v56 = vpack.c.bf16 %v3526_v32, %v3523_v49  ;;  %v2766_v35 = vadd.bf16 1065369472, %v3998_v39  ;;  %v2720_v58 = vadd.bf16 %v2704_v8, %v2640_v40 }
 0x4ce   : > { %v2673_v44 = vmul.bf16 1027030327, %v2641_v56  ;;  %v3527_v4 = vpop.f32.mrb[172].mxu0  ;;  %v5089_v13 = vmul.bf16 %v2766_v35, %v2654_v36  ;;  %v2736_v24 = vmul.bf16 1061961548, %v2720_v58 }
 0x4cf   : > { %v3528_v43 = vpop.f32.mrb[173].mxu0  ;;  %v2657_v54 = vmul.bf16 1056980736, %v2641_v56 }
 0x4d0   : > { %v3529_v37 = vadd.f32 %v3528_v43, %v3527_v4  ;;  %v3530_v17 = vpop.f32.mrb[174].mxu0  ;;  %3594 = vmatmul.mubr.bf16.gmra.mrb[164].mxu1 %v5089_v13  ;;  %4001 = vtanh.bf16 %v2736_v24  ;;  %v2689_v7 = vmul.bf16 %v2673_v44, %v2641_v56 }
 0x4d1   : > { %v3531_v2 = vpop.f32.mrb[175].mxu0 }
 0x4d2   : > { %v3532_v11 = vadd.f32 %v3531_v2, %v3530_v17  ;;  %v2705_v14 = vmul.bf16 %v2689_v7, %v2641_v56 }
 0x4d3   : > { %v4000_v10 = vpop.eup %3999 }
 0x4d4   : > { %v2642_v48 = vpack.c.bf16 %v3532_v11, %v3529_v37  ;;  %v2767_v30 = vadd.bf16 1065369472, %v4000_v10  ;;  %v2721_v33 = vadd.bf16 %v2705_v14, %v2641_v56 }
 0x4d6   : > { %v2674_v16 = vmul.bf16 1027030327, %v2642_v48  ;;  %v5092_v27 = vmul.bf16 %v2767_v30, %v2655_v28  ;;  %v2737_v29 = vmul.bf16 1061961548, %v2721_v33  ;;  %v2658_v59 = vmul.bf16 1056980736, %v2642_v48 }
 0x4d8   : > { %3597 = vmatprep.mubr.bf16.mxu1 %v5092_v27  ;;  %4003 = vtanh.bf16 %v2737_v29  ;;  %v2690_v25 = vmul.bf16 %v2674_v16, %v2642_v48 }
 0x4da   : > { %v2706_v20 = vmul.bf16 %v2690_v25, %v2642_v48 }
 0x4db   : > { %v4002_v19 = vpop.eup %4001 }
 0x4dc   : > { %v2768_v9 = vadd.bf16 1065369472, %v4002_v19  ;;  %v2722_v52 = vadd.bf16 %v2706_v20, %v2642_v48 }
 0x4de   : > { %v5095_v51 = vmul.bf16 %v2768_v9, %v2656_v55  ;;  %v2738_v63 = vmul.bf16 1061961548, %v2722_v52 }
 0x4e0   : > { %3598 = vmatmul.mubr.bf16.gmra.mrb[168].mxu1 %v5095_v51  ;;  %4005 = vtanh.bf16 %v2738_v63 }
 0x4e3   : > { %v4004_v26 = vpop.eup %4003 }
 0x4e4   : > { %v2769_v21 = vadd.bf16 1065369472, %v4004_v26 }
 0x4e6   : > { %v5098_v5 = vmul.bf16 %v2769_v21, %v2657_v54 }
 0x4e8   : > { %3601 = vmatprep.mubr.bf16.mxu1 %v5098_v5 }
 0x4eb   : > { %v4006_v46 = vpop.eup %4005 }
 0x4ec   : > { %v2770_v61 = vadd.bf16 1065369472, %v4006_v46 }
 0x4ee   : > { %v5101_v40 = vmul.bf16 %v2770_v61, %v2658_v59 }
 0x4f0   : > { %3602 = vmatmul.mubr.bf16.gmra.mrb[172].mxu1 %v5101_v40 }
 0x553   : > { %v3575_v3 = vpop.f32.mrb[144].mxu1 }
 0x554   : > { %v2885_v6 = vpop.f32.mrb[145].mxu1 }
 0x555   : > { %v3576_v47 = vpop.f32.mrb[146].mxu1 }
 0x556   : > { %v3013_v15 = vpack.c.bf16 %v3576_v47, %v3575_v3  ;;  %v2888_v50 = vpop.f32.mrb[147].mxu1 }
 0x557   : > { %v3012_v31 = vpack.c.bf16 %v2888_v50, %v2885_v6 }
 0x558   : > { %v3029_v49 = vadd.bf16 %v3013_v15, %v5059_v45 }
 0x559   : > { %v3028_v23 = vadd.bf16 %v3012_v31, %v5056_v38 }
 0x55a   : > { %v3045_v53 = vmax.bf16 %v4269_v0, %v3029_v49 }
 0x55b   : > { %v3044_v41 = vmax.bf16 %v4269_v0, %v3028_v23 }
 0x55c   : > { %v3062_v32 = vunpack.c.l.bf16 %v3045_v53  ;;  %v3063_v8 = vunpack.c.h.bf16 %v3045_v53 }
 0x55d   : > { %v3060_v39 = vunpack.c.l.bf16 %v3044_v41  ;;  %v3061_v56 = vunpack.c.h.bf16 %v3044_v41 }
 0x55e   : > { %3094 = vst [vmem:[%s5109_s17 + $0x10] sm:$0xff] %v3062_v32  ;;  %3095 = vst [vmem:[%s5109_s17 + $0x18] sm:$0xff] %v3063_v8 }
 0x55f   : > { %3092 = vst [vmem:[%s5109_s17] sm:$0xff] %v3060_v39  ;;  %3093 = vst [vmem:[%s5109_s17 + $0x8] sm:$0xff] %v3061_v56 }
 0x563   : > { %v3579_v38 = vpop.f32.mrb[148].mxu1 }
 0x564   : > { %v2901_v45 = vpop.f32.mrb[149].mxu1 }
 0x565   : > { %v3580_v36 = vpop.f32.mrb[150].mxu1 }
 0x566   : > { %v3015_v35 = vpack.c.bf16 %v3580_v36, %v3579_v38  ;;  %v2904_v58 = vpop.f32.mrb[151].mxu1 }
 0x567   : > { %v3014_v44 = vpack.c.bf16 %v2904_v58, %v2901_v45 }
 0x568   : > { %v3031_v4 = vadd.bf16 %v3015_v35, %v5065_v1 }
 0x569   : > { %v3030_v24 = vadd.bf16 %v3014_v44, %v5062_v57 }
 0x56a   : > { %v3047_v43 = vmax.bf16 %v4269_v0, %v3031_v4 }
 0x56b   : > { %v3046_v37 = vmax.bf16 %v4269_v0, %v3030_v24 }
 0x56c   : > { %v3066_v17 = vunpack.c.l.bf16 %v3047_v43  ;;  %v3067_v7 = vunpack.c.h.bf16 %v3047_v43 }
 0x56d   : > { %v3064_v2 = vunpack.c.l.bf16 %v3046_v37  ;;  %v3065_v11 = vunpack.c.h.bf16 %v3046_v37 }
 0x56e   : > { %3098 = vst [vmem:[%s5109_s17 + $0x30] sm:$0xff] %v3066_v17  ;;  %3099 = vst [vmem:[%s5109_s17 + $0x38] sm:$0xff] %v3067_v7 }
 0x56f   : > { %3096 = vst [vmem:[%s5109_s17 + $0x20] sm:$0xff] %v3064_v2  ;;  %3097 = vst [vmem:[%s5109_s17 + $0x28] sm:$0xff] %v3065_v11 }
 0x573   : > { %v3583_v14 = vpop.f32.mrb[152].mxu1 }
 0x574   : > { %v2917_v10 = vpop.f32.mrb[153].mxu1 }
 0x575   : > { %v3584_v1 = vpop.f32.mrb[154].mxu1 }
 0x576   : > { %v3017_v57 = vpack.c.bf16 %v3584_v1, %v3583_v14  ;;  %v2920_v48 = vpop.f32.mrb[155].mxu1 }
 0x577   : > { %v3016_v28 = vpack.c.bf16 %v2920_v48, %v2917_v10 }
 0x578   : > { %v3033_v30 = vadd.bf16 %v3017_v57, %v5071_v12 }
 0x579   : > { %v3032_v33 = vadd.bf16 %v3016_v28, %v5068_v62 }
 0x57a   : > { %v3049_v16 = vmax.bf16 %v4269_v0, %v3033_v30 }
 0x57b   : > { %v3048_v29 = vmax.bf16 %v4269_v0, %v3032_v33 }
 0x57c   : > { %v3070_v25 = vunpack.c.l.bf16 %v3049_v16  ;;  %v3071_v20 = vunpack.c.h.bf16 %v3049_v16 }
 0x57d   : > { %v3068_v19 = vunpack.c.l.bf16 %v3048_v29  ;;  %v3069_v55 = vunpack.c.h.bf16 %v3048_v29 }
 0x57e   : > { %3102 = vst [vmem:[%s5109_s17 + $0x50] sm:$0xff] %v3070_v25  ;;  %3103 = vst [vmem:[%s5109_s17 + $0x58] sm:$0xff] %v3071_v20 }
 0x57f   : > { %3100 = vst [vmem:[%s5109_s17 + $0x40] sm:$0xff] %v3068_v19  ;;  %3101 = vst [vmem:[%s5109_s17 + $0x48] sm:$0xff] %v3069_v55 }
 0x583   : > { %v3587_v9 = vpop.f32.mrb[156].mxu1 }
 0x584   : > { %v2933_v52 = vpop.f32.mrb[157].mxu1 }
 0x585   : > { %v3588_v12 = vpop.f32.mrb[158].mxu1 }
 0x586   : > { %v3019_v62 = vpack.c.bf16 %v3588_v12, %v3587_v9  ;;  %v2936_v63 = vpop.f32.mrb[159].mxu1 }
 0x587   : > { %v3018_v26 = vpack.c.bf16 %v2936_v63, %v2933_v52 }
 0x588   : > { %v3035_v54 = vadd.bf16 %v3019_v62, %v5077_v60 }
 0x589   : > { %v3034_v21 = vadd.bf16 %v3018_v26, %v5074_v34 }
 0x58a   : > { %v3051_v46 = vmax.bf16 %v4269_v0, %v3035_v54 }
 0x58b   : > { %v3050_v59 = vmax.bf16 %v4269_v0, %v3034_v21 }
 0x58c   : > { %v3074_v61 = vunpack.c.l.bf16 %v3051_v46  ;;  %v3075_v3 = vunpack.c.h.bf16 %v3051_v46 }
 0x58d   : > { %v3072_v6 = vunpack.c.l.bf16 %v3050_v59  ;;  %v3073_v47 = vunpack.c.h.bf16 %v3050_v59 }
 0x58e   : > { %3106 = vst [vmem:[%s5109_s17 + $0x70] sm:$0xff] %v3074_v61  ;;  %3107 = vst [vmem:[%s5109_s17 + $0x78] sm:$0xff] %v3075_v3 }
 0x58f   : > { %3104 = vst [vmem:[%s5109_s17 + $0x60] sm:$0xff] %v3072_v6  ;;  %3105 = vst [vmem:[%s5109_s17 + $0x68] sm:$0xff] %v3073_v47 }
 0x593   : > { %v3591_v15 = vpop.f32.mrb[160].mxu1 }
 0x594   : > { %v2949_v50 = vpop.f32.mrb[161].mxu1 }
 0x595   : > { %v3592_v60 = vpop.f32.mrb[162].mxu1 }
 0x596   : > { %v3021_v34 = vpack.c.bf16 %v3592_v60, %v3591_v15  ;;  %v2952_v31 = vpop.f32.mrb[163].mxu1 }
 0x597   : > { %v3020_v49 = vpack.c.bf16 %v2952_v31, %v2949_v50 }
 0x598   : > { %v3037_v23 = vadd.bf16 %v3021_v34, %v5083_v22 }
 0x599   : > { %v3036_v53 = vadd.bf16 %v3020_v49, %v5080_v42 }
 0x59a   : > { %v3053_v41 = vmax.bf16 %v4269_v0, %v3037_v23 }
 0x59b   : > { %v3052_v32 = vmax.bf16 %v4269_v0, %v3036_v53 }
 0x59c   : > { %v3078_v8 = vunpack.c.l.bf16 %v3053_v41  ;;  %v3079_v39 = vunpack.c.h.bf16 %v3053_v41 }
 0x59d   : > { %v3076_v56 = vunpack.c.l.bf16 %v3052_v32  ;;  %v3077_v38 = vunpack.c.h.bf16 %v3052_v32 }
 0x59e   : > { %3110 = vst [vmem:[%s5109_s17 + $0x90] sm:$0xff] %v3078_v8  ;;  %3111 = vst [vmem:[%s5109_s17 + $0x98] sm:$0xff] %v3079_v39 }
 0x59f   : > { %3108 = vst [vmem:[%s5109_s17 + $0x80] sm:$0xff] %v3076_v56  ;;  %3109 = vst [vmem:[%s5109_s17 + $0x88] sm:$0xff] %v3077_v38 }
 0x5a3   : > { %v3595_v45 = vpop.f32.mrb[164].mxu1 }
 0x5a4   : > { %v2965_v36 = vpop.f32.mrb[165].mxu1 }
 0x5a5   : > { %v3596_v22 = vpop.f32.mrb[166].mxu1 }
 0x5a6   : > { %v3023_v42 = vpack.c.bf16 %v3596_v22, %v3595_v45  ;;  %v2968_v35 = vpop.f32.mrb[167].mxu1 }
 0x5a7   : > { %v3022_v58 = vpack.c.bf16 %v2968_v35, %v2965_v36 }
 0x5a8   : > { %v3039_v44 = vadd.bf16 %v3023_v42, %v5089_v13 }
 0x5a9   : > { %v3038_v4 = vadd.bf16 %v3022_v58, %v5086_v18 }
 0x5aa   : > { %v3055_v24 = vmax.bf16 %v4269_v0, %v3039_v44 }
 0x5ab   : > { %v3054_v43 = vmax.bf16 %v4269_v0, %v3038_v4 }
 0x5ac   : > { %v3082_v37 = vunpack.c.l.bf16 %v3055_v24  ;;  %v3083_v17 = vunpack.c.h.bf16 %v3055_v24 }
 0x5ad   : > { %v3080_v7 = vunpack.c.l.bf16 %v3054_v43  ;;  %v3081_v2 = vunpack.c.h.bf16 %v3054_v43 }
 0x5ae   : > { %3114 = vst [vmem:[%s5109_s17 + $0xb0] sm:$0xff] %v3082_v37  ;;  %3115 = vst [vmem:[%s5109_s17 + $0xb8] sm:$0xff] %v3083_v17 }
 0x5af   : > { %3112 = vst [vmem:[%s5109_s17 + $0xa0] sm:$0xff] %v3080_v7  ;;  %3113 = vst [vmem:[%s5109_s17 + $0xa8] sm:$0xff] %v3081_v2 }
 0x5b3   : > { %v3599_v11 = vpop.f32.mrb[168].mxu1 }
 0x5b4   : > { %v2981_v14 = vpop.f32.mrb[169].mxu1 }
 0x5b5   : > { %v3600_v13 = vpop.f32.mrb[170].mxu1 }
 0x5b6   : > { %v3025_v18 = vpack.c.bf16 %v3600_v13, %v3599_v11  ;;  %v2984_v10 = vpop.f32.mrb[171].mxu1 }
 0x5b7   : > { %v3024_v1 = vpack.c.bf16 %v2984_v10, %v2981_v14 }
 0x5b8   : > { %v3041_v57 = vadd.bf16 %v3025_v18, %v5095_v51 }
 0x5b9   : > { %v3040_v48 = vadd.bf16 %v3024_v1, %v5092_v27 }
 0x5ba   : > { %v3057_v28 = vmax.bf16 %v4269_v0, %v3041_v57 }
 0x5bb   : > { %v3056_v30 = vmax.bf16 %v4269_v0, %v3040_v48 }
 0x5bc   : > { %v3086_v33 = vunpack.c.l.bf16 %v3057_v28  ;;  %v3087_v16 = vunpack.c.h.bf16 %v3057_v28 }
 0x5bd   : > { %v3084_v29 = vunpack.c.l.bf16 %v3056_v30  ;;  %v3085_v25 = vunpack.c.h.bf16 %v3056_v30 }
 0x5be   : > { %3118 = vst [vmem:[%s5109_s17 + $0xd0] sm:$0xff] %v3086_v33  ;;  %3119 = vst [vmem:[%s5109_s17 + $0xd8] sm:$0xff] %v3087_v16 }
 0x5bf   : > { %3116 = vst [vmem:[%s5109_s17 + $0xc0] sm:$0xff] %v3084_v29  ;;  %3117 = vst [vmem:[%s5109_s17 + $0xc8] sm:$0xff] %v3085_v25 }
 0x5c3   : > { %v3603_v20 = vpop.f32.mrb[172].mxu1 }
 0x5c4   : > { %v2997_v19 = vpop.f32.mrb[173].mxu1 }
 0x5c5   : > { %v3604_v55 = vpop.f32.mrb[174].mxu1 }
 0x5c6   : > { %v3027_v51 = vpack.c.bf16 %v3604_v55, %v3603_v20  ;;  %v3000_v27 = vpop.f32.mrb[175].mxu1 }
 0x5c7   : > { %v3026_v9 = vpack.c.bf16 %v3000_v27, %v2997_v19 }
 0x5c8   : > { %v3043_v52 = vadd.bf16 %v3027_v51, %v5101_v40 }
 0x5c9   : > { %v3042_v12 = vadd.bf16 %v3026_v9, %v5098_v5 }
 0x5ca   : > { %v3059_v62 = vmax.bf16 %v4269_v0, %v3043_v52 }
 0x5cb   : > { %v3058_v63 = vmax.bf16 %v4269_v0, %v3042_v12 }
 0x5cc   : > { %v3090_v26 = vunpack.c.l.bf16 %v3059_v62  ;;  %v3091_v54 = vunpack.c.h.bf16 %v3059_v62 }
 0x5cd   : > { %v3088_v5 = vunpack.c.l.bf16 %v3058_v63  ;;  %v3089_v40 = vunpack.c.h.bf16 %v3058_v63 }
 0x5ce   : > { %3122 = vst [vmem:[%s5109_s17 + $0xf0] sm:$0xff] %v3090_v26  ;;  %3123 = vst [vmem:[%s5109_s17 + $0xf8] sm:$0xff] %v3091_v54 }
 0x5cf   : > { %3120 = vst [vmem:[%s5109_s17 + $0xe0] sm:$0xff] %v3088_v5  ;;  %3121 = vst [vmem:[%s5109_s17 + $0xe8] sm:$0xff] %v3089_v40 }
 0x5d0   : > { %4190 = shalt.err (!%p4187_p8)
}
 0x5d1   : > { %s4191_s10 = scalar_lea.hbm %s5172_s29, 4096  ;;  %s4195_s28 = scalar_lea.hbm %s5228_s6, 8192 }
 0x5d2   : > { %p4192_p6 = scmp.ne.s32.totalorder %s5172_s29, %s4191_s10  ;;  %p4196_p1 = scmp.lt.u32.totalorder %s5172_s29, %s5228_s6 }
 0x5d3   : > { %p4197_p0 = scmp.lt.u32.totalorder %s4195_s28, %s4191_s10  ;;  %p4199_p2 = scmp.lt.u32.totalorder %s4191_s10, %s5172_s29 }
 0x5d4   : > { %p4193_p9 = pnand %p4192_p6, %p5247_p7 }
 0x5d5   : > { %p4198_p5 = por %p4197_p0, %p4196_p1 }
 0x5d6   : > { %p4194_p4 = pneg %p4193_p9 }
 0x5d7   : > { %p4200_p10 = por %p4199_p2, %p4198_p5 }
 0x5d9   : > { %p4201_p11 = pnand %p4200_p10, %p4194_p4 }
 0x5db   : > { %4204 = shalt.err (!%p4201_p11)
}
 0x5dc   : > { %s4271_s19 = smov 128   ;;  %s4272_s9 = smov 8  }
 0x5dd   : > { %3643 = dma.vmem_to_hbm [thread:$0]  (%p5247_p7), %s5174_s26, 4096, %s5172_s29, %s3125_s27, %s4271_s19, %s4271_s19, %s4272_s9  }
 0x5de PF: > { %s3153_s13 = sand.u32 1, %s4243_s21   ;;  %p5248_p3 = scmp.ne.s32.totalorder %s5238_s25, 0 }
 0x5df   : > { %p5249_p12 = scmp.ge.s32.totalorder %s4255_s24, 2  ;;  %s3154_s30 = scalar_lea.sflag [#allocation4], %s3153_s13 }
 0x5e1   : > { %p3666_p13 = pnand %p5249_p12, %p5248_p3 }
 0x5e3   : > { %4238 = dma.done.wait (!%p3666_p13), %s3154_s30, 4096  }
 0x5e4   : > { %4240 = vsyncadd (!%p3666_p13), %s3154_s30, 4294963200  ;;  %p22_p8 = scmp.ge.s32.totalorder %s4468_s15, 4   ;;  %s5250_s21 = smov %s4247_s22 }
 0x5e5   : > { %s5251_s22 = smov %s4251_s23  ;;  %s5252_s23 = smov %s4480_s7 }
 0x5e6   : > { %s5253_s24 = smov %s4468_s15  ;;  %24 = sbr.rel (!%p22_p8) target bundleno = 8 (0x8), region = 109 }
 0x5ed   :  { %3159 = vsyncpa [#allocation3], 1 }
 0x5ee   :  { %3161 = vsyncpa [#allocation3 + $0x1], 1 }
 0x5ef   :  { %3162 = vsyncpa [#allocation6], 1 }
 0x5f0   :  { %3163 = vsyncpa [#allocation9], 1 }
 0x5f1   :  { %3164 = vsyncpa [#allocation12], 1 }
 0x5f2   :  { %3165 = vsyncpa [#allocation4], 1 }
 0x5f3   :  { %3167 = vsyncpa [#allocation4 + $0x1], 1 }

// kernel: tpu_custom_call.1
= control target key start
LH: loop header
LB: loop body
LE: loop exit
PB: predicated region body
PF: predicated region fallthrough
CT: control target
= control target key end

     0   :  { %11 = vsyncpa [#allocation3], 0  ;;  %s5222_s0 = inlined_call_operand.hbm [shape: bf16[512,128], index: 0, kind: input, shape index: {}]   ;;  %s5223_s1 = inlined_call_operand.hbm [shape: bf16[128,512], index: 1, kind: input, shape index: {}]   ;;  %s5224_s2 = inlined_call_operand.hbm [shape: bf16[256,256], index: 2, kind: input, shape index: {}]   ;;  %s5225_s3 = inlined_call_operand.hbm [shape: bf16[256,256], index: 3, kind: input, shape index: {}]   ;;  %s5226_s4 = inlined_call_operand.hbm [shape: bf16[256,128], index: 4, kind: input, shape index: {}]   ;;  %s5227_s5 = inlined_call_operand.hbm [shape: bf16[128,128], index: 5, kind: input, shape index: {}]   ;;  %s5228_s6 = inlined_call_operand.hbm [shape: f32[512,128], index: 6, kind: output, shape index: {}]  }
   0x1   :  { %13 = vsyncpa [#allocation3 + $0x1], 0 }
   0x2   :  { %14 = vsyncpa [#allocation6], 0 }
   0x3   :  { %15 = vsyncpa [#allocation9], 0 }
   0x4   :  { %16 = vsyncpa [#allocation12], 0 }
   0x5   :  { %17 = vsyncpa [#allocation4], 0 }
   0x6   :  { %19 = vsyncpa [#allocation4 + $0x1], 0  ;;  %s4308_s21 = smov 0   ;;  %s4310_s22 = smov 0  }
   0x7   :  { %s4312_s23 = smov 0   ;;  %s4314_s24 = smov 0  }
   0x8 LB: > { %s4257_s25 = smov [#allocation5]   ;;  %s4329_s27 = sadd.s32 4294967295, %s4255_s24   ;;  %s4255_s24 = sphi %s4314_s24, %s5253_s24   ;;  %s4251_s23 = sphi %s4312_s23, %s5252_s23   ;;  %s4247_s22 = sphi %s4310_s22, %s5251_s22   ;;  %s4243_s21 = sphi %s4308_s21, %s5250_s21  }
   0x9   : > { %s199_s26 = sshll.u32 %s4257_s25, 4  ;;  %p3260_p0 = scmp.ge.s32.totalorder %s4255_s24, 1  ;;  %s4334_s26 = int_to_ptr.vmem [resolvable:$true] %s199_s26 }
   0xa   : > { %p5229_p1 = scmp.eq.s32.totalorder %s4329_s27, 0  ;;  %p187_p2 = scmp.lt.s32.totalorder %s4255_s24, 3 }
   0xb   : > { %s4258_s30 = smov [#allocation8]   ;;  %s4259_s8 = smov [#allocation7]  }
   0xc   : > { %p4336_p3 = pnand %p3260_p0, %p187_p2  ;;  %s225_s7 = sshll.u32 %s4258_s30, 4  ;;  %s4349_s7 = int_to_ptr.vmem [resolvable:$true] %s225_s7 }
   0xd   : > { %s4351_s9 = sshll.u32 %s4259_s8, 4  ;;  %s4007_s12 = scalar_lea.hbm %s5223_s1, 4096  ;;  %s213_s9 = int_to_ptr.vmem [resolvable:$true] %s4351_s9 }
   0xe   : > { %s5232_s28 = scalar_select %p4336_p3, 1, 0 }
   0xf   : > { %p3645_p5 = pneg %p4336_p3  ;;  %p4008_p7 = scmp.ne.s32.totalorder %s5223_s1, %s4007_s12 }
  0x10   : > { %p4014_p11 = scmp.lt.u32.totalorder %s4007_s12, %s5223_s1 }
  0x11   : > { %p4345_p6 = pnand %p3645_p5, %p5229_p1 }
  0x13   : > { %p4361_p8 = pneg %p4345_p6 }
  0x15   : > { %p4010_p9 = pnand %p4361_p8, %p4008_p7 }
  0x17   : > { %p4011_p10 = pneg %p4010_p9 }
  0x19   : > { %p4016_p12 = pnand %p4014_p11, %p4011_p10 }
  0x1b   : > { %4019 = shalt.err (!%p4016_p12)
}
  0x1c   : > { %s4020_s18 = scalar_lea.vmem %s4334_s26, 4096  ;;  %p4028_p5 = scmp.lt.s32.totalorder %s4334_s26, %s4334_s26 }
  0x1d   : > { %p4021_p13 = scmp.ne.s32.totalorder %s4334_s26, %s4020_s18  ;;  %p4029_p4 = scmp.lt.s32.totalorder %s4020_s18, %s4020_s18 }
  0x1f   : > { %p4023_p0 = pnand %p4021_p13, %p4361_p8  ;;  %p4030_p7 = por %p4029_p4, %p4028_p5 }
  0x21   : > { %p4024_p2 = pneg %p4023_p0 }
  0x23   : > { %p4031_p9 = pnand %p4030_p7, %p4024_p2 }
  0x25   : > { %4034 = shalt.err (!%p4031_p9)
}
  0x26   : > { %s4260_s19 = smov 256   ;;  %s4261_s20 = smov 16  }
  0x27   : > { %3648 = dma.hbm_to_vmem [thread:$0]  (!%p4345_p6), %s5223_s1, 4096, %s4334_s26, [#allocation6], %s4260_s19, %s4260_s19, %s4261_s20  }
  0x28   : > { %s4035_s11 = scalar_lea.hbm %s5225_s3, 4096 }
  0x29   : > { %p4036_p4 = scmp.ne.s32.totalorder %s5225_s3, %s4035_s11  ;;  %p4042_p12 = scmp.lt.u32.totalorder %s4035_s11, %s5225_s3 }
  0x2b   : > { %p4038_p10 = pnand %p4036_p4, %p4361_p8 }
  0x2d   : > { %p4039_p11 = pneg %p4038_p10 }
  0x2f   : > { %p4044_p13 = pnand %p4042_p12, %p4039_p11 }
  0x31   : > { %4047 = shalt.err (!%p4044_p13)
}
  0x32   : > { %s4048_s26 = scalar_lea.vmem %s4349_s7, 4096  ;;  %p4056_p7 = scmp.lt.s32.totalorder %s4349_s7, %s4349_s7 }
  0x33   : > { %p4049_p0 = scmp.ne.s32.totalorder %s4349_s7, %s4048_s26  ;;  %p4057_p9 = scmp.lt.s32.totalorder %s4048_s26, %s4048_s26 }
  0x35   : > { %p4051_p2 = pnand %p4049_p0, %p4361_p8  ;;  %p4058_p4 = por %p4057_p9, %p4056_p7 }
  0x37   : > { %p4052_p5 = pneg %p4051_p2 }
  0x39   : > { %p4059_p10 = pnand %p4058_p4, %p4052_p5 }
  0x3b   : > { %4062 = shalt.err (!%p4059_p10)
}
  0x3c   : > { %s4262_s17 = smov 128   ;;  %s4263_s18 = smov 8  }
  0x3d   : > { %3654 = dma.hbm_to_vmem [thread:$0]  (!%p4345_p6), %s5225_s3, 4096, %s4349_s7, [#allocation9], %s4262_s17, %s4262_s17, %s4263_s18  }
  0x3e   : > { %s4063_s8 = scalar_lea.hbm %s5224_s2, 4096 }
  0x3f   : > { %p4064_p11 = scmp.ne.s32.totalorder %s5224_s2, %s4063_s8  ;;  %p4070_p0 = scmp.lt.u32.totalorder %s4063_s8, %s5224_s2 }
  0x41   : > { %p4066_p12 = pnand %p4064_p11, %p4361_p8 }
  0x43   : > { %p4067_p13 = pneg %p4066_p12 }
  0x45   : > { %p4072_p2 = pnand %p4070_p0, %p4067_p13 }
  0x47   : > { %4075 = shalt.err (!%p4072_p2)
}
  0x48   : > { %s4076_s14 = scalar_lea.vmem %s213_s9, 4096  ;;  %p4084_p4 = scmp.lt.s32.totalorder %s213_s9, %s213_s9 }
  0x49   : > { %p4077_p5 = scmp.ne.s32.totalorder %s213_s9, %s4076_s14  ;;  %p4085_p10 = scmp.lt.s32.totalorder %s4076_s14, %s4076_s14 }
  0x4b   : > { %p4079_p7 = pnand %p4077_p5, %p4361_p8  ;;  %p4086_p1 = por %p4085_p10, %p4084_p4 }
  0x4d   : > { %p4080_p9 = pneg %p4079_p7 }
  0x4f   : > { %p4087_p3 = pnand %p4086_p1, %p4080_p9 }
  0x51   : > { %4090 = shalt.err (!%p4087_p3)
}
  0x52   : > { %3651 = dma.hbm_to_vmem [thread:$0]  (!%p4345_p6), %s5224_s2, 4096, %s213_s9, [#allocation6], %s4262_s17, %s4262_s17, %s4263_s18  }
  0x53   : > { %s4264_s26 = smov [#allocation10]   ;;  %s4091_s30 = scalar_lea.hbm %s5226_s4, 2048 }
  0x54   : > { %s238_s19 = sshll.u32 %s4264_s26, 4  ;;  %p4092_p11 = scmp.ne.s32.totalorder %s5226_s4, %s4091_s30  ;;  %s239_s19 = int_to_ptr.vmem [resolvable:$true] %s238_s19 }
  0x55   : > { %p4098_p12 = scmp.lt.u32.totalorder %s4091_s30, %s5226_s4 }
  0x56   : > { %p4094_p1 = pnand %p4092_p11, %p4361_p8 }
  0x58   : > { %p4095_p3 = pneg %p4094_p1 }
  0x5a   : > { %p4100_p13 = pnand %p4098_p12, %p4095_p3 }
  0x5c   : > { %4103 = shalt.err (!%p4100_p13)
}
  0x5d   : > { %s4104_s9 = scalar_lea.vmem %s239_s19, 2048  ;;  %p4112_p7 = scmp.lt.s32.totalorder %s239_s19, %s239_s19 }
  0x5e   : > { %p4105_p0 = scmp.ne.s32.totalorder %s239_s19, %s4104_s9  ;;  %p4113_p9 = scmp.lt.s32.totalorder %s4104_s9, %s4104_s9 }
  0x60   : > { %p4107_p2 = pnand %p4105_p0, %p4361_p8  ;;  %p4114_p4 = por %p4113_p9, %p4112_p7 }
  0x62   : > { %p4108_p5 = pneg %p4107_p2 }
  0x64   : > { %p4115_p10 = pnand %p4114_p4, %p4108_p5 }
  0x66   : > { %4118 = shalt.err (!%p4115_p10)
}
  0x67   : > { %s4265_s17 = smov 64   ;;  %s4266_s18 = smov 4  }
  0x68   : > { %3657 = dma.hbm_to_vmem [thread:$0]  (!%p4345_p6), %s5226_s4, 2048, %s239_s19, [#allocation9], %s4265_s17, %s4265_s17, %s4266_s18  }
  0x69   : > { %s4267_s7 = smov [#allocation11]   ;;  %s4119_s25 = scalar_lea.hbm %s5227_s5, 1024 }
  0x6a   : > { %s251_s16 = sshll.u32 %s4267_s7, 4  ;;  %p4120_p11 = scmp.ne.s32.totalorder %s5227_s5, %s4119_s25  ;;  %s252_s16 = int_to_ptr.vmem [resolvable:$true] %s251_s16 }
  0x6b   : > { %p4126_p12 = scmp.lt.u32.totalorder %s4119_s25, %s5227_s5 }
  0x6c   : > { %p4122_p1 = pnand %p4120_p11, %p4361_p8 }
  0x6e   : > { %p4123_p3 = pneg %p4122_p1 }
  0x70   : > { %p4128_p13 = pnand %p4126_p12, %p4123_p3 }
  0x72   : > { %4131 = shalt.err (!%p4128_p13)
}
  0x73   : > { %s4132_s19 = scalar_lea.vmem %s252_s16, 1024  ;;  %p4140_p7 = scmp.lt.s32.totalorder %s252_s16, %s252_s16 }
  0x74   : > { %p4133_p0 = scmp.ne.s32.totalorder %s252_s16, %s4132_s19  ;;  %p4141_p9 = scmp.lt.s32.totalorder %s4132_s19, %s4132_s19 }
  0x76   : > { %p4135_p2 = pnand %p4133_p0, %p4361_p8  ;;  %p4142_p4 = por %p4141_p9, %p4140_p7 }
  0x78   : > { %p4136_p5 = pneg %p4135_p2 }
  0x7a   : > { %p4143_p10 = pnand %p4142_p4, %p4136_p5 }
  0x7c   : > { %4146 = shalt.err (!%p4143_p10)
}
  0x7d   : > { %3660 = dma.hbm_to_vmem [thread:$0]  (!%p4345_p6), %s5227_s5, 1024, %s252_s16, [#allocation12], %s4265_s17, %s4265_s17, %s4266_s18  }
  0x7e   : > { %s3259_s29 = sadd.s32 4294967294, %s4255_s24   ;;  %s4468_s15 = sadd.s32 1, %s4255_s24  }
  0x7f   : > { %s32_s13 = sadd.s32 1, %s4251_s23  ;;  %s29_s14 = ssub.s32 %s4255_s24, %s4468_s15 }
  0x80   : > { %p39_p8 = scmp.ne.s32.totalorder %s4251_s23, %s4247_s22  ;;  %p30_p11 = scmp.eq.s32.totalorder %s29_s14, 0 }
  0x81   : > { %p40_p1 = scmp.eq.s32.totalorder %s4255_s24, 0  ;;  %p45_p3 = scmp.ne.s32.totalorder %s4247_s22, %s4243_s21 }
  0x82   : > { %p174_p12 = scmp.eq.s32.totalorder %s4329_s27, 1  ;;  %p5235_p0 = scmp.eq.s32.totalorder %s4329_s27, 0 }
  0x83   : > { %s4480_s7 = scalar_select %p30_p11, %s4251_s23, %s32_s13  }
  0x84   : > { %p41_p13 = por %p40_p1, %p39_p8  ;;  %p4484_p2 = por %p5235_p0, %p45_p3 }
  0x85   : > { %p4488_p6 = por %p174_p12, %p39_p8  ;;  %p180_p5 = scmp.eq.s32.totalorder %s3259_s29, 1 }
  0x86   : > { %p3674_p7 = scmp.lt.s32.totalorder %s4255_s24, 2  ;;  %s265_s20 = sand.u32 1, %s4251_s23  }
  0x87   : > { %s5237_s16 = scalar_select %p4488_p6, 1, 0 }
  0x88   : > { %p4494_p9 = por %p180_p5, %p45_p3  ;;  %s3267_s30 = sshll.u32 %s265_s20, 7 }
  0x89   : > { %s3419_s8 = sshll.u32 %s4255_s24, 11  ;;  %s269_s12 = scalar_lea.vmem [#allocation2], %s3267_s30 }
  0x8a   : > { %s5238_s25 = scalar_select %p4494_p9, 1, 0 }
  0x8b   : > { %s4502_s19 = scalar_lea.hbm %s5222_s0, %s3419_s8  ;;  %s276_s9 = sshll.u32 %s269_s12, 4  ;;  %s4508_s9 = int_to_ptr.vmem [resolvable:$true] %s276_s9 }
  0x8c   : > { %p4504_p4 = pnand %p3674_p7, %p41_p13  ;;  %s4510_s13 = scalar_lea.sflag [#allocation3], %s265_s20 }
  0x8d   : > { %s4147_s14 = scalar_lea.hbm %s4502_s19, 2048  ;;  %s4152_s10 = scalar_lea.hbm %s5222_s0, 4096 }
  0x8e   : > { %p4148_p10 = scmp.ne.s32.totalorder %s4502_s19, %s4147_s14  ;;  %p4149_p8 = pneg %p4504_p4 }
  0x8f   : > { %p4153_p3 = scmp.lt.u32.totalorder %s4502_s19, %s5222_s0  ;;  %p4154_p12 = scmp.lt.u32.totalorder %s4152_s10, %s4147_s14 }
  0x90   : > { %p4150_p11 = pnand %p4149_p8, %p4148_p10  ;;  %p4156_p0 = scmp.lt.u32.totalorder %s4147_s14, %s4502_s19 }
  0x91   : > { %p4155_p13 = por %p4154_p12, %p4153_p3 }
  0x92   : > { %p4151_p1 = pneg %p4150_p11 }
  0x93   : > { %p4157_p5 = por %p4156_p0, %p4155_p13 }
  0x95   : > { %p4158_p7 = pnand %p4157_p5, %p4151_p1 }
  0x97   : > { %4161 = shalt.err (!%p4158_p7)
}
  0x98   : > { %s4162_s20 = scalar_lea.vmem %s4508_s9, 2048  ;;  %s4268_s30 = smov [#allocation2]  }
  0x99   : > { %p4163_p10 = scmp.ne.s32.totalorder %s4508_s9, %s4162_s20  ;;  %s4167_s8 = sshll.u32 %s4268_s30, 4  ;;  %s4168_s8 = int_to_ptr.vmem [resolvable:$false] %s4167_s8 }
  0x9a   : > { %s4169_s11 = scalar_lea.vmem %s4168_s8, 4096  ;;  %p4170_p6 = scmp.lt.s32.totalorder %s4508_s9, %s4168_s8 }
  0x9b   : > { %p4165_p11 = pnand %p4163_p10, %p4149_p8  ;;  %p4171_p3 = scmp.lt.s32.totalorder %s4169_s11, %s4162_s20 }
  0x9d   : > { %p4166_p9 = pneg %p4165_p11  ;;  %p4172_p12 = por %p4171_p3, %p4170_p6 }
  0x9f   : > { %p4173_p13 = pnand %p4172_p12, %p4166_p9 }
  0xa1   : > { %4176 = shalt.err (!%p4173_p13)
}
  0xa2   : > { %3664 = dma.hbm_to_vmem [thread:$0]  (!%p4504_p4), %s4502_s19, 2048, %s4508_s9, %s4510_s13, %s4265_s17, %s4265_s17, %s4266_s18  }
  0xa3   : > { %p5240_p8 = scmp.ne.s32.totalorder %s5232_s28, 0 }
  0xa4   : > { %s4544_s14 = sand.u32 (!%p5240_p8), 1, %s4247_s22  }
  0xa5   : > { %288 = sbr.rel (%p5240_p8) target bundleno = 1502 (0x5de), region = 44  ;;  %s3271_s10 = sshll.u32 (!%p5240_p8), %s4544_s14, 7 }
  0xa6   : > { %s291_s12 = scalar_lea.sflag (!%p5240_p8), [#allocation3], %s4544_s14  ;;  %s4548_s20 = scalar_lea.vmem (!%p5240_p8), [#allocation2], %s3271_s10 }
  0xac   : > { %4222 = dma.done.wait (%p4484_p2), %s291_s12, 2048  }
  0xad   : > { %4224 = vsyncadd (%p4484_p2), %s291_s12, 4294965248  ;;  %p5241_p6 = scmp.eq.s32.totalorder %s4329_s27, 0 }
  0xaf   : > { %4226 = dma.done.wait (%p5241_p6), [#allocation6], 8192   ;;  %p5242_p9 = pmov %p5241_p6 }
  0xb0   : > { %p5243_p4 = pmov %p5241_p6 }
  0xb1   : > { %4228 = vsyncadd (%p5242_p9), [#allocation6], 4294959104 }
  0xb2   : > { %4230 = dma.done.wait (%p5243_p4), [#allocation9], 6144   ;;  %p5244_p1 = pmov %p5243_p4 }
  0xb4   : > { %4232 = vsyncadd (%p5244_p1), [#allocation9], 4294961152  ;;  %p5245_p0 = pmov %p5244_p1 }
  0xb6   : > { %4234 = dma.done.wait (%p5245_p0), [#allocation12], 1024   ;;  %p5246_p5 = pmov %p5245_p0 }
  0xb7   : > { %v4269_v0 = vmov 0   ;;  %v3727_v1 = vld [vmem:[#allocation5 + $0x4] ss:$16 sps:$4 sm:$0xff]   ;;  %v3729_v2 = vld [vmem:[#allocation5] ss:$16 sps:$4 sm:$0xff]   ;;  %v4579_v24 = vld [vmem:[%s4548_s20 + $0x8] sm:$0xff]  }
  0xb8   : > { %4236 = vsyncadd (%p5246_p5), [#allocation12], 4294966272  ;;  %702 = vmatprep.mubr.bf16.mxu0 %v4269_v0  ;;  %822 = vmatprep.mubr.bf16.mxu1 %v4269_v0  ;;  %v3730_v3 = vld [vmem:[#allocation5 + $0x24] ss:$16 sps:$4 sm:$0xff]   ;;  %v3732_v4 = vld [vmem:[#allocation5 + $0x20] ss:$16 sps:$4 sm:$0xff]  }
  0xb9   : > { %670 = vmatprep.subr.bf16.mxu0 %v3727_v1  ;;  %3605 = vmatprep.subr.bf16.mxu1 %v3727_v1  ;;  %v3733_v5 = vld [vmem:[#allocation5 + $0x44] ss:$16 sps:$4 sm:$0xff]   ;;  %v3735_v6 = vld [vmem:[#allocation5 + $0x40] ss:$16 sps:$4 sm:$0xff]   ;;  %v4582_v25 = vld [vmem:[%s4548_s20 + $0x68] sm:$0xff]   ;;  %s3277_s28 = sshll.u32 %s4544_s14, 8 }
  0xba   : > { %671 = vmatpush1.bf16.msra.mxu0 %v3729_v2  ;;  %3613 = vmatpush1.bf16.msra.mxu1 %v3729_v2  ;;  %v3736_v7 = vld [vmem:[#allocation5 + $0x64] ss:$16 sps:$4 sm:$0xff]   ;;  %v3738_v8 = vld [vmem:[#allocation5 + $0x60] ss:$16 sps:$4 sm:$0xff]   ;;  %v4599_v36 = vld [vmem:[%s4548_s20 + $0x18] sm:$0xff]   ;;  %s5109_s17 = scalar_lea.vmem [#allocation13], %s3277_s28 }
  0xbb   : > { %672 = vmatprep.subr.bf16.mxu0 %v3730_v3  ;;  %3606 = vmatprep.subr.bf16.mxu1 %v3730_v3  ;;  %v3739_v9 = vld [vmem:[#allocation5 + $0x84] ss:$16 sps:$4 sm:$0xff]   ;;  %v3741_v10 = vld [vmem:[#allocation5 + $0x80] ss:$16 sps:$4 sm:$0xff]   ;;  %v4602_v37 = vld [vmem:[%s4548_s20 + $0x78] sm:$0xff]   ;;  %s3420_s18 = sshll.u32 %s4329_s27, 12 }
  0xbc   : > { %v3742_v11 = vld [vmem:[#allocation5 + $0xa4] ss:$16 sps:$4 sm:$0xff]   ;;  %v3744_v12 = vld [vmem:[#allocation5 + $0xa0] ss:$16 sps:$4 sm:$0xff]   ;;  %v4614_v47 = vld [vmem:[%s4548_s20 + $0x28] sm:$0xff]   ;;  %s3138_s26 = sshll.u32 %s5109_s17, 4  ;;  %s5172_s29 = scalar_lea.hbm %s5228_s6, %s3420_s18  ;;  %s5174_s26 = int_to_ptr.vmem [resolvable:$true] %s3138_s26 }
  0xbd   : > { %v3745_v13 = vld [vmem:[#allocation5 + $0xc4] ss:$16 sps:$4 sm:$0xff]   ;;  %v3747_v14 = vld [vmem:[#allocation5 + $0xc0] ss:$16 sps:$4 sm:$0xff]   ;;  %v4624_v57 = vld [vmem:[%s4548_s20 + $0x38] sm:$0xff]   ;;  %s3125_s27 = scalar_lea.sflag [#allocation4], %s4544_s14 }
  0xbe   : > { %673 = vmatpush1.bf16.msra.mxu0 %v3732_v4  ;;  %3614 = vmatpush1.bf16.msra.mxu1 %v3732_v4  ;;  %v3748_v15 = vld [vmem:[#allocation5 + $0xe4] ss:$16 sps:$4 sm:$0xff]   ;;  %v3750_v16 = vld [vmem:[#allocation5 + $0xe0] ss:$16 sps:$4 sm:$0xff]   ;;  %v4634_v60 = vld [vmem:[%s4548_s20 + $0x48] sm:$0xff]   ;;  %s4177_s13 = scalar_lea.vmem %s5174_s26, 4096 }
  0xbf   : > { %674 = vmatprep.subr.bf16.mxu0 %v3733_v5  ;;  %3607 = vmatprep.subr.bf16.mxu1 %v3733_v5  ;;  %v3769_v17 = vld [vmem:[#allocation7 + $0x4] ss:$8 sps:$4 sm:$0xff]   ;;  %v3767_v20 = vld [vmem:[#allocation7] ss:$8 sps:$4 sm:$0xff]   ;;  %v3772_v21 = vld [vmem:[#allocation7 + $0x14] ss:$8 sps:$4 sm:$0xff]   ;;  %p4178_p2 = scmp.ne.s32.totalorder %s5174_s26, %s4177_s13 }
  0xc0   : > { %v4569_v18 = vld [vmem:[%s4548_s20] sm:$0xff]   ;;  %v3770_v22 = vld [vmem:[#allocation7 + $0x10] ss:$8 sps:$4 sm:$0xff]   ;;  %v3778_v27 = vld [vmem:[#allocation7 + $0x34] ss:$8 sps:$4 sm:$0xff]   ;;  %p5247_p7 = scmp.ne.s32.totalorder %s5237_s16, 0 }
  0xc1   : > { %v4572_v19 = vld [vmem:[%s4548_s20 + $0x60] sm:$0xff]   ;;  %v4589_v28 = vld [vmem:[%s4548_s20 + $0x10] sm:$0xff]   ;;  %v4644_v1 = vld [vmem:[%s4548_s20 + $0x58] sm:$0xff]   ;;  %s4270_s30 = smov [#allocation13]  }
  0xc2   : > { %675 = vmatpush1.bf16.msra.mxu0 %v3735_v6  ;;  %3615 = vmatpush1.bf16.msra.mxu1 %v3735_v6  ;;  %v3775_v23 = vld [vmem:[#allocation7 + $0x24] ss:$8 sps:$4 sm:$0xff]   ;;  %v3773_v26 = vld [vmem:[#allocation7 + $0x20] ss:$8 sps:$4 sm:$0xff]   ;;  %v3776_v29 = vld [vmem:[#allocation7 + $0x30] ss:$8 sps:$4 sm:$0xff]   ;;  %p4179_p10 = pnand %p4178_p2, %p5247_p7 }
  0xc3   : > { %676 = vmatprep.subr.bf16.mxu0 %v3736_v7  ;;  %3608 = vmatprep.subr.bf16.mxu1 %v3736_v7  ;;  %v3781_v30 = vld [vmem:[#allocation7 + $0x44] ss:$8 sps:$4 sm:$0xff]   ;;  %v4592_v31 = vld [vmem:[%s4548_s20 + $0x70] sm:$0xff]   ;;  %v3779_v32 = vld [vmem:[#allocation7 + $0x40] ss:$8 sps:$4 sm:$0xff]   ;;  %s4181_s8 = sshll.u32 %s4270_s30, 4  ;;  %s4182_s8 = int_to_ptr.vmem [resolvable:$false] %s4181_s8 }
  0xc4   : > { %v3784_v33 = vld [vmem:[#allocation7 + $0x54] ss:$8 sps:$4 sm:$0xff]   ;;  %v3782_v34 = vld [vmem:[#allocation7 + $0x50] ss:$8 sps:$4 sm:$0xff]   ;;  %v3787_v35 = vld [vmem:[#allocation7 + $0x64] ss:$8 sps:$4 sm:$0xff]   ;;  %p4180_p11 = pneg %p4179_p10  ;;  %p4184_p3 = scmp.lt.s32.totalorder %s5174_s26, %s4182_s8 }
  0xc5   : > { %v3785_v38 = vld [vmem:[#allocation7 + $0x60] ss:$8 sps:$4 sm:$0xff]   ;;  %v3790_v39 = vld [vmem:[#allocation7 + $0x74] ss:$8 sps:$4 sm:$0xff]   ;;  %v3788_v40 = vld [vmem:[#allocation7 + $0x70] ss:$8 sps:$4 sm:$0xff]  }
  0xc6   : > { %677 = vmatpush1.bf16.msra.mxu0 %v3738_v8  ;;  %3616 = vmatpush1.bf16.msra.mxu1 %v3738_v8  ;;  %v3793_v41 = vld [vmem:[#allocation7 + $0x84] ss:$8 sps:$4 sm:$0xff]   ;;  %v3791_v43 = vld [vmem:[#allocation7 + $0x80] ss:$8 sps:$4 sm:$0xff]   ;;  %v3796_v44 = vld [vmem:[#allocation7 + $0x94] ss:$8 sps:$4 sm:$0xff]  }
  0xc7   : > { %678 = vmatprep.subr.bf16.mxu0 %v3739_v9  ;;  %3609 = vmatprep.subr.bf16.mxu1 %v3739_v9  ;;  %v4609_v42 = vld [vmem:[%s4548_s20 + $0x20] sm:$0xff]   ;;  %v3794_v45 = vld [vmem:[#allocation7 + $0x90] ss:$8 sps:$4 sm:$0xff]   ;;  %v3802_v49 = vld [vmem:[#allocation7 + $0xb4] ss:$8 sps:$4 sm:$0xff]   ;;  %s4183_s11 = scalar_lea.vmem %s4182_s8, 8192 }
  0xc8   : > { %v3799_v46 = vld [vmem:[#allocation7 + $0xa4] ss:$8 sps:$4 sm:$0xff]   ;;  %v3797_v48 = vld [vmem:[#allocation7 + $0xa0] ss:$8 sps:$4 sm:$0xff]   ;;  %v3800_v50 = vld [vmem:[#allocation7 + $0xb0] ss:$8 sps:$4 sm:$0xff]   ;;  %p4185_p12 = scmp.lt.s32.totalorder %s4183_s11, %s4177_s13 }
  0xc9   : > { %v3805_v51 = vld [vmem:[#allocation7 + $0xc4] ss:$8 sps:$4 sm:$0xff]   ;;  %v4619_v52 = vld [vmem:[%s4548_s20 + $0x30] sm:$0xff]   ;;  %v3803_v53 = vld [vmem:[#allocation7 + $0xc0] ss:$8 sps:$4 sm:$0xff]  }
  0xca   : > { %679 = vmatpush1.bf16.msra.mxu0 %v3741_v10  ;;  %3617 = vmatpush1.bf16.msra.mxu1 %v3741_v10  ;;  %v3808_v54 = vld [vmem:[#allocation7 + $0xd4] ss:$8 sps:$4 sm:$0xff]   ;;  %v3806_v55 = vld [vmem:[#allocation7 + $0xd0] ss:$8 sps:$4 sm:$0xff]   ;;  %v3811_v56 = vld [vmem:[#allocation7 + $0xe4] ss:$8 sps:$4 sm:$0xff]   ;;  %p4186_p13 = por %p4185_p12, %p4184_p3 }
  0xcb   : > { %680 = vmatprep.subr.bf16.mxu0 %v3742_v11  ;;  %3610 = vmatprep.subr.bf16.mxu1 %v3742_v11  ;;  %v3809_v58 = vld [vmem:[#allocation7 + $0xe0] ss:$8 sps:$4 sm:$0xff]   ;;  %v4639_v61 = vld [vmem:[%s4548_s20 + $0x50] sm:$0xff]   ;;  %v3817_v2 = vld [vmem:[#allocation5 + $0xc] ss:$16 sps:$4 sm:$0xff]  }
  0xcc   : > { %v4629_v59 = vld [vmem:[%s4548_s20 + $0x40] sm:$0xff]   ;;  %v3812_v62 = vld [vmem:[#allocation7 + $0xf0] ss:$8 sps:$4 sm:$0xff]   ;;  %v3814_v63 = vld [vmem:[#allocation7 + $0xf4] ss:$8 sps:$4 sm:$0xff]   ;;  %p4187_p8 = pnand %p4186_p13, %p4180_p11 }
  0xcd   : > { %v3815_v3 = vld [vmem:[#allocation5 + $0x8] ss:$16 sps:$4 sm:$0xff]   ;;  %v3820_v4 = vld [vmem:[#allocation5 + $0x2c] ss:$16 sps:$4 sm:$0xff]  }
  0xce   : > { %681 = vmatpush1.bf16.msra.mxu0 %v3744_v12  ;;  %3618 = vmatpush1.bf16.msra.mxu1 %v3744_v12  ;;  %v3818_v5 = vld [vmem:[#allocation5 + $0x28] ss:$16 sps:$4 sm:$0xff]   ;;  %v3823_v6 = vld [vmem:[#allocation5 + $0x4c] ss:$16 sps:$4 sm:$0xff]  }
  0xcf   : > { %682 = vmatprep.subr.bf16.mxu0 %v3745_v13  ;;  %3611 = vmatprep.subr.bf16.mxu1 %v3745_v13  ;;  %v3821_v7 = vld [vmem:[#allocation5 + $0x48] ss:$16 sps:$4 sm:$0xff]   ;;  %v3826_v8 = vld [vmem:[#allocation5 + $0x6c] ss:$16 sps:$4 sm:$0xff]  }
  0xd0   : > { %v3824_v9 = vld [vmem:[#allocation5 + $0x68] ss:$16 sps:$4 sm:$0xff]   ;;  %v3829_v10 = vld [vmem:[#allocation5 + $0x8c] ss:$16 sps:$4 sm:$0xff]  }
  0xd1   : > { %v3827_v11 = vld [vmem:[#allocation5 + $0x88] ss:$16 sps:$4 sm:$0xff]   ;;  %v3832_v12 = vld [vmem:[#allocation5 + $0xac] ss:$16 sps:$4 sm:$0xff]  }
  0xd2   : > { %683 = vmatpush1.bf16.msra.mxu0 %v3747_v14  ;;  %3619 = vmatpush1.bf16.msra.mxu1 %v3747_v14  ;;  %v3830_v13 = vld [vmem:[#allocation5 + $0xa8] ss:$16 sps:$4 sm:$0xff]   ;;  %v3835_v14 = vld [vmem:[#allocation5 + $0xcc] ss:$16 sps:$4 sm:$0xff]  }
  0xd3   : > { %684 = vmatprep.subr.bf16.mxu0 %v3748_v15  ;;  %3612 = vmatprep.subr.bf16.mxu1 %v3748_v15  ;;  %v3833_v15 = vld [vmem:[#allocation5 + $0xc8] ss:$16 sps:$4 sm:$0xff]  }
  0xd6   : > { %685 = vmatpush1.bf16.msra.mxu0 %v3750_v16  ;;  %3620 = vmatpush1.bf16.msra.mxu1 %v3750_v16  ;;  %v3838_v16 = vld [vmem:[#allocation5 + $0xec] ss:$16 sps:$4 sm:$0xff]  }
  0xd7   : > { %1376 = vmatprep.subr.bf16.mxu0 %v3769_v17  ;;  %863 = vmatprep.subr.bf16.mxu1 %v3817_v2  ;;  %v3836_v17 = vld [vmem:[#allocation5 + $0xe8] ss:$16 sps:$4 sm:$0xff]  }
  0xd9   : > { %703 = vmatmul.mubr.bf16.vlgmr.msra.gmra.mrb[0].mxu0 %v4569_v18  ;;  %823 = vmatmul.mubr.bf16.vlgmr.msra.gmra.mrb[0].mxu1 %v4572_v19 }
  0xda   : > { %712 = vmatprep.mubr.bf16.mxu0 %v4269_v0  ;;  %832 = vmatprep.mubr.bf16.mxu1 %v4269_v0 }
  0xdb   : > { %1377 = vmatpush1.bf16.msra.mxu0 %v3767_v20  ;;  %864 = vmatpush1.bf16.msra.mxu1 %v3815_v3  ;;  %v3839_v20 = vld [vmem:[#allocation8] ss:$8 sps:$4 sm:$0xff]   ;;  %v3854_v3 = vld [vmem:[#allocation8 + $0x50] ss:$8 sps:$4 sm:$0xff]  }
  0xdc   : > { %1378 = vmatprep.subr.bf16.mxu0 %v3772_v21  ;;  %865 = vmatprep.subr.bf16.mxu1 %v3820_v4  ;;  %v3841_v21 = vld [vmem:[#allocation8 + $0x4] ss:$8 sps:$4 sm:$0xff]  }
  0xdd   : > { %v3859_v4 = vld [vmem:[#allocation8 + $0x64] ss:$8 sps:$4 sm:$0xff]  }
  0xdf   : > { %1379 = vmatpush1.bf16.msra.mxu0 %v3770_v22  ;;  %866 = vmatpush1.bf16.msra.mxu1 %v3818_v5  ;;  %v3842_v22 = vld [vmem:[#allocation8 + $0x10] ss:$8 sps:$4 sm:$0xff]  }
  0xe0   : > { %1380 = vmatprep.subr.bf16.mxu0 %v3775_v23  ;;  %867 = vmatprep.subr.bf16.mxu1 %v3823_v6  ;;  %v3844_v23 = vld [vmem:[#allocation8 + $0x14] ss:$8 sps:$4 sm:$0xff]  }
  0xe1   : > { %713 = vmatmul.mubr.bf16.gmra.mrb[4].mxu0 %v4579_v24  ;;  %833 = vmatmul.mubr.bf16.gmra.mrb[4].mxu1 %v4582_v25 }
  0xe2   : > { %722 = vmatprep.mubr.bf16.mxu0 %v4269_v0  ;;  %842 = vmatprep.mubr.bf16.mxu1 %v4269_v0 }
  0xe3   : > { %1381 = vmatpush1.bf16.msra.mxu0 %v3773_v26  ;;  %868 = vmatpush1.bf16.msra.mxu1 %v3821_v7 }
  0xe4   : > { %1382 = vmatprep.subr.bf16.mxu0 %v3778_v27  ;;  %869 = vmatprep.subr.bf16.mxu1 %v3826_v8 }
  0xe7   : > { %1383 = vmatpush1.bf16.msra.mxu0 %v3776_v29  ;;  %870 = vmatpush1.bf16.msra.mxu1 %v3824_v9  ;;  %v3847_v29 = vld [vmem:[#allocation8 + $0x24] ss:$8 sps:$4 sm:$0xff]  }
  0xe8   : > { %1384 = vmatprep.subr.bf16.mxu0 %v3781_v30  ;;  %871 = vmatprep.subr.bf16.mxu1 %v3829_v10 }
  0xe9   : > { %723 = vmatmul.mubr.bf16.gmra.mrb[8].mxu0 %v4589_v28  ;;  %843 = vmatmul.mubr.bf16.gmra.mrb[8].mxu1 %v4592_v31 }
  0xea   : > { %732 = vmatprep.mubr.bf16.mxu0 %v4269_v0  ;;  %852 = vmatprep.mubr.bf16.mxu1 %v4269_v0 }
  0xeb   : > { %1385 = vmatpush1.bf16.msra.mxu0 %v3779_v32  ;;  %872 = vmatpush1.bf16.msra.mxu1 %v3827_v11  ;;  %v3857_v11 = vld [vmem:[#allocation8 + $0x60] ss:$8 sps:$4 sm:$0xff]  }
  0xec   : > { %1386 = vmatprep.subr.bf16.mxu0 %v3784_v33  ;;  %873 = vmatprep.subr.bf16.mxu1 %v3832_v12 }
  0xef   : > { %1387 = vmatpush1.bf16.msra.mxu0 %v3782_v34  ;;  %874 = vmatpush1.bf16.msra.mxu1 %v3830_v13  ;;  %v3845_v34 = vld [vmem:[#allocation8 + $0x20] ss:$8 sps:$4 sm:$0xff]  }
  0xf0   : > { %1388 = vmatprep.subr.bf16.mxu0 %v3787_v35  ;;  %875 = vmatprep.subr.bf16.mxu1 %v3835_v14 }
  0xf1   : > { %733 = vmatmul.mubr.bf16.gmra.mrb[12].mxu0 %v4599_v36  ;;  %853 = vmatmul.mubr.bf16.gmra.mrb[12].mxu1 %v4602_v37 }
  0xf2   : > { %742 = vmatprep.mubr.bf16.mxu0 %v4269_v0  ;;  %895 = vmatprep.mubr.bf16.mxu1 %v4269_v0 }
  0xf3   : > { %1389 = vmatpush1.bf16.msra.mxu0 %v3785_v38  ;;  %876 = vmatpush1.bf16.msra.mxu1 %v3833_v15 }
  0xf4   : > { %1390 = vmatprep.subr.bf16.mxu0 %v3790_v39  ;;  %877 = vmatprep.subr.bf16.mxu1 %v3838_v16  ;;  %v3862_v16 = vld [vmem:[#allocation8 + $0x74] ss:$8 sps:$4 sm:$0xff]  }
  0xf7   : > { %1391 = vmatpush1.bf16.msra.mxu0 %v3788_v40  ;;  %878 = vmatpush1.bf16.msra.mxu1 %v3836_v17 }
  0xf8   : > { %1392 = vmatprep.subr.bf16.mxu0 %v3793_v41  ;;  %2081 = vmatprep.subr.bf16.mxu1 %v3841_v21  ;;  %v3865_v21 = vld [vmem:[#allocation8 + $0x84] ss:$8 sps:$4 sm:$0xff]  }
  0xf9   : > { %743 = vmatmul.mubr.bf16.gmra.mrb[16].mxu0 %v4609_v42 }
  0xfa   : > { %752 = vmatprep.mubr.bf16.mxu0 %v4269_v0  ;;  %896 = vmatmul.mubr.bf16.vlgmr.msra.gmra.mrb[16].mxu1 %v4569_v18 }
  0xfb   : > { %1393 = vmatpush1.bf16.msra.mxu0 %v3791_v43  ;;  %905 = vmatprep.mubr.bf16.mxu1 %v4269_v0 }
  0xfc   : > { %1394 = vmatprep.subr.bf16.mxu0 %v3796_v44  ;;  %2082 = vmatpush1.bf16.msra.mxu1 %v3839_v20  ;;  %v3848_v44 = vld [vmem:[#allocation8 + $0x30] ss:$8 sps:$4 sm:$0xff]  }
  0xfd   : > { %2083 = vmatprep.subr.bf16.mxu1 %v3844_v23  ;;  %v3860_v20 = vld [vmem:[#allocation8 + $0x70] ss:$8 sps:$4 sm:$0xff]  }
  0xff   : > { %1395 = vmatpush1.bf16.msra.mxu0 %v3794_v45  ;;  %v3853_v45 = vld [vmem:[#allocation8 + $0x44] ss:$8 sps:$4 sm:$0xff]  }
 0x100   : > { %1396 = vmatprep.subr.bf16.mxu0 %v3799_v46  ;;  %2084 = vmatpush1.bf16.msra.mxu1 %v3842_v22 }
 0x101   : > { %753 = vmatmul.mubr.bf16.gmra.mrb[20].mxu0 %v4614_v47  ;;  %2085 = vmatprep.subr.bf16.mxu1 %v3847_v29 }
 0x102   : > { %762 = vmatprep.mubr.bf16.mxu0 %v4269_v0  ;;  %906 = vmatmul.mubr.bf16.gmra.mrb[20].mxu1 %v4579_v24  ;;  %v3850_v24 = vld [vmem:[#allocation8 + $0x34] ss:$8 sps:$4 sm:$0xff]  }
 0x103   : > { %1397 = vmatpush1.bf16.msra.mxu0 %v3797_v48  ;;  %915 = vmatprep.mubr.bf16.mxu1 %v4269_v0 }
 0x104   : > { %1398 = vmatprep.subr.bf16.mxu0 %v3802_v49  ;;  %2086 = vmatpush1.bf16.msra.mxu1 %v3845_v34  ;;  %v3863_v34 = vld [vmem:[#allocation8 + $0x80] ss:$8 sps:$4 sm:$0xff]  }
 0x105   : > { %2087 = vmatprep.subr.bf16.mxu1 %v3850_v24 }
 0x107   : > { %1399 = vmatpush1.bf16.msra.mxu0 %v3800_v50 }
 0x108   : > { %1400 = vmatprep.subr.bf16.mxu0 %v3805_v51  ;;  %2088 = vmatpush1.bf16.msra.mxu1 %v3848_v44  ;;  %v3868_v44 = vld [vmem:[#allocation8 + $0x94] ss:$8 sps:$4 sm:$0xff]  }
 0x109   : > { %763 = vmatmul.mubr.bf16.gmra.mrb[24].mxu0 %v4619_v52  ;;  %2089 = vmatprep.subr.bf16.mxu1 %v3853_v45 }
 0x10a   : > { %772 = vmatprep.mubr.bf16.mxu0 %v4269_v0  ;;  %916 = vmatmul.mubr.bf16.gmra.mrb[24].mxu1 %v4589_v28 }
 0x10b   : > { %1401 = vmatpush1.bf16.msra.mxu0 %v3803_v53  ;;  %925 = vmatprep.mubr.bf16.mxu1 %v4269_v0 }
 0x10c   : > { %1402 = vmatprep.subr.bf16.mxu0 %v3808_v54  ;;  %v3851_v54 = vld [vmem:[#allocation8 + $0x40] ss:$8 sps:$4 sm:$0xff]  }
 0x10d   : > { %2090 = vmatpush1.bf16.msra.mxu1 %v3851_v54 }
 0x10f   : > { %1403 = vmatpush1.bf16.msra.mxu0 %v3806_v55 }
 0x110   : > { %1404 = vmatprep.subr.bf16.mxu0 %v3811_v56 }
 0x111   : > { %773 = vmatmul.mubr.bf16.gmra.mrb[28].mxu0 %v4624_v57 }
 0x112   : > { %782 = vmatprep.mubr.bf16.mxu0 %v4269_v0  ;;  %926 = vmatmul.mubr.bf16.gmra.mrb[28].mxu1 %v4599_v36 }
 0x113   : > { %1405 = vmatpush1.bf16.msra.mxu0 %v3809_v58  ;;  %935 = vmatprep.mubr.bf16.mxu1 %v4269_v0 }
 0x114   : > { %1406 = vmatprep.subr.bf16.mxu0 %v3814_v63  ;;  %v3856_v63 = vld [vmem:[#allocation8 + $0x54] ss:$8 sps:$4 sm:$0xff]  }
 0x115   : > { %2091 = vmatprep.subr.bf16.mxu1 %v3856_v63 }
 0x116   : > { %2092 = vmatpush1.bf16.msra.mxu1 %v3854_v3  ;;  %v3874_v3 = vld [vmem:[#allocation8 + $0xb4] ss:$8 sps:$4 sm:$0xff]  }
 0x117   : > { %1407 = vmatpush1.bf16.msra.mxu0 %v3812_v62  ;;  %2093 = vmatprep.subr.bf16.mxu1 %v3859_v4 }
 0x119   : > { %783 = vmatmul.mubr.bf16.gmra.mrb[32].mxu0 %v4629_v59 }
 0x11a   : > { %792 = vmatprep.mubr.bf16.mxu0 %v4269_v0  ;;  %2094 = vmatpush1.bf16.msra.mxu1 %v3857_v11 }
 0x11b   : > { %2095 = vmatprep.subr.bf16.mxu1 %v3862_v16  ;;  %936 = vmatmul.mubr.bf16.gmra.mrb[32].mxu1 %v4609_v42 }
 0x11c   : > { %945 = vmatprep.mubr.bf16.mxu1 %v4269_v0 }
 0x11e   : > { %2096 = vmatpush1.bf16.msra.mxu1 %v3860_v20 }
 0x11f   : > { %2097 = vmatprep.subr.bf16.mxu1 %v3865_v21 }
 0x121   : > { %793 = vmatmul.mubr.bf16.gmra.mrb[36].mxu0 %v4634_v60 }
 0x122   : > { %802 = vmatprep.mubr.bf16.mxu0 %v4269_v0  ;;  %2098 = vmatpush1.bf16.msra.mxu1 %v3863_v34 }
 0x123   : > { %2099 = vmatprep.subr.bf16.mxu1 %v3868_v44  ;;  %946 = vmatmul.mubr.bf16.gmra.mrb[36].mxu1 %v4614_v47 }
 0x124   : > { %955 = vmatprep.mubr.bf16.mxu1 %v4269_v0 }
 0x129   : > { %803 = vmatmul.mubr.bf16.gmra.mrb[40].mxu0 %v4639_v61 }
 0x12a   : > { %812 = vmatprep.mubr.bf16.mxu0 %v4269_v0 }
 0x12b   : > { %956 = vmatmul.mubr.bf16.gmra.mrb[40].mxu1 %v4619_v52 }
 0x12c   : > { %965 = vmatprep.mubr.bf16.mxu1 %v4269_v0 }
 0x131   : > { %813 = vmatmul.mubr.bf16.gmra.mrb[44].mxu0 %v4644_v1 }
 0x133   : > { %966 = vmatmul.mubr.bf16.gmra.mrb[44].mxu1 %v4624_v57 }
 0x134   : > { %975 = vmatprep.mubr.bf16.mxu1 %v4269_v0 }
 0x13b   : > { %976 = vmatmul.mubr.bf16.gmra.mrb[48].mxu1 %v4629_v59 }
 0x13c   : > { %985 = vmatprep.mubr.bf16.mxu1 %v4269_v0 }
 0x143   : > { %986 = vmatmul.mubr.bf16.gmra.mrb[52].mxu1 %v4634_v60 }
 0x144   : > { %995 = vmatprep.mubr.bf16.mxu1 %v4269_v0 }
 0x14b   : > { %996 = vmatmul.mubr.bf16.gmra.mrb[56].mxu1 %v4639_v61 }
 0x14c   : > { %1005 = vmatprep.mubr.bf16.mxu1 %v4269_v0 }
 0x153   : > { %1006 = vmatmul.mubr.bf16.gmra.mrb[60].mxu1 %v4644_v1 }
 0x154   : > { %1015 = vmatprep.mubr.bf16.mxu1 %v4269_v0 }
 0x15b   : > { %1016 = vmatmul.mubr.bf16.gmra.mrb[64].mxu1 %v4572_v19  ;;  %v3878_v19 = vld [vmem:[#allocation8 + $0xd0] ss:$8 sps:$4 sm:$0xff]  }
 0x15c   : > { %1025 = vmatprep.mubr.bf16.mxu1 %v4269_v0 }
 0x163   : > { %1026 = vmatmul.mubr.bf16.gmra.mrb[68].mxu1 %v4582_v25  ;;  %v3881_v25 = vld [vmem:[#allocation8 + $0xe0] ss:$8 sps:$4 sm:$0xff]  }
 0x164   : > { %1035 = vmatprep.mubr.bf16.mxu1 %v4269_v0 }
 0x16b   : > { %1036 = vmatmul.mubr.bf16.gmra.mrb[72].mxu1 %v4592_v31  ;;  %v3884_v31 = vld [vmem:[#allocation8 + $0xf0] ss:$8 sps:$4 sm:$0xff]  }
 0x16c   : > { %1045 = vmatprep.mubr.bf16.mxu1 %v4269_v0 }
 0x173   : > { %1046 = vmatmul.mubr.bf16.gmra.mrb[76].mxu1 %v4602_v37 }
 0x1ac   : > { %v704_v26 = vpop.f32.mrb[0].mxu0  ;;  %v4649_v27 = vpop.f32.mrb[0].mxu1 }
 0x1ad   : > { %v706_v30 = vpop.f32.mrb[1].mxu0  ;;  %v4652_v32 = vpop.f32.mrb[1].mxu1 }
 0x1ae   : > { %v708_v33 = vpop.f32.mrb[2].mxu0  ;;  %v4655_v18 = vpop.f32.mrb[2].mxu1 }
 0x1af   : > { %v1152_v35 = vpack.c.bf16 %v708_v33, %v704_v26  ;;  %v710_v38 = vpop.f32.mrb[3].mxu0  ;;  %v1176_v39 = vpack.c.bf16 %v4655_v18, %v4649_v27  ;;  %v4659_v40 = vpop.f32.mrb[3].mxu1  ;;  %v3886_v27 = vld [vmem:[#allocation8 + $0xf4] ss:$8 sps:$4 sm:$0xff]  }
 0x1b0   : > { %v1153_v41 = vpack.c.bf16 %v710_v38, %v706_v30  ;;  %v1177_v43 = vpack.c.bf16 %v4659_v40, %v4652_v32  ;;  %v3883_v32 = vld [vmem:[#allocation8 + $0xe4] ss:$8 sps:$4 sm:$0xff]  }
 0x1b2   : > { %1408 = vmatprep.mubr.bf16.mxu0 %v1153_v41 }
 0x1b3   : > { %1409 = vmatmul.mubr.bf16.vlgmr.msra.gmra.mrb[48].mxu0 %v1152_v35 }
 0x1b4   : > { %v714_v46 = vpop.f32.mrb[4].mxu0  ;;  %v4663_v48 = vpop.f32.mrb[4].mxu1 }
 0x1b5   : > { %v716_v49 = vpop.f32.mrb[5].mxu0  ;;  %v4666_v50 = vpop.f32.mrb[5].mxu1 }
 0x1b6   : > { %v718_v51 = vpop.f32.mrb[6].mxu0  ;;  %v4669_v53 = vpop.f32.mrb[6].mxu1 }
 0x1b7   : > { %v1154_v55 = vpack.c.bf16 %v718_v51, %v714_v46  ;;  %v720_v56 = vpop.f32.mrb[7].mxu0  ;;  %v1178_v58 = vpack.c.bf16 %v4669_v53, %v4663_v48  ;;  %v4673_v62 = vpop.f32.mrb[7].mxu1  ;;  %v3866_v46 = vld [vmem:[#allocation8 + $0x90] ss:$8 sps:$4 sm:$0xff]  }
 0x1b8   : > { %v1155_v28 = vpack.c.bf16 %v720_v56, %v716_v49  ;;  %v1179_v2 = vpack.c.bf16 %v4673_v62, %v4666_v50  ;;  %v3871_v49 = vld [vmem:[#allocation8 + $0xa4] ss:$8 sps:$4 sm:$0xff]   ;;  %2100 = vmatpush1.bf16.msra.mxu1 %v3866_v46  ;;  %v3869_v56 = vld [vmem:[#allocation8 + $0xa0] ss:$8 sps:$4 sm:$0xff]  }
 0x1b9   : > { %2101 = vmatprep.subr.bf16.mxu1 %v3871_v49 }
 0x1ba   : > { %1418 = vmatprep.mubr.bf16.mxu0 %v1155_v28 }
 0x1bb   : > { %1419 = vmatmul.mubr.bf16.gmra.mrb[52].mxu0 %v1154_v55 }
 0x1bc   : > { %v724_v5 = vpop.f32.mrb[8].mxu0  ;;  %v4677_v6 = vpop.f32.mrb[8].mxu1  ;;  %2102 = vmatpush1.bf16.msra.mxu1 %v3869_v56 }
 0x1bd   : > { %v726_v7 = vpop.f32.mrb[9].mxu0  ;;  %v4680_v8 = vpop.f32.mrb[9].mxu1  ;;  %2103 = vmatprep.subr.bf16.mxu1 %v3874_v3 }
 0x1be   : > { %v728_v9 = vpop.f32.mrb[10].mxu0  ;;  %v4683_v10 = vpop.f32.mrb[10].mxu1 }
 0x1bf   : > { %v1156_v12 = vpack.c.bf16 %v728_v9, %v724_v5  ;;  %v730_v13 = vpop.f32.mrb[11].mxu0  ;;  %v1180_v14 = vpack.c.bf16 %v4683_v10, %v4677_v6  ;;  %v4687_v15 = vpop.f32.mrb[11].mxu1  ;;  %v3872_v5 = vld [vmem:[#allocation8 + $0xb0] ss:$8 sps:$4 sm:$0xff]  }
 0x1c0   : > { %v1157_v36 = vpack.c.bf16 %v730_v13, %v726_v7  ;;  %v1181_v17 = vpack.c.bf16 %v4687_v15, %v4680_v8  ;;  %2104 = vmatpush1.bf16.msra.mxu1 %v3872_v5 }
 0x1c2   : > { %1428 = vmatprep.mubr.bf16.mxu0 %v1157_v36 }
 0x1c3   : > { %1429 = vmatmul.mubr.bf16.gmra.mrb[56].mxu0 %v1156_v12 }
 0x1c4   : > { %v734_v22 = vpop.f32.mrb[12].mxu0  ;;  %v4691_v23 = vpop.f32.mrb[12].mxu1 }
 0x1c5   : > { %v736_v26 = vpop.f32.mrb[13].mxu0  ;;  %v4694_v29 = vpop.f32.mrb[13].mxu1 }
 0x1c6   : > { %v738_v30 = vpop.f32.mrb[14].mxu0  ;;  %v4697_v33 = vpop.f32.mrb[14].mxu1 }
 0x1c7   : > { %v1158_v35 = vpack.c.bf16 %v738_v30, %v734_v22  ;;  %v740_v38 = vpop.f32.mrb[15].mxu0  ;;  %v1182_v24 = vpack.c.bf16 %v4697_v33, %v4691_v23  ;;  %v4701_v41 = vpop.f32.mrb[15].mxu1 }
 0x1c8   : > { %v1159_v42 = vpack.c.bf16 %v740_v38, %v736_v26  ;;  %v1183_v45 = vpack.c.bf16 %v4701_v41, %v4694_v29  ;;  %v3887_v41 = vld [vmem:[#allocation10 + $0x40] sm:$0xff]  }
 0x1c9   : > { %3421 = vmatprep.subr.bf16.mxu0 %v3887_v41 }
 0x1ca   : > { %1438 = vmatprep.mubr.bf16.mxu0 %v1159_v42 }
 0x1cb   : > { %1439 = vmatmul.mubr.bf16.gmra.mrb[60].mxu0 %v1158_v35 }
 0x1cc   : > { %v744_v51 = vpop.f32.mrb[16].mxu0 }
 0x1cd   : > { %v746_v54 = vpop.f32.mrb[17].mxu0  ;;  %v897_v18 = vpop.f32.mrb[16].mxu1 }
 0x1ce   : > { %v748_v55 = vpop.f32.mrb[18].mxu0  ;;  %v1056_v40 = vmax.f32 %v897_v18, 0.0 }
 0x1cf   : > { %v1160_v63 = vpack.c.bf16 %v748_v55, %v744_v51  ;;  %v750_v28 = vpop.f32.mrb[19].mxu0 }
 0x1d0   : > { %v1161_v4 = vpack.c.bf16 %v750_v28, %v746_v54 }
 0x1d2   : > { %1448 = vmatprep.mubr.bf16.mxu0 %v1161_v4 }
 0x1d3   : > { %1449 = vmatmul.mubr.bf16.gmra.mrb[64].mxu0 %v1160_v63 }
 0x1d4   : > { %v754_v7 = vpop.f32.mrb[20].mxu0 }
 0x1d5   : > { %v756_v47 = vpop.f32.mrb[21].mxu0 }
 0x1d6   : > { %v758_v9 = vpop.f32.mrb[22].mxu0 }
 0x1d7   : > { %v1162_v11 = vpack.c.bf16 %v758_v9, %v754_v7  ;;  %v760_v12 = vpop.f32.mrb[23].mxu0 }
 0x1d8   : > { %v1163_v13 = vpack.c.bf16 %v760_v12, %v756_v47 }
 0x1da   : > { %1458 = vmatprep.mubr.bf16.mxu0 %v1163_v13  ;;  %v3875_v13 = vld [vmem:[#allocation8 + $0xc0] ss:$8 sps:$4 sm:$0xff]  }
 0x1db   : > { %1459 = vmatmul.mubr.bf16.gmra.mrb[68].mxu0 %v1162_v11 }
 0x1dc   : > { %v764_v16 = vpop.f32.mrb[24].mxu0 }
 0x1dd   : > { %v766_v36 = vpop.f32.mrb[25].mxu0 }
 0x1de   : > { %v768_v20 = vpop.f32.mrb[26].mxu0 }
 0x1df   : > { %v1164_v21 = vpack.c.bf16 %v768_v20, %v764_v16  ;;  %v770_v22 = vpop.f32.mrb[27].mxu0  ;;  %v3877_v16 = vld [vmem:[#allocation8 + $0xc4] ss:$8 sps:$4 sm:$0xff]  }
 0x1e0   : > { %v1165_v52 = vpack.c.bf16 %v770_v22, %v766_v36  ;;  %2105 = vmatprep.subr.bf16.mxu1 %v3877_v16 }
 0x1e1   : > { %2106 = vmatpush1.bf16.msra.mxu1 %v3875_v13 }
 0x1e2   : > { %1468 = vmatprep.mubr.bf16.mxu0 %v1165_v52 }
 0x1e3   : > { %1469 = vmatmul.mubr.bf16.gmra.mrb[72].mxu0 %v1164_v21  ;;  %v3880_v21 = vld [vmem:[#allocation8 + $0xd4] ss:$8 sps:$4 sm:$0xff]  }
 0x1e4   : > { %v774_v26 = vpop.f32.mrb[28].mxu0  ;;  %2107 = vmatprep.subr.bf16.mxu1 %v3880_v21 }
 0x1e5   : > { %v776_v30 = vpop.f32.mrb[29].mxu0  ;;  %2108 = vmatpush1.bf16.msra.mxu1 %v3878_v19 }
 0x1e6   : > { %v778_v34 = vpop.f32.mrb[30].mxu0  ;;  %2109 = vmatprep.subr.bf16.mxu1 %v3883_v32 }
 0x1e7   : > { %v1166_v35 = vpack.c.bf16 %v778_v34, %v774_v26  ;;  %v780_v38 = vpop.f32.mrb[31].mxu0 }
 0x1e8   : > { %v1167_v44 = vpack.c.bf16 %v780_v38, %v776_v30 }
 0x1e9   : > { %2110 = vmatpush1.bf16.msra.mxu1 %v3881_v25 }
 0x1ea   : > { %1478 = vmatprep.mubr.bf16.mxu0 %v1167_v44  ;;  %2111 = vmatprep.subr.bf16.mxu1 %v3886_v27 }
 0x1eb   : > { %1479 = vmatmul.mubr.bf16.gmra.mrb[76].mxu0 %v1166_v35 }
 0x1ec   : > { %v784_v57 = vpop.f32.mrb[32].mxu0 }
 0x1ed   : > { %v786_v42 = vpop.f32.mrb[33].mxu0  ;;  %2112 = vmatpush1.bf16.msra.mxu1 %v3884_v31 }
 0x1ee   : > { %v788_v46 = vpop.f32.mrb[34].mxu0 }
 0x1ef   : > { %v1168_v49 = vpack.c.bf16 %v788_v46, %v784_v57  ;;  %v790_v51 = vpop.f32.mrb[35].mxu0 }
 0x1f0   : > { %v1169_v54 = vpack.c.bf16 %v790_v51, %v786_v42 }
 0x1f2   : > { %1488 = vmatprep.mubr.bf16.mxu0 %v1169_v54 }
 0x1f3   : > { %1489 = vmatmul.mubr.bf16.gmra.mrb[80].mxu0 %v1168_v49 }
 0x1f4   : > { %v794_v59 = vpop.f32.mrb[36].mxu0 }
 0x1f5   : > { %v796_v55 = vpop.f32.mrb[37].mxu0 }
 0x1f6   : > { %v798_v56 = vpop.f32.mrb[38].mxu0 }
 0x1f7   : > { %v1170_v63 = vpack.c.bf16 %v798_v56, %v794_v59  ;;  %v800_v28 = vpop.f32.mrb[39].mxu0 }
 0x1f8   : > { %v1171_v3 = vpack.c.bf16 %v800_v28, %v796_v55 }
 0x1fa   : > { %1498 = vmatprep.mubr.bf16.mxu0 %v1171_v3 }
 0x1fb   : > { %1499 = vmatmul.mubr.bf16.gmra.mrb[84].mxu0 %v1170_v63 }
 0x1fc   : > { %v804_v60 = vpop.f32.mrb[40].mxu0 }
 0x1fd   : > { %v806_v4 = vpop.f32.mrb[41].mxu0 }
 0x1fe   : > { %v808_v5 = vpop.f32.mrb[42].mxu0 }
 0x1ff   : > { %v1172_v7 = vpack.c.bf16 %v808_v5, %v804_v60  ;;  %v810_v47 = vpop.f32.mrb[43].mxu0 }
 0x200   : > { %v1173_v9 = vpack.c.bf16 %v810_v47, %v806_v4  ;;  %v3890_v47 = vld [vmem:[#allocation10 + $0x8] sm:$0xff]  }
 0x202   : > { %1508 = vmatprep.mubr.bf16.mxu0 %v1173_v9 }
 0x203   : > { %1509 = vmatmul.mubr.bf16.gmra.mrb[88].mxu0 %v1172_v7  ;;  %v3889_v7 = vld [vmem:[#allocation10 + $0x48] sm:$0xff]  }
 0x204   : > { %v814_v61 = vpop.f32.mrb[44].mxu0 }
 0x205   : > { %v816_v11 = vpop.f32.mrb[45].mxu0 }
 0x206   : > { %v818_v12 = vpop.f32.mrb[46].mxu0 }
 0x207   : > { %v1174_v36 = vpack.c.bf16 %v818_v12, %v814_v61  ;;  %v820_v1 = vpop.f32.mrb[47].mxu0 }
 0x208   : > { %v1175_v20 = vpack.c.bf16 %v820_v1, %v816_v11 }
 0x20a   : > { %1518 = vmatprep.mubr.bf16.mxu0 %v1175_v20 }
 0x20b   : > { %1519 = vmatmul.mubr.bf16.gmra.mrb[92].mxu0 %v1174_v36 }
 0x20c   : > { %1528 = vmatprep.mubr.bf16.mxu0 %v1177_v43 }
 0x213   : > { %1529 = vmatmul.mubr.bf16.gmra.mrb[96].mxu0 %v1176_v39  ;;  %v899_v39 = vpop.f32.mrb[17].mxu1 }
 0x214   : > { %1538 = vmatprep.mubr.bf16.mxu0 %v1179_v2  ;;  %v1057_v37 = vmax.f32 %v899_v39, 0.0  ;;  %v901_v43 = vpop.f32.mrb[18].mxu1 }
 0x215   : > { %v903_v48 = vpop.f32.mrb[19].mxu1  ;;  %v1058_v50 = vmax.f32 %v901_v43, 0.0 }
 0x216   : > { %v1059_v53 = vmax.f32 %v903_v48, 0.0  ;;  %v907_v2 = vpop.f32.mrb[20].mxu1 }
 0x217   : > { %v909_v6 = vpop.f32.mrb[21].mxu1  ;;  %v1060_v8 = vmax.f32 %v907_v2, 0.0 }
 0x218   : > { %v4752_v62 = vpack.c.bf16 %v1059_v53, %v1057_v37  ;;  %v1061_v10 = vmax.f32 %v909_v6, 0.0 }
 0x21b   : > { %1539 = vmatmul.mubr.bf16.gmra.mrb[100].mxu0 %v1178_v58  ;;  %v4750_v58 = vpack.c.bf16 %v1058_v50, %v1056_v40 }
 0x21c   : > { %1548 = vmatprep.mubr.bf16.mxu0 %v1181_v17 }
 0x223   : > { %1549 = vmatmul.mubr.bf16.gmra.mrb[104].mxu0 %v1180_v14  ;;  %v911_v14 = vpop.f32.mrb[22].mxu1 }
 0x224   : > { %1558 = vmatprep.mubr.bf16.mxu0 %v1183_v45  ;;  %v913_v15 = vpop.f32.mrb[23].mxu1  ;;  %v1062_v17 = vmax.f32 %v911_v14, 0.0  ;;  %v3888_v45 = vld [vmem:[#allocation10] sm:$0xff]  }
 0x225   : > { %v1063_v23 = vmax.f32 %v913_v15, 0.0  ;;  %v917_v52 = vpop.f32.mrb[24].mxu1  ;;  %3422 = vmatpush3.bf16.msra.mxu0 %v3888_v45 }
 0x226   : > { %v4754_v29 = vpack.c.bf16 %v1062_v17, %v1060_v8  ;;  %v1064_v30 = vmax.f32 %v917_v52, 0.0  ;;  %v919_v34 = vpop.f32.mrb[25].mxu1  ;;  %3423 = vmatprep.subr.bf16.mxu0 %v3889_v7  ;;  %v3892_v7 = vld [vmem:[#allocation10 + $0x10] sm:$0xff]  }
 0x227   : > { %v4756_v33 = vpack.c.bf16 %v1063_v23, %v1061_v10  ;;  %v1065_v44 = vmax.f32 %v919_v34, 0.0  ;;  %v921_v57 = vpop.f32.mrb[26].mxu1 }
 0x228   : > { %v1066_v46 = vmax.f32 %v921_v57, 0.0  ;;  %v923_v49 = vpop.f32.mrb[27].mxu1 }
 0x229   : > { %v1067_v54 = vmax.f32 %v923_v49, 0.0  ;;  %v927_v5 = vpop.f32.mrb[28].mxu1  ;;  %3424 = vmatpush3.bf16.msra.mxu0 %v3890_v47  ;;  %v3893_v47 = vld [vmem:[#allocation10 + $0x58] sm:$0xff]  }
 0x22a   : > { %v4764_v55 = vpack.c.bf16 %v1066_v46, %v1064_v30  ;;  %v1068_v11 = vmax.f32 %v927_v5, 0.0  ;;  %v929_v12 = vpop.f32.mrb[29].mxu1  ;;  %v3891_v5 = vld [vmem:[#allocation10 + $0x50] sm:$0xff]  }
 0x22b   : > { %1559 = vmatmul.mubr.bf16.gmra.mrb[108].mxu0 %v1182_v24  ;;  %v4767_v63 = vpack.c.bf16 %v1067_v54, %v1065_v44  ;;  %v931_v1 = vpop.f32.mrb[30].mxu1  ;;  %v1069_v27 = vmax.f32 %v929_v12, 0.0  ;;  %3425 = vmatprep.subr.bf16.mxu0 %v3891_v5 }
 0x22c   : > { %v1070_v21 = vmax.f32 %v931_v1, 0.0  ;;  %v933_v32 = vpop.f32.mrb[31].mxu1 }
 0x22d   : > { %v1071_v43 = vmax.f32 %v933_v32, 0.0  ;;  %v937_v8 = vpop.f32.mrb[32].mxu1  ;;  %3426 = vmatpush3.bf16.msra.mxu0 %v3892_v7 }
 0x22e   : > { %v4780_v40 = vpack.c.bf16 %v1070_v21, %v1068_v11  ;;  %v1072_v15 = vmax.f32 %v937_v8, 0.0  ;;  %v939_v17 = vpop.f32.mrb[33].mxu1  ;;  %3427 = vmatprep.subr.bf16.mxu0 %v3893_v47 }
 0x22f   : > { %v4785_v6 = vpack.c.bf16 %v1071_v43, %v1069_v27  ;;  %v941_v45 = vpop.f32.mrb[34].mxu1  ;;  %v1073_v44 = vmax.f32 %v939_v17, 0.0  ;;  %v3894_v43 = vld [vmem:[#allocation10 + $0x18] sm:$0xff]  }
 0x230   : > { %v943_v30 = vpop.f32.mrb[35].mxu1 }
 0x231   : > { %v1075_v54 = vmax.f32 %v943_v30, 0.0  ;;  %3428 = vmatpush3.bf16.msra.mxu0 %v3894_v43 }
 0x286   : > { %v1410_v24 = vpop.f32.mrb[48].mxu0 }
 0x287   : > { %v1412_v22 = vpop.f32.mrb[49].mxu0 }
 0x288   : > { %v1414_v26 = vpop.f32.mrb[50].mxu0 }
 0x289   : > { %v4758_v35 = vpack.c.bf16 %v1414_v26, %v1410_v24  ;;  %v1416_v38 = vpop.f32.mrb[51].mxu0  ;;  %v1074_v26 = vmax.f32 %v941_v45, 0.0 }
 0x28a   : > { %v4760_v42 = vpack.c.bf16 %v1416_v38, %v1412_v22 }
 0x28b   : > { %v1633_v51 = vmul.bf16 1027030327, %v4758_v35  ;;  %v4796_v49 = vpack.c.bf16 %v1074_v26, %v1072_v15  ;;  %v3896_v26 = vld [vmem:[#allocation10 + $0x20] sm:$0xff]  }
 0x28c   : > { %v1634_v59 = vmul.bf16 1027030327, %v4760_v42  ;;  %v1602_v12 = vmul.bf16 1056980736, %v4760_v42 }
 0x28d   : > { %v1665_v56 = vmul.bf16 %v1633_v51, %v4758_v35 }
 0x28e   : > { %v1666_v28 = vmul.bf16 %v1634_v59, %v4760_v42  ;;  %v1420_v3 = vpop.f32.mrb[52].mxu0 }
 0x28f   : > { %v1697_v60 = vmul.bf16 %v1665_v56, %v4758_v35  ;;  %v1422_v4 = vpop.f32.mrb[53].mxu0 }
 0x290   : > { %v1424_v9 = vpop.f32.mrb[54].mxu0  ;;  %v1698_v61 = vmul.bf16 %v1666_v28, %v4760_v42 }
 0x291   : > { %v1729_v13 = vadd.bf16 %v1697_v60, %v4758_v35  ;;  %v4773_v16 = vpack.c.bf16 %v1424_v9, %v1420_v3  ;;  %v1426_v36 = vpop.f32.mrb[55].mxu0  ;;  %v4801_v60 = vpack.c.bf16 %v1075_v54, %v1073_v44 }
 0x292   : > { %v4775_v20 = vpack.c.bf16 %v1426_v36, %v1422_v4  ;;  %v1730_v19 = vadd.bf16 %v1698_v61, %v4760_v42  ;;  %v947_v4 = vpop.f32.mrb[36].mxu1  ;;  %v1601_v61 = vmul.bf16 1056980736, %v4758_v35 }
 0x293   : > { %v1761_v25 = vmul.bf16 1061961548, %v1729_v13  ;;  %v1635_v31 = vmul.bf16 1027030327, %v4773_v16  ;;  %v949_v36 = vpop.f32.mrb[37].mxu1 }
 0x294   : > { %v1636_v18 = vmul.bf16 1027030327, %v4775_v20  ;;  %v1762_v39 = vmul.bf16 1061961548, %v1730_v19  ;;  %v951_v27 = vpop.f32.mrb[38].mxu1 }
 0x295   : > { %3911 = vtanh.bf16 %v1761_v25  ;;  %v1667_v37 = vmul.bf16 %v1635_v31, %v4773_v16  ;;  %v1076_v31 = vmax.f32 %v947_v4, 0.0  ;;  %v953_v42 = vpop.f32.mrb[39].mxu1  ;;  %v1604_v54 = vmul.bf16 1056980736, %v4775_v20 }
 0x296   : > { %v1668_v48 = vmul.bf16 %v1636_v18, %v4775_v20  ;;  %v1430_v50 = vpop.f32.mrb[56].mxu0  ;;  %3913 = vtanh.bf16 %v1762_v39  ;;  %v957_v44 = vpop.f32.mrb[40].mxu1 }
 0x297   : > { %v1432_v53 = vpop.f32.mrb[57].mxu0  ;;  %v1699_v2 = vmul.bf16 %v1667_v37, %v4773_v16  ;;  %v1078_v37 = vmax.f32 %v951_v27, 0.0 }
 0x298   : > { %v1434_v10 = vpop.f32.mrb[58].mxu0  ;;  %v1700_v14 = vmul.bf16 %v1668_v48, %v4775_v20 }
 0x299   : > { %v4788_v23 = vpack.c.bf16 %v1434_v10, %v1430_v50  ;;  %v1436_v24 = vpop.f32.mrb[59].mxu0  ;;  %v1731_v41 = vadd.bf16 %v1699_v2, %v4773_v16  ;;  %v3895_v2 = vld [vmem:[#allocation10 + $0x60] sm:$0xff]  }
 0x29a   : > { %v4791_v22 = vpack.c.bf16 %v1436_v24, %v1432_v53  ;;  %v1732_v52 = vadd.bf16 %v1700_v14, %v4775_v20  ;;  %v1077_v53 = vmax.f32 %v949_v36, 0.0  ;;  %v4815_v24 = vpack.c.bf16 %v1078_v37, %v1076_v31  ;;  %3429 = vmatprep.subr.bf16.mxu0 %v3895_v2 }
 0x29b   : > { %v1637_v34 = vmul.bf16 1027030327, %v4788_v23  ;;  %v1763_v38 = vmul.bf16 1061961548, %v1731_v41  ;;  %v1079_v41 = vmax.f32 %v953_v42, 0.0  ;;  %3430 = vmatpush3.bf16.msra.mxu0 %v3896_v26 }
 0x29c   : > { %v1638_v57 = vmul.bf16 1027030327, %v4791_v22  ;;  %v1764_v46 = vmul.bf16 1061961548, %v1732_v52 }
 0x29d   : > { %v1669_v51 = vmul.bf16 %v1637_v34, %v4788_v23  ;;  %3915 = vtanh.bf16 %v1763_v38  ;;  %v4819_v38 = vpack.c.bf16 %v1079_v41, %v1077_v53  ;;  %v3900_v53 = vld [vmem:[#allocation10 + $0x30] sm:$0xff]  }
 0x29e   : > { %v1670_v59 = vmul.bf16 %v1638_v57, %v4791_v22  ;;  %v1440_v56 = vpop.f32.mrb[60].mxu0  ;;  %3917 = vtanh.bf16 %v1764_v46  ;;  %v3897_v57 = vld [vmem:[#allocation10 + $0x68] sm:$0xff]  }
 0x29f   : > { %v1442_v28 = vpop.f32.mrb[61].mxu0  ;;  %v1701_v3 = vmul.bf16 %v1669_v51, %v4788_v23  ;;  %3431 = vmatprep.subr.bf16.mxu0 %v3897_v57 }
 0x2a0   : > { %v3912_v9 = vpop.eup %3911  ;;  %v1444_v11 = vpop.f32.mrb[62].mxu0  ;;  %v1702_v13 = vmul.bf16 %v1670_v59, %v4791_v22  ;;  %v1603_v59 = vmul.bf16 1056980736, %v4773_v16  ;;  %v3898_v16 = vld [vmem:[#allocation10 + $0x28] sm:$0xff]  }
 0x2a1   : > { %v3914_v1 = vpop.eup %3913  ;;  %v4806_v19 = vpack.c.bf16 %v1444_v11, %v1440_v56  ;;  %v1446_v21 = vpop.f32.mrb[63].mxu0  ;;  %v1825_v32 = vadd.bf16 1065369472, %v3912_v9  ;;  %v1733_v25 = vadd.bf16 %v1701_v3, %v4788_v23  ;;  %v1080_v9 = vmax.f32 %v957_v44, 0.0  ;;  %3432 = vmatpush3.bf16.msra.mxu0 %v3898_v16 }
 0x2a2   : > { %v4809_v18 = vpack.c.bf16 %v1446_v21, %v1442_v28  ;;  %v1826_v39 = vadd.bf16 1065369472, %v3914_v1  ;;  %v1734_v35 = vadd.bf16 %v1702_v13, %v4791_v22  ;;  %v959_v28 = vpop.f32.mrb[41].mxu1 }
 0x2a3   : > { %v1639_v48 = vmul.bf16 1027030327, %v4806_v19  ;;  %v1765_v50 = vmul.bf16 1061961548, %v1733_v25  ;;  %v1857_v14 = vmul.bf16 %v1825_v32, %v1601_v61  ;;  %v961_v61 = vpop.f32.mrb[42].mxu1  ;;  %v1081_v32 = vmax.f32 %v959_v28, 0.0 }
 0x2a4   : > { %v1640_v8 = vmul.bf16 1027030327, %v4809_v18  ;;  %v1858_v10 = vmul.bf16 %v1826_v39, %v1602_v12  ;;  %v1766_v15 = vmul.bf16 1061961548, %v1734_v35  ;;  %v1082_v20 = vmax.f32 %v961_v61, 0.0  ;;  %v963_v36 = vpop.f32.mrb[43].mxu1 }
 0x2a5   : > { %v1671_v17 = vmul.bf16 %v1639_v48, %v4806_v19  ;;  %3919 = vtanh.bf16 %v1765_v50  ;;  %v3899_v25 = vld [vmem:[#allocation10 + $0x70] sm:$0xff]   ;;  %v1083_v43 = vmax.f32 %v963_v36, 0.0 }
 0x2a6   : > { %v1672_v45 = vmul.bf16 %v1640_v8, %v4809_v18  ;;  %v1450_v52 = vpop.f32.mrb[64].mxu0  ;;  %2113 = vmatprep.mubr.bf16.mxu1 %v1858_v10  ;;  %3921 = vtanh.bf16 %v1766_v15  ;;  %v4833_v42 = vpack.c.bf16 %v1082_v20, %v1080_v9  ;;  %3433 = vmatprep.subr.bf16.mxu0 %v3899_v25  ;;  %v3901_v15 = vld [vmem:[#allocation10 + $0x78] sm:$0xff]  }
 0x2a7   : > { %v1452_v30 = vpop.f32.mrb[65].mxu0  ;;  %2114 = vmatmul.mubr.bf16.vlgmr.msra.gmra.mrb[80].mxu1 %v1857_v14  ;;  %v1703_v34 = vmul.bf16 %v1671_v17, %v4806_v19  ;;  %v4837_v10 = vpack.c.bf16 %v1083_v43, %v1081_v32  ;;  %v967_v14 = vpop.f32.mrb[44].mxu1  ;;  %3434 = vmatpush3.bf16.msra.mxu0 %v3900_v53  ;;  %v1608_v43 = vmul.bf16 1056980736, %v4809_v18 }
 0x2a8   : > { %v3916_v46 = vpop.eup %3915  ;;  %v1454_v51 = vpop.f32.mrb[66].mxu0  ;;  %v1704_v56 = vmul.bf16 %v1672_v45, %v4809_v18  ;;  %v1606_v45 = vmul.bf16 1056980736, %v4791_v22  ;;  %3435 = vmatprep.subr.bf16.mxu0 %v3901_v15 }
 0x2a9   : > { %v3918_v3 = vpop.eup %3917  ;;  %v4824_v4 = vpack.c.bf16 %v1454_v51, %v1450_v52  ;;  %v1456_v5 = vpop.f32.mrb[67].mxu0  ;;  %v1827_v7 = vadd.bf16 1065369472, %v3916_v46  ;;  %v1735_v47 = vadd.bf16 %v1703_v34, %v4806_v19  ;;  %v1605_v52 = vmul.bf16 1056980736, %v4788_v23  ;;  %v3902_v23 = vld [vmem:[#allocation10 + $0x38] sm:$0xff]  }
 0x2aa   : > { %v4827_v11 = vpack.c.bf16 %v1456_v5, %v1452_v30  ;;  %v1828_v12 = vadd.bf16 1065369472, %v3918_v3  ;;  %v1736_v13 = vadd.bf16 %v1704_v56, %v4809_v18  ;;  %v969_v30 = vpop.f32.mrb[45].mxu1 }
 0x2ab   : > { %v1641_v1 = vmul.bf16 1027030327, %v4824_v4  ;;  %v1767_v21 = vmul.bf16 1061961548, %v1735_v47  ;;  %v1859_v39 = vmul.bf16 %v1827_v7, %v1603_v59  ;;  %v971_v59 = vpop.f32.mrb[46].mxu1  ;;  %v1085_v9 = vmax.f32 %v969_v30, 0.0  ;;  %3436 = vmatpush3.bf16.msra.mxu0 %v3902_v23 }
 0x2ac   : > { %v1642_v31 = vmul.bf16 1027030327, %v4827_v11  ;;  %v1860_v27 = vmul.bf16 %v1828_v12, %v1604_v54  ;;  %v1768_v35 = vmul.bf16 1061961548, %v1736_v13  ;;  %v1084_v54 = vmax.f32 %v967_v14, 0.0  ;;  %v973_v5 = vpop.f32.mrb[47].mxu1 }
 0x2ad   : > { %v1673_v37 = vmul.bf16 %v1641_v1, %v4824_v4  ;;  %3923 = vtanh.bf16 %v1767_v21  ;;  %v1086_v22 = vmax.f32 %v971_v59, 0.0  ;;  %v1087_v1 = vmax.f32 %v973_v5, 0.0 }
 0x2ae   : > { %v1674_v48 = vmul.bf16 %v1642_v31, %v4827_v11  ;;  %v1460_v50 = vpop.f32.mrb[68].mxu0  ;;  %2123 = vmatprep.mubr.bf16.mxu1 %v1860_v27  ;;  %3925 = vtanh.bf16 %v1768_v35 }
 0x2af   : > { %v1462_v2 = vpop.f32.mrb[69].mxu0  ;;  %2124 = vmatmul.mubr.bf16.gmra.mrb[84].mxu1 %v1859_v39  ;;  %v1705_v8 = vmul.bf16 %v1673_v37, %v4824_v4  ;;  %v4851_v16 = vpack.c.bf16 %v1086_v22, %v1084_v54  ;;  %v4855_v27 = vpack.c.bf16 %v1087_v1, %v1085_v9  ;;  %v977_v39 = vpop.f32.mrb[48].mxu1  ;;  %v1609_v1 = vmul.bf16 1056980736, %v4824_v4 }
 0x2b0   : > { %v3920_v17 = vpop.eup %3919  ;;  %v1464_v41 = vpop.f32.mrb[70].mxu0  ;;  %v1706_v26 = vmul.bf16 %v1674_v48, %v4827_v11  ;;  %v1607_v48 = vmul.bf16 1056980736, %v4806_v19 }
 0x2b1   : > { %v3922_v34 = vpop.eup %3921  ;;  %v4842_v44 = vpack.c.bf16 %v1464_v41, %v1460_v50  ;;  %v1466_v57 = vpop.f32.mrb[71].mxu0  ;;  %v1829_v46 = vadd.bf16 1065369472, %v3920_v17  ;;  %v1737_v51 = vadd.bf16 %v1705_v8, %v4824_v4  ;;  %v1088_v41 = vmax.f32 %v977_v39, 0.0 }
 0x2b2   : > { %v4845_v56 = vpack.c.bf16 %v1466_v57, %v1462_v2  ;;  %v1830_v28 = vadd.bf16 1065369472, %v3922_v34  ;;  %v1738_v3 = vadd.bf16 %v1706_v26, %v4827_v11  ;;  %v979_v53 = vpop.f32.mrb[49].mxu1 }
 0x2b3   : > { %v1643_v7 = vmul.bf16 1027030327, %v4842_v44  ;;  %v1769_v47 = vmul.bf16 1061961548, %v1737_v51  ;;  %v1861_v13 = vmul.bf16 %v1829_v46, %v1605_v52  ;;  %v1089_v46 = vmax.f32 %v979_v53, 0.0 }
 0x2b4   : > { %v1644_v61 = vmul.bf16 1027030327, %v4845_v56  ;;  %v1862_v12 = vmul.bf16 %v1830_v28, %v1606_v45  ;;  %v1770_v20 = vmul.bf16 1061961548, %v1738_v3  ;;  %v981_v45 = vpop.f32.mrb[50].mxu1 }
 0x2b5   : > { %v1675_v36 = vmul.bf16 %v1643_v7, %v4842_v44  ;;  %3927 = vtanh.bf16 %v1769_v47  ;;  %v1090_v18 = vmax.f32 %v981_v45, 0.0  ;;  %v983_v34 = vpop.f32.mrb[51].mxu1 }
 0x2b6   : > { %v1676_v21 = vmul.bf16 %v1644_v61, %v4845_v56  ;;  %v1470_v32 = vpop.f32.mrb[72].mxu0  ;;  %2133 = vmatprep.mubr.bf16.mxu1 %v1862_v12  ;;  %3929 = vtanh.bf16 %v1770_v20  ;;  %v1091_v5 = vmax.f32 %v983_v34, 0.0  ;;  %v987_v12 = vpop.f32.mrb[52].mxu1 }
 0x2b7   : > { %v1472_v25 = vpop.f32.mrb[73].mxu0  ;;  %2134 = vmatmul.mubr.bf16.gmra.mrb[88].mxu1 %v1861_v13  ;;  %v1707_v31 = vmul.bf16 %v1675_v36, %v4842_v44  ;;  %v4869_v22 = vpack.c.bf16 %v1090_v18, %v1088_v41  ;;  %v1610_v36 = vmul.bf16 1056980736, %v4827_v11 }
 0x2b8   : > { %v3924_v35 = vpop.eup %3923  ;;  %v1474_v37 = vpop.f32.mrb[74].mxu0  ;;  %v1708_v50 = vmul.bf16 %v1676_v21, %v4845_v56  ;;  %v4873_v61 = vpack.c.bf16 %v1091_v5, %v1089_v46 }
 0x2b9   : > { %v3926_v2 = vpop.eup %3925  ;;  %v4860_v8 = vpack.c.bf16 %v1474_v37, %v1470_v32  ;;  %v1476_v14 = vpop.f32.mrb[75].mxu0  ;;  %v1831_v15 = vadd.bf16 1065369472, %v3924_v35  ;;  %v1739_v17 = vadd.bf16 %v1707_v31, %v4842_v44 }
 0x2ba   : > { %v4863_v52 = vpack.c.bf16 %v1476_v14, %v1472_v25  ;;  %v1832_v26 = vadd.bf16 1065369472, %v3926_v2  ;;  %v1740_v30 = vadd.bf16 %v1708_v50, %v4845_v56  ;;  %v989_v32 = vpop.f32.mrb[53].mxu1 }
 0x2bb   : > { %v1645_v19 = vmul.bf16 1027030327, %v4860_v8  ;;  %v1771_v57 = vmul.bf16 1061961548, %v1739_v17  ;;  %v1863_v59 = vmul.bf16 %v1831_v15, %v1607_v48  ;;  %v991_v48 = vpop.f32.mrb[54].mxu1  ;;  %v1093_v17 = vmax.f32 %v989_v32, 0.0 }
 0x2bc   : > { %v1646_v51 = vmul.bf16 1027030327, %v4863_v52  ;;  %v1864_v54 = vmul.bf16 %v1832_v26, %v1608_v43  ;;  %v1772_v28 = vmul.bf16 1061961548, %v1740_v30  ;;  %v1092_v43 = vmax.f32 %v987_v12, 0.0  ;;  %v993_v14 = vpop.f32.mrb[55].mxu1 }
 0x2bd   : > { %v1677_v3 = vmul.bf16 %v1645_v19, %v4860_v8  ;;  %3931 = vtanh.bf16 %v1771_v57  ;;  %v1094_v11 = vmax.f32 %v991_v48, 0.0  ;;  %v1095_v19 = vmax.f32 %v993_v14, 0.0 }
 0x2be   : > { %v1678_v23 = vmul.bf16 %v1646_v51, %v4863_v52  ;;  %v1480_v7 = vpop.f32.mrb[76].mxu0  ;;  %2143 = vmatprep.mubr.bf16.mxu1 %v1864_v54  ;;  %3933 = vtanh.bf16 %v1772_v28  ;;  %v997_v28 = vpop.f32.mrb[56].mxu1 }
 0x2bf   : > { %v1482_v47 = vpop.f32.mrb[77].mxu0  ;;  %2144 = vmatmul.mubr.bf16.gmra.mrb[92].mxu1 %v1863_v59  ;;  %v1709_v9 = vmul.bf16 %v1677_v3, %v4860_v8  ;;  %v4887_v34 = vpack.c.bf16 %v1094_v11, %v1092_v43  ;;  %v4891_v59 = vpack.c.bf16 %v1095_v19, %v1093_v17 }
 0x2c0   : > { %v3928_v13 = vpop.eup %3927  ;;  %v1484_v20 = vpop.f32.mrb[78].mxu0  ;;  %v1710_v21 = vmul.bf16 %v1678_v23, %v4863_v52  ;;  %v1612_v23 = vmul.bf16 1056980736, %v4845_v56 }
 0x2c1   : > { %v3930_v25 = vpop.eup %3929  ;;  %v4878_v31 = vpack.c.bf16 %v1484_v20, %v1480_v7  ;;  %v1486_v39 = vpop.f32.mrb[79].mxu0  ;;  %v1833_v35 = vadd.bf16 1065369472, %v3928_v13  ;;  %v1741_v37 = vadd.bf16 %v1709_v9, %v4860_v8  ;;  %v1611_v7 = vmul.bf16 1056980736, %v4842_v44 }
 0x2c2   : > { %v4881_v50 = vpack.c.bf16 %v1486_v39, %v1482_v47  ;;  %v1834_v53 = vadd.bf16 1065369472, %v3930_v25  ;;  %v1742_v2 = vadd.bf16 %v1710_v21, %v4863_v52  ;;  %v999_v9 = vpop.f32.mrb[57].mxu1  ;;  %v1096_v21 = vmax.f32 %v997_v28, 0.0 }
 0x2c3   : > { %v1647_v4 = vmul.bf16 1027030327, %v4878_v31  ;;  %v1773_v15 = vmul.bf16 1061961548, %v1741_v37  ;;  %v1865_v26 = vmul.bf16 %v1833_v35, %v1609_v1  ;;  %v1001_v32 = vpop.f32.mrb[58].mxu1  ;;  %v1097_v48 = vmax.f32 %v999_v9, 0.0 }
 0x2c4   : > { %v1648_v41 = vmul.bf16 1027030327, %v4881_v50  ;;  %v1866_v45 = vmul.bf16 %v1834_v53, %v1610_v36  ;;  %v1774_v30 = vmul.bf16 1061961548, %v1742_v2  ;;  %v1098_v56 = vmax.f32 %v1001_v32, 0.0  ;;  %v1003_v37 = vpop.f32.mrb[59].mxu1 }
 0x2c5   : > { %v1679_v18 = vmul.bf16 %v1647_v4, %v4878_v31  ;;  %3935 = vtanh.bf16 %v1773_v15  ;;  %v1099_v17 = vmax.f32 %v1003_v37, 0.0  ;;  %v1007_v19 = vpop.f32.mrb[60].mxu1 }
 0x2c6   : > { %v1680_v57 = vmul.bf16 %v1648_v41, %v4881_v50  ;;  %v1490_v46 = vpop.f32.mrb[80].mxu0  ;;  %2153 = vmatprep.mubr.bf16.mxu1 %v1866_v45  ;;  %3937 = vtanh.bf16 %v1774_v30  ;;  %v4905_v15 = vpack.c.bf16 %v1098_v56, %v1096_v21 }
 0x2c7   : > { %v1492_v51 = vpop.f32.mrb[81].mxu0  ;;  %2154 = vmatmul.mubr.bf16.gmra.mrb[96].mxu1 %v1865_v26  ;;  %v1711_v54 = vmul.bf16 %v1679_v18, %v4878_v31  ;;  %v4909_v18 = vpack.c.bf16 %v1099_v17, %v1097_v48 }
 0x2c8   : > { %v3932_v3 = vpop.eup %3931  ;;  %v1494_v5 = vpop.f32.mrb[82].mxu0  ;;  %v1712_v47 = vmul.bf16 %v1680_v57, %v4881_v50 }
 0x2c9   : > { %v3934_v12 = vpop.eup %3933  ;;  %v4896_v13 = vpack.c.bf16 %v1494_v5, %v1490_v46  ;;  %v1496_v20 = vpop.f32.mrb[83].mxu0  ;;  %v1835_v36 = vadd.bf16 1065369472, %v3932_v3  ;;  %v1743_v1 = vadd.bf16 %v1711_v54, %v4878_v31  ;;  %v1613_v54 = vmul.bf16 1056980736, %v4860_v8 }
 0x2ca   : > { %v4899_v25 = vpack.c.bf16 %v1496_v20, %v1492_v51  ;;  %v1836_v39 = vadd.bf16 1065369472, %v3934_v12  ;;  %v1744_v35 = vadd.bf16 %v1712_v47, %v4881_v50  ;;  %v1614_v51 = vmul.bf16 1056980736, %v4863_v52  ;;  %v1009_v3 = vpop.f32.mrb[61].mxu1 }
 0x2cb   : > { %v1649_v44 = vmul.bf16 1027030327, %v4896_v13  ;;  %v1775_v43 = vmul.bf16 1061961548, %v1743_v1  ;;  %v1867_v11 = vmul.bf16 %v1835_v36, %v1611_v7  ;;  %v1100_v12 = vmax.f32 %v1007_v19, 0.0  ;;  %v1011_v20 = vpop.f32.mrb[62].mxu1 }
 0x2cc   : > { %v1650_v53 = vmul.bf16 1027030327, %v4899_v25  ;;  %v1868_v2 = vmul.bf16 %v1836_v39, %v1612_v23  ;;  %v1776_v14 = vmul.bf16 1061961548, %v1744_v35  ;;  %v1102_v52 = vmax.f32 %v1011_v20, 0.0  ;;  %v1013_v32 = vpop.f32.mrb[63].mxu1 }
 0x2cd   : > { %v1681_v4 = vmul.bf16 %v1649_v44, %v4896_v13  ;;  %3939 = vtanh.bf16 %v1775_v43  ;;  %v1101_v35 = vmax.f32 %v1009_v3, 0.0  ;;  %v1616_v19 = vmul.bf16 1056980736, %v4881_v50 }
 0x2ce   : > { %v1682_v41 = vmul.bf16 %v1650_v53, %v4899_v25  ;;  %v1500_v45 = vpop.f32.mrb[84].mxu0  ;;  %2163 = vmatprep.mubr.bf16.mxu1 %v1868_v2  ;;  %3941 = vtanh.bf16 %v1776_v14  ;;  %v4923_v53 = vpack.c.bf16 %v1102_v52, %v1100_v12  ;;  %v1103_v2 = vmax.f32 %v1013_v32, 0.0 }
 0x2cf   : > { %v1502_v26 = vpop.f32.mrb[85].mxu0  ;;  %2164 = vmatmul.mubr.bf16.gmra.mrb[100].mxu1 %v1867_v11  ;;  %v1713_v30 = vmul.bf16 %v1681_v4, %v4896_v13 }
 0x2d0   : > { %v3936_v57 = vpop.eup %3935  ;;  %v1504_v46 = vpop.f32.mrb[86].mxu0  ;;  %v1714_v28 = vmul.bf16 %v1682_v41, %v4899_v25  ;;  %v4927_v41 = vpack.c.bf16 %v1103_v2, %v1101_v35 }
 0x2d1   : > { %v3938_v5 = vpop.eup %3937  ;;  %v4914_v23 = vpack.c.bf16 %v1504_v46, %v1500_v45  ;;  %v1506_v7 = vpop.f32.mrb[87].mxu0  ;;  %v1837_v47 = vadd.bf16 1065369472, %v3936_v57  ;;  %v1745_v9 = vadd.bf16 %v1713_v30, %v4896_v13  ;;  %v1615_v57 = vmul.bf16 1056980736, %v4878_v31 }
 0x2d2   : > { %v4917_v36 = vpack.c.bf16 %v1506_v7, %v1502_v26  ;;  %v1838_v1 = vadd.bf16 1065369472, %v3938_v5  ;;  %v1746_v21 = vadd.bf16 %v1714_v28, %v4899_v25  ;;  %v1017_v45 = vpop.f32.mrb[64].mxu1 }
 0x2d3   : > { %v1651_v8 = vmul.bf16 1027030327, %v4914_v23  ;;  %v1777_v39 = vmul.bf16 1061961548, %v1745_v9  ;;  %v1869_v44 = vmul.bf16 %v1837_v47, %v1613_v54  ;;  %v1104_v47 = vmax.f32 %v1017_v45, 0.0 }
 0x2d4   : > { %v1652_v56 = vmul.bf16 1027030327, %v4917_v36  ;;  %v1870_v37 = vmul.bf16 %v1838_v1, %v1614_v51  ;;  %v1778_v43 = vmul.bf16 1061961548, %v1746_v21  ;;  %v1019_v51 = vpop.f32.mrb[65].mxu1 }
 0x2d5   : > { %v1683_v48 = vmul.bf16 %v1651_v8, %v4914_v23  ;;  %3943 = vtanh.bf16 %v1777_v39  ;;  %v1021_v9 = vpop.f32.mrb[66].mxu1  ;;  %v1105_v32 = vmax.f32 %v1019_v51, 0.0 }
 0x2d6   : > { %v1684_v11 = vmul.bf16 %v1652_v56, %v4917_v36  ;;  %v1510_v14 = vpop.f32.mrb[88].mxu0  ;;  %2173 = vmatprep.mubr.bf16.mxu1 %v1870_v37  ;;  %3945 = vtanh.bf16 %v1778_v43  ;;  %v1106_v50 = vmax.f32 %v1021_v9, 0.0  ;;  %v1023_v21 = vpop.f32.mrb[67].mxu1 }
 0x2d7   : > { %v1512_v4 = vpop.f32.mrb[89].mxu0  ;;  %2174 = vmatmul.mubr.bf16.gmra.mrb[104].mxu1 %v1869_v44  ;;  %v1715_v17 = vmul.bf16 %v1683_v48, %v4914_v23  ;;  %v1107_v43 = vmax.f32 %v1023_v21, 0.0 }
 0x2d8   : > { %v3940_v26 = vpop.eup %3939  ;;  %v1514_v30 = vpop.f32.mrb[90].mxu0  ;;  %v1716_v46 = vmul.bf16 %v1684_v11, %v4917_v36  ;;  %v4941_v44 = vpack.c.bf16 %v1106_v50, %v1104_v47 }
 0x2d9   : > { %v3942_v54 = vpop.eup %3941  ;;  %v4932_v28 = vpack.c.bf16 %v1514_v30, %v1510_v14  ;;  %v1516_v3 = vpop.f32.mrb[91].mxu0  ;;  %v1839_v5 = vadd.bf16 1065369472, %v3940_v26  ;;  %v1747_v7 = vadd.bf16 %v1715_v17, %v4914_v23  ;;  %v1618_v30 = vmul.bf16 1056980736, %v4899_v25 }
 0x2da   : > { %v4935_v12 = vpack.c.bf16 %v1516_v3, %v1512_v4  ;;  %v1840_v20 = vadd.bf16 1065369472, %v3942_v54  ;;  %v1748_v1 = vadd.bf16 %v1716_v46, %v4917_v36  ;;  %v4945_v4 = vpack.c.bf16 %v1107_v43, %v1105_v32  ;;  %v1027_v17 = vpop.f32.mrb[68].mxu1 }
 0x2db   : > { %v1653_v31 = vmul.bf16 1027030327, %v4932_v28  ;;  %v1779_v52 = vmul.bf16 1061961548, %v1747_v7  ;;  %v1871_v35 = vmul.bf16 %v1839_v5, %v1615_v57  ;;  %v1029_v46 = vpop.f32.mrb[69].mxu1  ;;  %v1108_v47 = vmax.f32 %v1027_v17, 0.0 }
 0x2dc   : > { %v1654_v8 = vmul.bf16 1027030327, %v4935_v12  ;;  %v1872_v39 = vmul.bf16 %v1840_v20, %v1616_v19  ;;  %v1780_v56 = vmul.bf16 1061961548, %v1748_v1  ;;  %v1617_v19 = vmul.bf16 1056980736, %v4896_v13 }
 0x2dd   : > { %v1685_v37 = vmul.bf16 %v1653_v31, %v4932_v28  ;;  %3947 = vtanh.bf16 %v1779_v52  ;;  %v1031_v9 = vpop.f32.mrb[70].mxu1  ;;  %v1109_v52 = vmax.f32 %v1029_v46, 0.0 }
 0x2de   : > { %v1686_v48 = vmul.bf16 %v1654_v8, %v4935_v12  ;;  %v1520_v2 = vpop.f32.mrb[92].mxu0  ;;  %2183 = vmatprep.mubr.bf16.mxu1 %v1872_v39  ;;  %3949 = vtanh.bf16 %v1780_v56  ;;  %v1110_v25 = vmax.f32 %v1031_v9, 0.0  ;;  %v1033_v21 = vpop.f32.mrb[71].mxu1 }
 0x2df   : > { %v1522_v11 = vpop.f32.mrb[93].mxu0  ;;  %2184 = vmatmul.mubr.bf16.gmra.mrb[108].mxu1 %v1871_v35  ;;  %v1717_v14 = vmul.bf16 %v1685_v37, %v4932_v28  ;;  %v1111_v43 = vmax.f32 %v1033_v21, 0.0 }
 0x2e0   : > { %v3944_v45 = vpop.eup %3943  ;;  %v1524_v26 = vpop.f32.mrb[94].mxu0  ;;  %v1718_v57 = vmul.bf16 %v1686_v48, %v4935_v12  ;;  %v4959_v37 = vpack.c.bf16 %v1110_v25, %v1108_v47 }
 0x2e1   : > { %v3946_v51 = vpop.eup %3945  ;;  %v4950_v54 = vpack.c.bf16 %v1524_v26, %v1520_v2  ;;  %v1526_v3 = vpop.f32.mrb[95].mxu0  ;;  %v1841_v5 = vadd.bf16 1065369472, %v3944_v45  ;;  %v1749_v7 = vadd.bf16 %v1717_v14, %v4932_v28  ;;  %v4963_v17 = vpack.c.bf16 %v1111_v43, %v1109_v52 }
 0x2e2   : > { %v4953_v20 = vpack.c.bf16 %v1526_v3, %v1522_v11  ;;  %v1842_v1 = vadd.bf16 1065369472, %v3946_v51  ;;  %v1750_v50 = vadd.bf16 %v1718_v57, %v4935_v12  ;;  %v1037_v45 = vpop.f32.mrb[72].mxu1  ;;  %v1619_v57 = vmul.bf16 1056980736, %v4914_v23 }
 0x2e3   : > { %v1655_v13 = vmul.bf16 1027030327, %v4950_v54  ;;  %v1781_v31 = vmul.bf16 1061961548, %v1749_v7  ;;  %v1873_v39 = vmul.bf16 %v1841_v5, %v1617_v19  ;;  %v1620_v19 = vmul.bf16 1056980736, %v4917_v36 }
 0x2e4   : > { %v1656_v32 = vmul.bf16 1027030327, %v4953_v20  ;;  %v1874_v8 = vmul.bf16 %v1842_v1, %v1618_v30  ;;  %v1782_v35 = vmul.bf16 1061961548, %v1750_v50  ;;  %v1039_v51 = vpop.f32.mrb[73].mxu1  ;;  %v1112_v1 = vmax.f32 %v1037_v45, 0.0 }
 0x2e5   : > { %v1687_v56 = vmul.bf16 %v1655_v13, %v4950_v54  ;;  %3951 = vtanh.bf16 %v1781_v31  ;;  %v1041_v50 = vpop.f32.mrb[74].mxu1 }
 0x2e6   : > { %v1688_v48 = vmul.bf16 %v1656_v32, %v4953_v20  ;;  %v1530_v2 = vpop.f32.mrb[96].mxu0  ;;  %2193 = vmatprep.mubr.bf16.mxu1 %v1874_v8  ;;  %3953 = vtanh.bf16 %v1782_v35  ;;  %v1114_v36 = vmax.f32 %v1041_v50, 0.0  ;;  %v1043_v31 = vpop.f32.mrb[75].mxu1  ;;  %v1113_v32 = vmax.f32 %v1039_v51, 0.0 }
 0x2e7   : > { %v1532_v11 = vpop.f32.mrb[97].mxu0  ;;  %2194 = vmatmul.mubr.bf16.gmra.mrb[112].mxu1 %v1873_v39  ;;  %v1719_v14 = vmul.bf16 %v1687_v56, %v4950_v54  ;;  %v1047_v51 = vpop.f32.mrb[76].mxu1 }
 0x2e8   : > { %v3948_v26 = vpop.eup %3947  ;;  %v1534_v30 = vpop.f32.mrb[98].mxu0  ;;  %v1720_v46 = vmul.bf16 %v1688_v48, %v4953_v20  ;;  %v4977_v48 = vpack.c.bf16 %v1114_v36, %v1112_v1  ;;  %v1622_v36 = vmul.bf16 1056980736, %v4935_v12 }
 0x2e9   : > { %v3950_v3 = vpop.eup %3949  ;;  %v4968_v5 = vpack.c.bf16 %v1534_v30, %v1530_v2  ;;  %v1536_v7 = vpop.f32.mrb[99].mxu0  ;;  %v1843_v47 = vadd.bf16 1065369472, %v3948_v26  ;;  %v1751_v9 = vadd.bf16 %v1719_v14, %v4950_v54  ;;  %v1115_v2 = vmax.f32 %v1043_v31, 0.0 }
 0x2ea   : > { %v4971_v25 = vpack.c.bf16 %v1536_v7, %v1532_v11  ;;  %v1844_v21 = vadd.bf16 1065369472, %v3950_v3  ;;  %v1752_v13 = vadd.bf16 %v1720_v46, %v4953_v20 }
 0x2eb   : > { %v1657_v23 = vmul.bf16 1027030327, %v4968_v5  ;;  %v1783_v52 = vmul.bf16 1061961548, %v1751_v9  ;;  %v1875_v35 = vmul.bf16 %v1843_v47, %v1619_v57  ;;  %v4981_v30 = vpack.c.bf16 %v1115_v2, %v1113_v32 }
 0x2ec   : > { %v1658_v8 = vmul.bf16 1027030327, %v4971_v25  ;;  %v1876_v39 = vmul.bf16 %v1844_v21, %v1620_v19  ;;  %v1784_v56 = vmul.bf16 1061961548, %v1752_v13  ;;  %v1621_v9 = vmul.bf16 1056980736, %v4932_v28 }
 0x2ed   : > { %v1689_v43 = vmul.bf16 %v1657_v23, %v4968_v5  ;;  %3955 = vtanh.bf16 %v1783_v52  ;;  %v1049_v21 = vpop.f32.mrb[77].mxu1 }
 0x2ee   : > { %v1690_v11 = vmul.bf16 %v1658_v8, %v4971_v25  ;;  %v1540_v14 = vpop.f32.mrb[100].mxu0  ;;  %2203 = vmatprep.mubr.bf16.mxu1 %v1876_v39  ;;  %3957 = vtanh.bf16 %v1784_v56  ;;  %v1051_v52 = vpop.f32.mrb[78].mxu1  ;;  %v1116_v39 = vmax.f32 %v1047_v51, 0.0 }
 0x2ef   : > { %v1542_v45 = vpop.f32.mrb[101].mxu0  ;;  %2204 = vmatmul.mubr.bf16.gmra.mrb[116].mxu1 %v1875_v35  ;;  %v1721_v26 = vmul.bf16 %v1689_v43, %v4968_v5  ;;  %v1117_v43 = vmax.f32 %v1049_v21, 0.0 }
 0x2f0   : > { %v3952_v19 = vpop.eup %3951  ;;  %v1544_v57 = vpop.f32.mrb[102].mxu0  ;;  %v1722_v46 = vmul.bf16 %v1690_v11, %v4971_v25 }
 0x2f1   : > { %v3954_v3 = vpop.eup %3953  ;;  %v4984_v7 = vpack.c.bf16 %v1544_v57, %v1540_v14  ;;  %v1546_v47 = vpop.f32.mrb[103].mxu0  ;;  %v1845_v1 = vadd.bf16 1065369472, %v3952_v19  ;;  %v1753_v50 = vadd.bf16 %v1721_v26, %v4968_v5  ;;  %v1118_v14 = vmax.f32 %v1051_v52, 0.0 }
 0x2f2   : > { %v4988_v13 = vpack.c.bf16 %v1546_v47, %v1542_v45  ;;  %v1846_v31 = vadd.bf16 1065369472, %v3954_v3  ;;  %v1754_v23 = vadd.bf16 %v1722_v46, %v4971_v25  ;;  %v1053_v45 = vpop.f32.mrb[79].mxu1 }
 0x2f3   : > { %v1659_v32 = vmul.bf16 1027030327, %v4984_v7  ;;  %v1785_v8 = vmul.bf16 1061961548, %v1753_v50  ;;  %v1877_v11 = vmul.bf16 %v1845_v1, %v1621_v9  ;;  %v1119_v19 = vmax.f32 %v1053_v45, 0.0 }
 0x2f4   : > { %v1660_v35 = vmul.bf16 1027030327, %v4988_v13  ;;  %v1878_v56 = vmul.bf16 %v1846_v31, %v1622_v36  ;;  %v1786_v28 = vmul.bf16 1061961548, %v1754_v23  ;;  %v4997_v51 = vpack.c.bf16 %v1118_v14, %v1116_v39 }
 0x2f5   : > { %v1691_v2 = vmul.bf16 %v1659_v32, %v4984_v7  ;;  %3959 = vtanh.bf16 %v1785_v8  ;;  %v5000_v9 = vpack.c.bf16 %v1119_v19, %v1117_v43  ;;  %v1624_v32 = vmul.bf16 1056980736, %v4953_v20 }
 0x2f6   : > { %v1692_v12 = vmul.bf16 %v1660_v35, %v4988_v13  ;;  %v1550_v26 = vpop.f32.mrb[104].mxu0  ;;  %2213 = vmatprep.mubr.bf16.mxu1 %v1878_v56  ;;  %3961 = vtanh.bf16 %v1786_v28  ;;  %v1623_v56 = vmul.bf16 1056980736, %v4950_v54 }
 0x2f7   : > { %v1552_v57 = vpop.f32.mrb[105].mxu0  ;;  %2214 = vmatmul.mubr.bf16.gmra.mrb[120].mxu1 %v1877_v11  ;;  %v1723_v46 = vmul.bf16 %v1691_v2, %v4984_v7 }
 0x2f8   : > { %v3956_v3 = vpop.eup %3955  ;;  %v1554_v47 = vpop.f32.mrb[106].mxu0  ;;  %v1724_v50 = vmul.bf16 %v1692_v12, %v4988_v13 }
 0x2f9   : > { %v3958_v1 = vpop.eup %3957  ;;  %v5002_v21 = vpack.c.bf16 %v1554_v47, %v1550_v26  ;;  %v1556_v36 = vpop.f32.mrb[107].mxu0  ;;  %v1847_v31 = vadd.bf16 1065369472, %v3956_v3  ;;  %v1755_v23 = vadd.bf16 %v1723_v46, %v4984_v7 }
 0x2fa   : > { %v5005_v52 = vpack.c.bf16 %v1556_v36, %v1552_v57  ;;  %v1848_v8 = vadd.bf16 1065369472, %v3958_v1  ;;  %v1756_v39 = vadd.bf16 %v1724_v50, %v4988_v13 }
 0x2fb   : > { %v1661_v35 = vmul.bf16 1027030327, %v5002_v21  ;;  %v1787_v28 = vmul.bf16 1061961548, %v1755_v23  ;;  %v1879_v45 = vmul.bf16 %v1847_v31, %v1623_v56  ;;  %v1626_v23 = vmul.bf16 1056980736, %v4971_v25 }
 0x2fc   : > { %v1662_v43 = vmul.bf16 1027030327, %v5005_v52  ;;  %v1880_v2 = vmul.bf16 %v1848_v8, %v1624_v32  ;;  %v1788_v11 = vmul.bf16 1061961548, %v1756_v39 }
 0x2fd   : > { %v1693_v14 = vmul.bf16 %v1661_v35, %v5002_v21  ;;  %3963 = vtanh.bf16 %v1787_v28  ;;  %v1625_v35 = vmul.bf16 1056980736, %v4968_v5 }
 0x2fe   : > { %v1694_v12 = vmul.bf16 %v1662_v43, %v5005_v52  ;;  %v1560_v26 = vpop.f32.mrb[108].mxu0  ;;  %2223 = vmatprep.mubr.bf16.mxu1 %v1880_v2  ;;  %3965 = vtanh.bf16 %v1788_v11 }
 0x2ff   : > { %v1562_v20 = vpop.f32.mrb[109].mxu0  ;;  %2224 = vmatmul.mubr.bf16.gmra.mrb[124].mxu1 %v1879_v45  ;;  %v1725_v19 = vmul.bf16 %v1693_v14, %v5002_v21 }
 0x300   : > { %v3960_v57 = vpop.eup %3959  ;;  %v1564_v54 = vpop.f32.mrb[110].mxu0  ;;  %v1726_v46 = vmul.bf16 %v1694_v12, %v5005_v52 }
 0x301   : > { %v3962_v3 = vpop.eup %3961  ;;  %v1599_v47 = vpack.c.bf16 %v1564_v54, %v1560_v26  ;;  %v1566_v50 = vpop.f32.mrb[111].mxu0  ;;  %v1849_v1 = vadd.bf16 1065369472, %v3960_v57  ;;  %v1757_v36 = vadd.bf16 %v1725_v19, %v5002_v21  ;;  %v1628_v54 = vmul.bf16 1056980736, %v4988_v13 }
 0x302   : > { %v1600_v31 = vpack.c.bf16 %v1566_v50, %v1562_v20  ;;  %v1850_v32 = vadd.bf16 1065369472, %v3962_v3  ;;  %v1758_v8 = vadd.bf16 %v1726_v46, %v5005_v52  ;;  %v1627_v3 = vmul.bf16 1056980736, %v4984_v7 }
 0x303   : > { %v1663_v39 = vmul.bf16 1027030327, %v1599_v47  ;;  %v1789_v56 = vmul.bf16 1061961548, %v1757_v36  ;;  %v1881_v14 = vmul.bf16 %v1849_v1, %v1625_v35  ;;  %v1630_v35 = vmul.bf16 1056980736, %v5005_v52 }
 0x304   : > { %v1664_v28 = vmul.bf16 1027030327, %v1600_v31  ;;  %v1882_v43 = vmul.bf16 %v1850_v32, %v1626_v23  ;;  %v1790_v2 = vmul.bf16 1061961548, %v1758_v8  ;;  %v1629_v13 = vmul.bf16 1056980736, %v5002_v21 }
 0x305   : > { %v1695_v11 = vmul.bf16 %v1663_v39, %v1599_v47  ;;  %3967 = vtanh.bf16 %v1789_v56  ;;  %v3903_v52 = vld [vmem:[#allocation11] sm:$0xff]  }
 0x306   : > { %v1696_v45 = vmul.bf16 %v1664_v28, %v1600_v31  ;;  %2233 = vmatprep.mubr.bf16.mxu1 %v1882_v43  ;;  %3969 = vtanh.bf16 %v1790_v2  ;;  %3557 = vmatprep.subr.bf16.mxu1 %v3903_v52 }
 0x307   : > { %2234 = vmatmul.mubr.bf16.gmra.mrb[128].mxu1 %v1881_v14  ;;  %v1727_v12 = vmul.bf16 %v1695_v11, %v1599_v47  ;;  %v1632_v14 = vmul.bf16 1056980736, %v1600_v31 }
 0x308   : > { %v3964_v26 = vpop.eup %3963  ;;  %v1728_v25 = vmul.bf16 %v1696_v45, %v1600_v31  ;;  %3558 = vmatpush3.bf16.msra.mxu1 %v3903_v52 }
 0x309   : > { %v3966_v20 = vpop.eup %3965  ;;  %v1851_v19 = vadd.bf16 1065369472, %v3964_v26  ;;  %v1759_v57 = vadd.bf16 %v1727_v12, %v1599_v47  ;;  %v1631_v12 = vmul.bf16 1056980736, %v1599_v47 }
 0x30a   : > { %v1852_v5 = vadd.bf16 1065369472, %v3966_v20  ;;  %v1760_v46 = vadd.bf16 %v1728_v25, %v1600_v31 }
 0x30b   : > { %v1791_v50 = vmul.bf16 1061961548, %v1759_v57  ;;  %v1883_v23 = vmul.bf16 %v1851_v19, %v1627_v3  ;;  %v3904_v57 = vld [vmem:[#allocation11 + $0x8] sm:$0xff]  }
 0x30c   : > { %v1884_v36 = vmul.bf16 %v1852_v5, %v1628_v54  ;;  %v1792_v1 = vmul.bf16 1061961548, %v1760_v46  ;;  %3559 = vmatprep.subr.bf16.mxu1 %v3904_v57 }
 0x30d   : > { %3971 = vtanh.bf16 %v1791_v50  ;;  %3560 = vmatpush3.bf16.msra.mxu1 %v3904_v57 }
 0x30e   : > { %2243 = vmatprep.mubr.bf16.mxu1 %v1884_v36  ;;  %3973 = vtanh.bf16 %v1792_v1 }
 0x30f   : > { %2244 = vmatmul.mubr.bf16.gmra.mrb[132].mxu1 %v1883_v23 }
 0x310   : > { %v3968_v32 = vpop.eup %3967 }
 0x311   : > { %v3970_v8 = vpop.eup %3969  ;;  %v1853_v39 = vadd.bf16 1065369472, %v3968_v32 }
 0x312   : > { %v1854_v56 = vadd.bf16 1065369472, %v3970_v8 }
 0x313   : > { %v1885_v43 = vmul.bf16 %v1853_v39, %v1629_v13 }
 0x314   : > { %v1886_v28 = vmul.bf16 %v1854_v56, %v1630_v35 }
 0x316   : > { %2253 = vmatprep.mubr.bf16.mxu1 %v1886_v28 }
 0x317   : > { %2254 = vmatmul.mubr.bf16.gmra.mrb[136].mxu1 %v1885_v43 }
 0x318   : > { %v3972_v7 = vpop.eup %3971 }
 0x319   : > { %v3974_v2 = vpop.eup %3973  ;;  %v1855_v11 = vadd.bf16 1065369472, %v3972_v7 }
 0x31a   : > { %v1856_v45 = vadd.bf16 1065369472, %v3974_v2 }
 0x31b   : > { %v1887_v25 = vmul.bf16 %v1855_v11, %v1631_v12 }
 0x31c   : > { %v1888_v26 = vmul.bf16 %v1856_v45, %v1632_v14 }
 0x31e   : > { %2263 = vmatprep.mubr.bf16.mxu1 %v1888_v26 }
 0x31f   : > { %2264 = vmatmul.mubr.bf16.gmra.mrb[140].mxu1 %v1887_v25 }
 0x37a   : > { %v2115_v20 = vpop.f32.mrb[80].mxu1 }
 0x37b   : > { %v2117_v19 = vpop.f32.mrb[81].mxu1 }
 0x37c   : > { %v2119_v54 = vpop.f32.mrb[82].mxu1 }
 0x37d   : > { %v2274_v21 = vpack.c.bf16 %v2119_v54, %v2115_v20  ;;  %v2121_v5 = vpop.f32.mrb[83].mxu1 }
 0x37e   : > { %v2275_v46 = vpack.c.bf16 %v2121_v5, %v2117_v19 }
 0x37f   : > { %v2306_v3 = vadd.bf16 %v2274_v21, %v4750_v58 }
 0x380   : > { %v2307_v31 = vadd.bf16 %v2275_v46, %v4752_v62 }
 0x382   : > { %v2125_v47 = vpop.f32.mrb[84].mxu1  ;;  %2498 = vmatprep.mubr.bf16.mxu0 %v2307_v31 }
 0x383   : > { %v2127_v50 = vpop.f32.mrb[85].mxu1  ;;  %2499 = vmatmul.mubr.bf16.vlgmr.msra.gmra.mrb[112].mxu0 %v2306_v3 }
 0x384   : > { %v2129_v36 = vpop.f32.mrb[86].mxu1 }
 0x385   : > { %v2276_v1 = vpack.c.bf16 %v2129_v36, %v2125_v47  ;;  %v2131_v23 = vpop.f32.mrb[87].mxu1 }
 0x386   : > { %v2277_v32 = vpack.c.bf16 %v2131_v23, %v2127_v50 }
 0x387   : > { %v2308_v8 = vadd.bf16 %v2276_v1, %v4754_v29 }
 0x388   : > { %v2309_v39 = vadd.bf16 %v2277_v32, %v4756_v33 }
 0x38a   : > { %v2135_v35 = vpop.f32.mrb[88].mxu1  ;;  %2506 = vmatprep.mubr.bf16.mxu0 %v2309_v39 }
 0x38b   : > { %v2137_v56 = vpop.f32.mrb[89].mxu1  ;;  %2507 = vmatmul.mubr.bf16.gmra.mrb[116].mxu0 %v2308_v8 }
 0x38c   : > { %v2139_v58 = vpop.f32.mrb[90].mxu1 }
 0x38d   : > { %v2278_v13 = vpack.c.bf16 %v2139_v58, %v2135_v35  ;;  %v2141_v62 = vpop.f32.mrb[91].mxu1 }
 0x38e   : > { %v2279_v28 = vpack.c.bf16 %v2141_v62, %v2137_v56 }
 0x38f   : > { %v2310_v43 = vadd.bf16 %v2278_v13, %v4764_v55 }
 0x390   : > { %v2311_v7 = vadd.bf16 %v2279_v28, %v4767_v63 }
 0x392   : > { %v2145_v2 = vpop.f32.mrb[92].mxu1  ;;  %2514 = vmatprep.mubr.bf16.mxu0 %v2311_v7 }
 0x393   : > { %v2147_v11 = vpop.f32.mrb[93].mxu1  ;;  %2515 = vmatmul.mubr.bf16.gmra.mrb[120].mxu0 %v2310_v43 }
 0x394   : > { %v2149_v14 = vpop.f32.mrb[94].mxu1 }
 0x395   : > { %v2280_v29 = vpack.c.bf16 %v2149_v14, %v2145_v2  ;;  %v2151_v45 = vpop.f32.mrb[95].mxu1 }
 0x396   : > { %v2281_v33 = vpack.c.bf16 %v2151_v45, %v2147_v11 }
 0x397   : > { %v2312_v12 = vadd.bf16 %v2280_v29, %v4780_v40 }
 0x398   : > { %v2313_v26 = vadd.bf16 %v2281_v33, %v4785_v6 }
 0x39a   : > { %v2155_v25 = vpop.f32.mrb[96].mxu1  ;;  %2522 = vmatprep.mubr.bf16.mxu0 %v2313_v26 }
 0x39b   : > { %v2157_v20 = vpop.f32.mrb[97].mxu1  ;;  %2523 = vmatmul.mubr.bf16.gmra.mrb[124].mxu0 %v2312_v12 }
 0x39c   : > { %v2159_v19 = vpop.f32.mrb[98].mxu1 }
 0x39d   : > { %v2282_v55 = vpack.c.bf16 %v2159_v19, %v2155_v25  ;;  %v2161_v52 = vpop.f32.mrb[99].mxu1 }
 0x39e   : > { %v2283_v63 = vpack.c.bf16 %v2161_v52, %v2157_v20 }
 0x39f   : > { %v2314_v57 = vadd.bf16 %v2282_v55, %v4796_v49 }
 0x3a0   : > { %v2315_v54 = vadd.bf16 %v2283_v63, %v4801_v60 }
 0x3a2   : > { %v2165_v21 = vpop.f32.mrb[100].mxu1  ;;  %2530 = vmatprep.mubr.bf16.mxu0 %v2315_v54 }
 0x3a3   : > { %v2167_v5 = vpop.f32.mrb[101].mxu1  ;;  %2531 = vmatmul.mubr.bf16.gmra.mrb[128].mxu0 %v2314_v57 }
 0x3a4   : > { %v2169_v46 = vpop.f32.mrb[102].mxu1 }
 0x3a5   : > { %v2284_v40 = vpack.c.bf16 %v2169_v46, %v2165_v21  ;;  %v2171_v3 = vpop.f32.mrb[103].mxu1 }
 0x3a6   : > { %v2285_v6 = vpack.c.bf16 %v2171_v3, %v2167_v5 }
 0x3a7   : > { %v2316_v31 = vadd.bf16 %v2284_v40, %v4815_v24 }
 0x3a8   : > { %v2317_v47 = vadd.bf16 %v2285_v6, %v4819_v38  ;;  %v3905_v6 = vld [vmem:[#allocation11 + $0x10] sm:$0xff]  }
 0x3a9   : > { %3561 = vmatprep.subr.bf16.mxu1 %v3905_v6 }
 0x3aa   : > { %v2175_v50 = vpop.f32.mrb[104].mxu1  ;;  %2538 = vmatprep.mubr.bf16.mxu0 %v2317_v47  ;;  %3562 = vmatpush3.bf16.msra.mxu1 %v3905_v6 }
 0x3ab   : > { %v2177_v36 = vpop.f32.mrb[105].mxu1  ;;  %2539 = vmatmul.mubr.bf16.gmra.mrb[132].mxu0 %v2316_v31 }
 0x3ac   : > { %v2179_v1 = vpop.f32.mrb[106].mxu1 }
 0x3ad   : > { %v2286_v49 = vpack.c.bf16 %v2179_v1, %v2175_v50  ;;  %v2181_v23 = vpop.f32.mrb[107].mxu1 }
 0x3ae   : > { %v2287_v60 = vpack.c.bf16 %v2181_v23, %v2177_v36 }
 0x3af   : > { %v2318_v32 = vadd.bf16 %v2286_v49, %v4833_v42 }
 0x3b0   : > { %v2319_v8 = vadd.bf16 %v2287_v60, %v4837_v10 }
 0x3b2   : > { %v2185_v39 = vpop.f32.mrb[108].mxu1  ;;  %2546 = vmatprep.mubr.bf16.mxu0 %v2319_v8 }
 0x3b3   : > { %v2187_v35 = vpop.f32.mrb[109].mxu1  ;;  %2547 = vmatmul.mubr.bf16.gmra.mrb[136].mxu0 %v2318_v32 }
 0x3b4   : > { %v2189_v56 = vpop.f32.mrb[110].mxu1 }
 0x3b5   : > { %v2288_v24 = vpack.c.bf16 %v2189_v56, %v2185_v39  ;;  %v2191_v58 = vpop.f32.mrb[111].mxu1 }
 0x3b6   : > { %v2289_v38 = vpack.c.bf16 %v2191_v58, %v2187_v35 }
 0x3b7   : > { %v2320_v13 = vadd.bf16 %v2288_v24, %v4851_v16  ;;  %v3906_v24 = vld [vmem:[#allocation11 + $0x18] sm:$0xff]  }
 0x3b8   : > { %v2321_v62 = vadd.bf16 %v2289_v38, %v4855_v27  ;;  %3563 = vmatprep.subr.bf16.mxu1 %v3906_v24 }
 0x3b9   : > { %3564 = vmatpush3.bf16.msra.mxu1 %v3906_v24 }
 0x3ba   : > { %v2195_v28 = vpop.f32.mrb[112].mxu1  ;;  %2554 = vmatprep.mubr.bf16.mxu0 %v2321_v62  ;;  %v3907_v62 = vld [vmem:[#allocation11 + $0x20] sm:$0xff]  }
 0x3bb   : > { %v2197_v43 = vpop.f32.mrb[113].mxu1  ;;  %2555 = vmatmul.mubr.bf16.gmra.mrb[140].mxu0 %v2320_v13  ;;  %3565 = vmatprep.subr.bf16.mxu1 %v3907_v62 }
 0x3bc   : > { %v2199_v7 = vpop.f32.mrb[114].mxu1 }
 0x3bd   : > { %v2290_v42 = vpack.c.bf16 %v2199_v7, %v2195_v28  ;;  %v2201_v2 = vpop.f32.mrb[115].mxu1  ;;  %3566 = vmatpush3.bf16.msra.mxu1 %v3907_v62 }
 0x3be   : > { %v2291_v10 = vpack.c.bf16 %v2201_v2, %v2197_v43 }
 0x3bf   : > { %v2322_v11 = vadd.bf16 %v2290_v42, %v4869_v22 }
 0x3c0   : > { %v2323_v14 = vadd.bf16 %v2291_v10, %v4873_v61 }
 0x3c2   : > { %v2205_v29 = vpop.f32.mrb[116].mxu1  ;;  %2562 = vmatprep.mubr.bf16.mxu0 %v2323_v14  ;;  %v3909_v14 = vld [vmem:[#allocation11 + $0x30] sm:$0xff]  }
 0x3c3   : > { %v2207_v45 = vpop.f32.mrb[117].mxu1  ;;  %2563 = vmatmul.mubr.bf16.gmra.mrb[144].mxu0 %v2322_v11 }
 0x3c4   : > { %v2209_v33 = vpop.f32.mrb[118].mxu1 }
 0x3c5   : > { %v2292_v16 = vpack.c.bf16 %v2209_v33, %v2205_v29  ;;  %v2211_v12 = vpop.f32.mrb[119].mxu1 }
 0x3c6   : > { %v2293_v27 = vpack.c.bf16 %v2211_v12, %v2207_v45 }
 0x3c7   : > { %v2324_v26 = vadd.bf16 %v2292_v16, %v4887_v34 }
 0x3c8   : > { %v2325_v25 = vadd.bf16 %v2293_v27, %v4891_v59 }
 0x3ca   : > { %v2215_v20 = vpop.f32.mrb[120].mxu1  ;;  %2570 = vmatprep.mubr.bf16.mxu0 %v2325_v25 }
 0x3cb   : > { %v2217_v19 = vpop.f32.mrb[121].mxu1  ;;  %2571 = vmatmul.mubr.bf16.gmra.mrb[148].mxu0 %v2324_v26 }
 0x3cc   : > { %v2219_v55 = vpop.f32.mrb[122].mxu1 }
 0x3cd   : > { %v2294_v22 = vpack.c.bf16 %v2219_v55, %v2215_v20  ;;  %v2221_v52 = vpop.f32.mrb[123].mxu1 }
 0x3ce   : > { %v2295_v61 = vpack.c.bf16 %v2221_v52, %v2217_v19 }
 0x3cf   : > { %v2326_v63 = vadd.bf16 %v2294_v22, %v4905_v15 }
 0x3d0   : > { %v2327_v57 = vadd.bf16 %v2295_v61, %v4909_v18 }
 0x3d2   : > { %v2225_v54 = vpop.f32.mrb[124].mxu1  ;;  %2578 = vmatprep.mubr.bf16.mxu0 %v2327_v57 }
 0x3d3   : > { %v2227_v21 = vpop.f32.mrb[125].mxu1  ;;  %2579 = vmatmul.mubr.bf16.gmra.mrb[152].mxu0 %v2326_v63 }
 0x3d4   : > { %v2229_v5 = vpop.f32.mrb[126].mxu1 }
 0x3d5   : > { %v2296_v34 = vpack.c.bf16 %v2229_v5, %v2225_v54  ;;  %v2231_v46 = vpop.f32.mrb[127].mxu1 }
 0x3d6   : > { %v2297_v59 = vpack.c.bf16 %v2231_v46, %v2227_v21 }
 0x3d7   : > { %v2328_v40 = vadd.bf16 %v2296_v34, %v4923_v53 }
 0x3d8   : > { %v2329_v3 = vadd.bf16 %v2297_v59, %v4927_v41 }
 0x3da   : > { %v2235_v31 = vpop.f32.mrb[128].mxu1  ;;  %2586 = vmatprep.mubr.bf16.mxu0 %v2329_v3 }
 0x3db   : > { %v2237_v47 = vpop.f32.mrb[129].mxu1  ;;  %2587 = vmatmul.mubr.bf16.gmra.mrb[156].mxu0 %v2328_v40 }
 0x3dc   : > { %v2239_v15 = vpop.f32.mrb[130].mxu1 }
 0x3dd   : > { %v2298_v18 = vpack.c.bf16 %v2239_v15, %v2235_v31  ;;  %v2241_v50 = vpop.f32.mrb[131].mxu1 }
 0x3de   : > { %v2299_v36 = vpack.c.bf16 %v2241_v50, %v2237_v47 }
 0x3df   : > { %v2330_v1 = vadd.bf16 %v2298_v18, %v4941_v44 }
 0x3e0   : > { %v2331_v49 = vadd.bf16 %v2299_v36, %v4945_v4 }
 0x3e2   : > { %v2245_v23 = vpop.f32.mrb[132].mxu1  ;;  %2594 = vmatprep.mubr.bf16.mxu0 %v2331_v49 }
 0x3e3   : > { %v2247_v53 = vpop.f32.mrb[133].mxu1  ;;  %2595 = vmatmul.mubr.bf16.gmra.mrb[160].mxu0 %v2330_v1 }
 0x3e4   : > { %v2249_v41 = vpop.f32.mrb[134].mxu1 }
 0x3e5   : > { %v2300_v60 = vpack.c.bf16 %v2249_v41, %v2245_v23  ;;  %v2251_v32 = vpop.f32.mrb[135].mxu1 }
 0x3e6   : > { %v2301_v8 = vpack.c.bf16 %v2251_v32, %v2247_v53 }
 0x3e7   : > { %v2332_v39 = vadd.bf16 %v2300_v60, %v4959_v37 }
 0x3e8   : > { %v2333_v35 = vadd.bf16 %v2301_v8, %v4963_v17  ;;  %v3908_v17 = vld [vmem:[#allocation11 + $0x28] sm:$0xff]  }
 0x3e9   : > { %3567 = vmatprep.subr.bf16.mxu1 %v3908_v17 }
 0x3ea   : > { %v2255_v56 = vpop.f32.mrb[136].mxu1  ;;  %2602 = vmatprep.mubr.bf16.mxu0 %v2333_v35  ;;  %3568 = vmatpush3.bf16.msra.mxu1 %v3908_v17 }
 0x3eb   : > { %v2257_v58 = vpop.f32.mrb[137].mxu1  ;;  %2603 = vmatmul.mubr.bf16.gmra.mrb[164].mxu0 %v2332_v39  ;;  %3569 = vmatprep.subr.bf16.mxu1 %v3909_v14 }
 0x3ec   : > { %v2259_v44 = vpop.f32.mrb[138].mxu1 }
 0x3ed   : > { %v2302_v4 = vpack.c.bf16 %v2259_v44, %v2255_v56  ;;  %v2261_v38 = vpop.f32.mrb[139].mxu1 }
 0x3ee   : > { %v2303_v13 = vpack.c.bf16 %v2261_v38, %v2257_v58  ;;  %3570 = vmatpush3.bf16.msra.mxu1 %v3909_v14 }
 0x3ef   : > { %v2334_v28 = vadd.bf16 %v2302_v4, %v4977_v48 }
 0x3f0   : > { %v2335_v43 = vadd.bf16 %v2303_v13, %v4981_v30  ;;  %v3910_v30 = vld [vmem:[#allocation11 + $0x38] sm:$0xff]  }
 0x3f1   : > { %3571 = vmatprep.subr.bf16.mxu1 %v3910_v30 }
 0x3f2   : > { %v2265_v37 = vpop.f32.mrb[140].mxu1  ;;  %2610 = vmatprep.mubr.bf16.mxu0 %v2335_v43  ;;  %3572 = vmatpush3.bf16.msra.mxu1 %v3910_v30 }
 0x3f3   : > { %v2267_v7 = vpop.f32.mrb[141].mxu1  ;;  %2611 = vmatmul.mubr.bf16.gmra.mrb[168].mxu0 %v2334_v28 }
 0x3f4   : > { %v2269_v42 = vpop.f32.mrb[142].mxu1 }
 0x3f5   : > { %v2304_v2 = vpack.c.bf16 %v2269_v42, %v2265_v37  ;;  %v2271_v10 = vpop.f32.mrb[143].mxu1 }
 0x3f6   : > { %v2305_v11 = vpack.c.bf16 %v2271_v10, %v2267_v7 }
 0x3f7   : > { %v2336_v29 = vadd.bf16 %v2304_v2, %v4997_v51 }
 0x3f8   : > { %v2337_v48 = vadd.bf16 %v2305_v11, %v5000_v9 }
 0x3fa   : > { %2618 = vmatprep.mubr.bf16.mxu0 %v2337_v48 }
 0x3fb   : > { %2619 = vmatmul.mubr.bf16.gmra.mrb[172].mxu0 %v2336_v29 }
 0x456   : > { %v3437_v45 = vpop.f32.mrb[112].mxu0 }
 0x457   : > { %v3438_v33 = vpop.f32.mrb[113].mxu0 }
 0x458   : > { %v3439_v16 = vadd.f32 %v3438_v33, %v3437_v45  ;;  %v3440_v12 = vpop.f32.mrb[114].mxu0 }
 0x459   : > { %v3441_v27 = vpop.f32.mrb[115].mxu0 }
 0x45a   : > { %v3442_v26 = vadd.f32 %v3441_v27, %v3440_v12 }
 0x45c   : > { %v2627_v25 = vpack.c.bf16 %v3442_v26, %v3439_v16 }
 0x45e   : > { %v2659_v20 = vmul.bf16 1027030327, %v2627_v25  ;;  %v3443_v19 = vpop.f32.mrb[116].mxu0  ;;  %v2643_v56 = vmul.bf16 1056980736, %v2627_v25 }
 0x45f   : > { %v3444_v55 = vpop.f32.mrb[117].mxu0 }
 0x460   : > { %v3445_v51 = vadd.f32 %v3444_v55, %v3443_v19  ;;  %v3446_v22 = vpop.f32.mrb[118].mxu0  ;;  %v2675_v9 = vmul.bf16 %v2659_v20, %v2627_v25 }
 0x461   : > { %v3447_v52 = vpop.f32.mrb[119].mxu0 }
 0x462   : > { %v3448_v61 = vadd.f32 %v3447_v52, %v3446_v22  ;;  %v2691_v63 = vmul.bf16 %v2675_v9, %v2627_v25 }
 0x464   : > { %v2628_v57 = vpack.c.bf16 %v3448_v61, %v3445_v51  ;;  %v2707_v54 = vadd.bf16 %v2691_v63, %v2627_v25 }
 0x466   : > { %v2660_v21 = vmul.bf16 1027030327, %v2628_v57  ;;  %v3449_v5 = vpop.f32.mrb[120].mxu0  ;;  %v2723_v34 = vmul.bf16 1061961548, %v2707_v54 }
 0x467   : > { %v3450_v46 = vpop.f32.mrb[121].mxu0  ;;  %v2644_v11 = vmul.bf16 1056980736, %v2628_v57 }
 0x468   : > { %v2676_v59 = vmul.bf16 %v2660_v21, %v2628_v57  ;;  %v3451_v40 = vadd.f32 %v3450_v46, %v3449_v5  ;;  %v3452_v3 = vpop.f32.mrb[122].mxu0  ;;  %3975 = vtanh.bf16 %v2723_v34 }
 0x469   : > { %v3453_v6 = vpop.f32.mrb[123].mxu0 }
 0x46a   : > { %v2692_v31 = vmul.bf16 %v2676_v59, %v2628_v57  ;;  %v3454_v47 = vadd.f32 %v3453_v6, %v3452_v3 }
 0x46c   : > { %v2708_v15 = vadd.bf16 %v2692_v31, %v2628_v57  ;;  %v2629_v18 = vpack.c.bf16 %v3454_v47, %v3451_v40 }
 0x46e   : > { %v2724_v50 = vmul.bf16 1061961548, %v2708_v15  ;;  %v2661_v36 = vmul.bf16 1027030327, %v2629_v18  ;;  %v3455_v1 = vpop.f32.mrb[124].mxu0 }
 0x46f   : > { %v3456_v49 = vpop.f32.mrb[125].mxu0  ;;  %v2645_v22 = vmul.bf16 1056980736, %v2629_v18 }
 0x470   : > { %3977 = vtanh.bf16 %v2724_v50  ;;  %v3457_v23 = vadd.f32 %v3456_v49, %v3455_v1  ;;  %v3458_v53 = vpop.f32.mrb[126].mxu0  ;;  %v2677_v41 = vmul.bf16 %v2661_v36, %v2629_v18 }
 0x471   : > { %v3459_v60 = vpop.f32.mrb[127].mxu0 }
 0x472   : > { %v3460_v32 = vadd.f32 %v3459_v60, %v3458_v53  ;;  %v2693_v8 = vmul.bf16 %v2677_v41, %v2629_v18 }
 0x473   : > { %v3976_v39 = vpop.eup %3975 }
 0x474   : > { %v2630_v35 = vpack.c.bf16 %v3460_v32, %v3457_v23  ;;  %v2755_v24 = vadd.bf16 1065369472, %v3976_v39  ;;  %v2709_v58 = vadd.bf16 %v2693_v8, %v2629_v18 }
 0x476   : > { %v2662_v44 = vmul.bf16 1027030327, %v2630_v35  ;;  %v3461_v4 = vpop.f32.mrb[128].mxu0  ;;  %v5056_v38 = vmul.bf16 %v2755_v24, %v2643_v56  ;;  %v2725_v13 = vmul.bf16 1061961548, %v2709_v58 }
 0x477   : > { %v3462_v62 = vpop.f32.mrb[129].mxu0  ;;  %v2646_v47 = vmul.bf16 1056980736, %v2630_v35 }
 0x478   : > { %v3463_v28 = vadd.f32 %v3462_v62, %v3461_v4  ;;  %v3464_v43 = vpop.f32.mrb[130].mxu0  ;;  %3573 = vmatprep.mubr.bf16.mxu1 %v5056_v38  ;;  %3979 = vtanh.bf16 %v2725_v13  ;;  %v2678_v37 = vmul.bf16 %v2662_v44, %v2630_v35 }
 0x479   : > { %v3465_v17 = vpop.f32.mrb[131].mxu0 }
 0x47a   : > { %v3466_v7 = vadd.f32 %v3465_v17, %v3464_v43  ;;  %v2694_v42 = vmul.bf16 %v2678_v37, %v2630_v35 }
 0x47b   : > { %v3978_v2 = vpop.eup %3977 }
 0x47c   : > { %v2631_v10 = vpack.c.bf16 %v3466_v7, %v3463_v28  ;;  %v2756_v14 = vadd.bf16 1065369472, %v3978_v2  ;;  %v2710_v29 = vadd.bf16 %v2694_v42, %v2630_v35 }
 0x47e   : > { %v2663_v48 = vmul.bf16 1027030327, %v2631_v10  ;;  %v3467_v30 = vpop.f32.mrb[132].mxu0  ;;  %v5059_v45 = vmul.bf16 %v2756_v14, %v2644_v11  ;;  %v2726_v33 = vmul.bf16 1061961548, %v2710_v29 }
 0x47f   : > { %v3468_v16 = vpop.f32.mrb[133].mxu0  ;;  %v2647_v35 = vmul.bf16 1056980736, %v2631_v10 }
 0x480   : > { %v3469_v12 = vadd.f32 %v3468_v16, %v3467_v30  ;;  %v3470_v27 = vpop.f32.mrb[134].mxu0  ;;  %3574 = vmatmul.mubr.bf16.vlgmr.msra.gmra.mrb[144].mxu1 %v5059_v45  ;;  %3981 = vtanh.bf16 %v2726_v33  ;;  %v2679_v26 = vmul.bf16 %v2663_v48, %v2631_v10 }
 0x481   : > { %v3471_v25 = vpop.f32.mrb[135].mxu0 }
 0x482   : > { %v3472_v20 = vadd.f32 %v3471_v25, %v3470_v27  ;;  %v2695_v19 = vmul.bf16 %v2679_v26, %v2631_v10 }
 0x483   : > { %v3980_v55 = vpop.eup %3979 }
 0x484   : > { %v2632_v51 = vpack.c.bf16 %v3472_v20, %v3469_v12  ;;  %v2757_v9 = vadd.bf16 1065369472, %v3980_v55  ;;  %v2711_v52 = vadd.bf16 %v2695_v19, %v2631_v10 }
 0x486   : > { %v2664_v61 = vmul.bf16 1027030327, %v2632_v51  ;;  %v3473_v63 = vpop.f32.mrb[136].mxu0  ;;  %v5062_v57 = vmul.bf16 %v2757_v9, %v2645_v22  ;;  %v2727_v54 = vmul.bf16 1061961548, %v2711_v52 }
 0x487   : > { %v3474_v21 = vpop.f32.mrb[137].mxu0  ;;  %v2648_v10 = vmul.bf16 1056980736, %v2632_v51 }
 0x488   : > { %v3475_v5 = vadd.f32 %v3474_v21, %v3473_v63  ;;  %v3476_v34 = vpop.f32.mrb[138].mxu0  ;;  %3577 = vmatprep.mubr.bf16.mxu1 %v5062_v57  ;;  %3983 = vtanh.bf16 %v2727_v54  ;;  %v2680_v46 = vmul.bf16 %v2664_v61, %v2632_v51 }
 0x489   : > { %v3477_v59 = vpop.f32.mrb[139].mxu0 }
 0x48a   : > { %v3478_v40 = vadd.f32 %v3477_v59, %v3476_v34  ;;  %v2696_v3 = vmul.bf16 %v2680_v46, %v2632_v51 }
 0x48b   : > { %v3982_v6 = vpop.eup %3981 }
 0x48c   : > { %v2633_v31 = vpack.c.bf16 %v3478_v40, %v3475_v5  ;;  %v2758_v15 = vadd.bf16 1065369472, %v3982_v6  ;;  %v2712_v18 = vadd.bf16 %v2696_v3, %v2632_v51 }
 0x48e   : > { %v2665_v50 = vmul.bf16 1027030327, %v2633_v31  ;;  %v3479_v36 = vpop.f32.mrb[140].mxu0  ;;  %v5065_v1 = vmul.bf16 %v2758_v15, %v2646_v47  ;;  %v2728_v49 = vmul.bf16 1061961548, %v2712_v18 }
 0x48f   : > { %v3480_v23 = vpop.f32.mrb[141].mxu0  ;;  %v2649_v51 = vmul.bf16 1056980736, %v2633_v31 }
 0x490   : > { %v3481_v53 = vadd.f32 %v3480_v23, %v3479_v36  ;;  %v3482_v41 = vpop.f32.mrb[142].mxu0  ;;  %3578 = vmatmul.mubr.bf16.gmra.mrb[148].mxu1 %v5065_v1  ;;  %3985 = vtanh.bf16 %v2728_v49  ;;  %v2681_v60 = vmul.bf16 %v2665_v50, %v2633_v31 }
 0x491   : > { %v3483_v32 = vpop.f32.mrb[143].mxu0 }
 0x492   : > { %v3484_v8 = vadd.f32 %v3483_v32, %v3482_v41  ;;  %v2697_v39 = vmul.bf16 %v2681_v60, %v2633_v31 }
 0x493   : > { %v3984_v56 = vpop.eup %3983 }
 0x494   : > { %v2634_v24 = vpack.c.bf16 %v3484_v8, %v3481_v53  ;;  %v2759_v58 = vadd.bf16 1065369472, %v3984_v56  ;;  %v2713_v44 = vadd.bf16 %v2697_v39, %v2633_v31 }
 0x496   : > { %v2666_v4 = vmul.bf16 1027030327, %v2634_v24  ;;  %v3485_v13 = vpop.f32.mrb[144].mxu0  ;;  %v5068_v62 = vmul.bf16 %v2759_v58, %v2647_v35  ;;  %v2729_v28 = vmul.bf16 1061961548, %v2713_v44 }
 0x497   : > { %v3486_v43 = vpop.f32.mrb[145].mxu0  ;;  %v2650_v31 = vmul.bf16 1056980736, %v2634_v24 }
 0x498   : > { %v3487_v37 = vadd.f32 %v3486_v43, %v3485_v13  ;;  %v3488_v17 = vpop.f32.mrb[146].mxu0  ;;  %3581 = vmatprep.mubr.bf16.mxu1 %v5068_v62  ;;  %3987 = vtanh.bf16 %v2729_v28  ;;  %v2682_v7 = vmul.bf16 %v2666_v4, %v2634_v24 }
 0x499   : > { %v3489_v42 = vpop.f32.mrb[147].mxu0 }
 0x49a   : > { %v3490_v2 = vadd.f32 %v3489_v42, %v3488_v17  ;;  %v2698_v11 = vmul.bf16 %v2682_v7, %v2634_v24 }
 0x49b   : > { %v3986_v14 = vpop.eup %3985 }
 0x49c   : > { %v2635_v29 = vpack.c.bf16 %v3490_v2, %v3487_v37  ;;  %v2760_v48 = vadd.bf16 1065369472, %v3986_v14  ;;  %v2714_v30 = vadd.bf16 %v2698_v11, %v2634_v24 }
 0x49e   : > { %v2667_v33 = vmul.bf16 1027030327, %v2635_v29  ;;  %v3491_v16 = vpop.f32.mrb[148].mxu0  ;;  %v5071_v12 = vmul.bf16 %v2760_v48, %v2648_v10  ;;  %v2730_v27 = vmul.bf16 1061961548, %v2714_v30 }
 0x49f   : > { %v3492_v26 = vpop.f32.mrb[149].mxu0  ;;  %v2651_v24 = vmul.bf16 1056980736, %v2635_v29 }
 0x4a0   : > { %v3493_v25 = vadd.f32 %v3492_v26, %v3491_v16  ;;  %v3494_v20 = vpop.f32.mrb[150].mxu0  ;;  %3582 = vmatmul.mubr.bf16.gmra.mrb[152].mxu1 %v5071_v12  ;;  %3989 = vtanh.bf16 %v2730_v27  ;;  %v2683_v19 = vmul.bf16 %v2667_v33, %v2635_v29 }
 0x4a1   : > { %v3495_v55 = vpop.f32.mrb[151].mxu0 }
 0x4a2   : > { %v3496_v22 = vadd.f32 %v3495_v55, %v3494_v20  ;;  %v2699_v9 = vmul.bf16 %v2683_v19, %v2635_v29 }
 0x4a3   : > { %v3988_v52 = vpop.eup %3987 }
 0x4a4   : > { %v2636_v61 = vpack.c.bf16 %v3496_v22, %v3493_v25  ;;  %v2761_v63 = vadd.bf16 1065369472, %v3988_v52  ;;  %v2715_v54 = vadd.bf16 %v2699_v9, %v2635_v29 }
 0x4a6   : > { %v2668_v21 = vmul.bf16 1027030327, %v2636_v61  ;;  %v3497_v5 = vpop.f32.mrb[152].mxu0  ;;  %v5074_v34 = vmul.bf16 %v2761_v63, %v2649_v51  ;;  %v2731_v46 = vmul.bf16 1061961548, %v2715_v54 }
 0x4a7   : > { %v3498_v59 = vpop.f32.mrb[153].mxu0  ;;  %v2652_v29 = vmul.bf16 1056980736, %v2636_v61 }
 0x4a8   : > { %v3499_v40 = vadd.f32 %v3498_v59, %v3497_v5  ;;  %v3500_v3 = vpop.f32.mrb[154].mxu0  ;;  %3585 = vmatprep.mubr.bf16.mxu1 %v5074_v34  ;;  %3991 = vtanh.bf16 %v2731_v46  ;;  %v2684_v6 = vmul.bf16 %v2668_v21, %v2636_v61 }
 0x4a9   : > { %v3501_v47 = vpop.f32.mrb[155].mxu0 }
 0x4aa   : > { %v3502_v15 = vadd.f32 %v3501_v47, %v3500_v3  ;;  %v2700_v18 = vmul.bf16 %v2684_v6, %v2636_v61 }
 0x4ab   : > { %v3990_v50 = vpop.eup %3989 }
 0x4ac   : > { %v2637_v36 = vpack.c.bf16 %v3502_v15, %v3499_v40  ;;  %v2762_v49 = vadd.bf16 1065369472, %v3990_v50  ;;  %v2716_v23 = vadd.bf16 %v2700_v18, %v2636_v61 }
 0x4ae   : > { %v2669_v53 = vmul.bf16 1027030327, %v2637_v36  ;;  %v3503_v41 = vpop.f32.mrb[156].mxu0  ;;  %v5077_v60 = vmul.bf16 %v2762_v49, %v2650_v31  ;;  %v2732_v32 = vmul.bf16 1061961548, %v2716_v23 }
 0x4af   : > { %v3504_v8 = vpop.f32.mrb[157].mxu0  ;;  %v2653_v61 = vmul.bf16 1056980736, %v2637_v36 }
 0x4b0   : > { %v3505_v39 = vadd.f32 %v3504_v8, %v3503_v41  ;;  %v3506_v56 = vpop.f32.mrb[158].mxu0  ;;  %3586 = vmatmul.mubr.bf16.gmra.mrb[156].mxu1 %v5077_v60  ;;  %3993 = vtanh.bf16 %v2732_v32  ;;  %v2685_v35 = vmul.bf16 %v2669_v53, %v2637_v36 }
 0x4b1   : > { %v3507_v58 = vpop.f32.mrb[159].mxu0 }
 0x4b2   : > { %v3508_v44 = vadd.f32 %v3507_v58, %v3506_v56  ;;  %v2701_v4 = vmul.bf16 %v2685_v35, %v2637_v36 }
 0x4b3   : > { %v3992_v13 = vpop.eup %3991 }
 0x4b4   : > { %v2638_v28 = vpack.c.bf16 %v3508_v44, %v3505_v39  ;;  %v2763_v43 = vadd.bf16 1065369472, %v3992_v13  ;;  %v2717_v37 = vadd.bf16 %v2701_v4, %v2637_v36 }
 0x4b6   : > { %v2670_v17 = vmul.bf16 1027030327, %v2638_v28  ;;  %v3509_v7 = vpop.f32.mrb[160].mxu0  ;;  %v5080_v42 = vmul.bf16 %v2763_v43, %v2651_v24  ;;  %v2733_v2 = vmul.bf16 1061961548, %v2717_v37 }
 0x4b7   : > { %v3510_v11 = vpop.f32.mrb[161].mxu0  ;;  %v2654_v36 = vmul.bf16 1056980736, %v2638_v28 }
 0x4b8   : > { %v3511_v14 = vadd.f32 %v3510_v11, %v3509_v7  ;;  %v3512_v10 = vpop.f32.mrb[162].mxu0  ;;  %3589 = vmatprep.mubr.bf16.mxu1 %v5080_v42  ;;  %3995 = vtanh.bf16 %v2733_v2  ;;  %v2686_v48 = vmul.bf16 %v2670_v17, %v2638_v28 }
 0x4b9   : > { %v3513_v30 = vpop.f32.mrb[163].mxu0 }
 0x4ba   : > { %v3514_v33 = vadd.f32 %v3513_v30, %v3512_v10  ;;  %v2702_v16 = vmul.bf16 %v2686_v48, %v2638_v28 }
 0x4bb   : > { %v3994_v27 = vpop.eup %3993 }
 0x4bc   : > { %v2639_v26 = vpack.c.bf16 %v3514_v33, %v3511_v14  ;;  %v2764_v25 = vadd.bf16 1065369472, %v3994_v27  ;;  %v2718_v20 = vadd.bf16 %v2702_v16, %v2638_v28 }
 0x4be   : > { %v2671_v19 = vmul.bf16 1027030327, %v2639_v26  ;;  %v3515_v55 = vpop.f32.mrb[164].mxu0  ;;  %v5083_v22 = vmul.bf16 %v2764_v25, %v2652_v29  ;;  %v2734_v9 = vmul.bf16 1061961548, %v2718_v20 }
 0x4bf   : > { %v3516_v52 = vpop.f32.mrb[165].mxu0  ;;  %v2655_v28 = vmul.bf16 1056980736, %v2639_v26 }
 0x4c0   : > { %v3517_v51 = vadd.f32 %v3516_v52, %v3515_v55  ;;  %v3518_v63 = vpop.f32.mrb[166].mxu0  ;;  %3590 = vmatmul.mubr.bf16.gmra.mrb[160].mxu1 %v5083_v22  ;;  %3997 = vtanh.bf16 %v2734_v9  ;;  %v2687_v54 = vmul.bf16 %v2671_v19, %v2639_v26 }
 0x4c1   : > { %v3519_v21 = vpop.f32.mrb[167].mxu0 }
 0x4c2   : > { %v3520_v5 = vadd.f32 %v3519_v21, %v3518_v63  ;;  %v2703_v46 = vmul.bf16 %v2687_v54, %v2639_v26 }
 0x4c3   : > { %v3996_v59 = vpop.eup %3995 }
 0x4c4   : > { %v2640_v40 = vpack.c.bf16 %v3520_v5, %v3517_v51  ;;  %v2765_v3 = vadd.bf16 1065369472, %v3996_v59  ;;  %v2719_v6 = vadd.bf16 %v2703_v46, %v2639_v26 }
 0x4c6   : > { %v2672_v47 = vmul.bf16 1027030327, %v2640_v40  ;;  %v3521_v15 = vpop.f32.mrb[168].mxu0  ;;  %v5086_v18 = vmul.bf16 %v2765_v3, %v2653_v61  ;;  %v2735_v50 = vmul.bf16 1061961548, %v2719_v6 }
 0x4c7   : > { %v3522_v31 = vpop.f32.mrb[169].mxu0  ;;  %v2656_v55 = vmul.bf16 1056980736, %v2640_v40 }
 0x4c8   : > { %v3523_v49 = vadd.f32 %v3522_v31, %v3521_v15  ;;  %v3524_v23 = vpop.f32.mrb[170].mxu0  ;;  %3593 = vmatprep.mubr.bf16.mxu1 %v5086_v18  ;;  %3999 = vtanh.bf16 %v2735_v50  ;;  %v2688_v53 = vmul.bf16 %v2672_v47, %v2640_v40 }
 0x4c9   : > { %v3525_v41 = vpop.f32.mrb[171].mxu0 }
 0x4ca   : > { %v3526_v32 = vadd.f32 %v3525_v41, %v3524_v23  ;;  %v2704_v8 = vmul.bf16 %v2688_v53, %v2640_v40 }
 0x4cb   : > { %v3998_v39 = vpop.eup %3997 }
 0x4cc   : > { %v2641_v56 = vpack.c.bf16 %v3526_v32, %v3523_v49  ;;  %v2766_v35 = vadd.bf16 1065369472, %v3998_v39  ;;  %v2720_v58 = vadd.bf16 %v2704_v8, %v2640_v40 }
 0x4ce   : > { %v2673_v44 = vmul.bf16 1027030327, %v2641_v56  ;;  %v3527_v4 = vpop.f32.mrb[172].mxu0  ;;  %v5089_v13 = vmul.bf16 %v2766_v35, %v2654_v36  ;;  %v2736_v24 = vmul.bf16 1061961548, %v2720_v58 }
 0x4cf   : > { %v3528_v43 = vpop.f32.mrb[173].mxu0  ;;  %v2657_v54 = vmul.bf16 1056980736, %v2641_v56 }
 0x4d0   : > { %v3529_v37 = vadd.f32 %v3528_v43, %v3527_v4  ;;  %v3530_v17 = vpop.f32.mrb[174].mxu0  ;;  %3594 = vmatmul.mubr.bf16.gmra.mrb[164].mxu1 %v5089_v13  ;;  %4001 = vtanh.bf16 %v2736_v24  ;;  %v2689_v7 = vmul.bf16 %v2673_v44, %v2641_v56 }
 0x4d1   : > { %v3531_v2 = vpop.f32.mrb[175].mxu0 }
 0x4d2   : > { %v3532_v11 = vadd.f32 %v3531_v2, %v3530_v17  ;;  %v2705_v14 = vmul.bf16 %v2689_v7, %v2641_v56 }
 0x4d3   : > { %v4000_v10 = vpop.eup %3999 }
 0x4d4   : > { %v2642_v48 = vpack.c.bf16 %v3532_v11, %v3529_v37  ;;  %v2767_v30 = vadd.bf16 1065369472, %v4000_v10  ;;  %v2721_v33 = vadd.bf16 %v2705_v14, %v2641_v56 }
 0x4d6   : > { %v2674_v16 = vmul.bf16 1027030327, %v2642_v48  ;;  %v5092_v27 = vmul.bf16 %v2767_v30, %v2655_v28  ;;  %v2737_v29 = vmul.bf16 1061961548, %v2721_v33  ;;  %v2658_v59 = vmul.bf16 1056980736, %v2642_v48 }
 0x4d8   : > { %3597 = vmatprep.mubr.bf16.mxu1 %v5092_v27  ;;  %4003 = vtanh.bf16 %v2737_v29  ;;  %v2690_v25 = vmul.bf16 %v2674_v16, %v2642_v48 }
 0x4da   : > { %v2706_v20 = vmul.bf16 %v2690_v25, %v2642_v48 }
 0x4db   : > { %v4002_v19 = vpop.eup %4001 }
 0x4dc   : > { %v2768_v9 = vadd.bf16 1065369472, %v4002_v19  ;;  %v2722_v52 = vadd.bf16 %v2706_v20, %v2642_v48 }
 0x4de   : > { %v5095_v51 = vmul.bf16 %v2768_v9, %v2656_v55  ;;  %v2738_v63 = vmul.bf16 1061961548, %v2722_v52 }
 0x4e0   : > { %3598 = vmatmul.mubr.bf16.gmra.mrb[168].mxu1 %v5095_v51  ;;  %4005 = vtanh.bf16 %v2738_v63 }
 0x4e3   : > { %v4004_v26 = vpop.eup %4003 }
 0x4e4   : > { %v2769_v21 = vadd.bf16 1065369472, %v4004_v26 }
 0x4e6   : > { %v5098_v5 = vmul.bf16 %v2769_v21, %v2657_v54 }
 0x4e8   : > { %3601 = vmatprep.mubr.bf16.mxu1 %v5098_v5 }
 0x4eb   : > { %v4006_v46 = vpop.eup %4005 }
 0x4ec   : > { %v2770_v61 = vadd.bf16 1065369472, %v4006_v46 }
 0x4ee   : > { %v5101_v40 = vmul.bf16 %v2770_v61, %v2658_v59 }
 0x4f0   : > { %3602 = vmatmul.mubr.bf16.gmra.mrb[172].mxu1 %v5101_v40 }
 0x553   : > { %v3575_v3 = vpop.f32.mrb[144].mxu1 }
 0x554   : > { %v2885_v6 = vpop.f32.mrb[145].mxu1 }
 0x555   : > { %v3576_v47 = vpop.f32.mrb[146].mxu1 }
 0x556   : > { %v3013_v15 = vpack.c.bf16 %v3576_v47, %v3575_v3  ;;  %v2888_v50 = vpop.f32.mrb[147].mxu1 }
 0x557   : > { %v3012_v31 = vpack.c.bf16 %v2888_v50, %v2885_v6 }
 0x558   : > { %v3029_v49 = vadd.bf16 %v3013_v15, %v5059_v45 }
 0x559   : > { %v3028_v23 = vadd.bf16 %v3012_v31, %v5056_v38 }
 0x55a   : > { %v3045_v53 = vmax.bf16 %v4269_v0, %v3029_v49 }
 0x55b   : > { %v3044_v41 = vmax.bf16 %v4269_v0, %v3028_v23 }
 0x55c   : > { %v3062_v32 = vunpack.c.l.bf16 %v3045_v53  ;;  %v3063_v8 = vunpack.c.h.bf16 %v3045_v53 }
 0x55d   : > { %v3060_v39 = vunpack.c.l.bf16 %v3044_v41  ;;  %v3061_v56 = vunpack.c.h.bf16 %v3044_v41 }
 0x55e   : > { %3094 = vst [vmem:[%s5109_s17 + $0x10] sm:$0xff] %v3062_v32  ;;  %3095 = vst [vmem:[%s5109_s17 + $0x18] sm:$0xff] %v3063_v8 }
 0x55f   : > { %3092 = vst [vmem:[%s5109_s17] sm:$0xff] %v3060_v39  ;;  %3093 = vst [vmem:[%s5109_s17 + $0x8] sm:$0xff] %v3061_v56 }
 0x563   : > { %v3579_v38 = vpop.f32.mrb[148].mxu1 }
 0x564   : > { %v2901_v45 = vpop.f32.mrb[149].mxu1 }
 0x565   : > { %v3580_v36 = vpop.f32.mrb[150].mxu1 }
 0x566   : > { %v3015_v35 = vpack.c.bf16 %v3580_v36, %v3579_v38  ;;  %v2904_v58 = vpop.f32.mrb[151].mxu1 }
 0x567   : > { %v3014_v44 = vpack.c.bf16 %v2904_v58, %v2901_v45 }
 0x568   : > { %v3031_v4 = vadd.bf16 %v3015_v35, %v5065_v1 }
 0x569   : > { %v3030_v24 = vadd.bf16 %v3014_v44, %v5062_v57 }
 0x56a   : > { %v3047_v43 = vmax.bf16 %v4269_v0, %v3031_v4 }
 0x56b   : > { %v3046_v37 = vmax.bf16 %v4269_v0, %v3030_v24 }
 0x56c   : > { %v3066_v17 = vunpack.c.l.bf16 %v3047_v43  ;;  %v3067_v7 = vunpack.c.h.bf16 %v3047_v43 }
 0x56d   : > { %v3064_v2 = vunpack.c.l.bf16 %v3046_v37  ;;  %v3065_v11 = vunpack.c.h.bf16 %v3046_v37 }
 0x56e   : > { %3098 = vst [vmem:[%s5109_s17 + $0x30] sm:$0xff] %v3066_v17  ;;  %3099 = vst [vmem:[%s5109_s17 + $0x38] sm:$0xff] %v3067_v7 }
 0x56f   : > { %3096 = vst [vmem:[%s5109_s17 + $0x20] sm:$0xff] %v3064_v2  ;;  %3097 = vst [vmem:[%s5109_s17 + $0x28] sm:$0xff] %v3065_v11 }
 0x573   : > { %v3583_v14 = vpop.f32.mrb[152].mxu1 }
 0x574   : > { %v2917_v10 = vpop.f32.mrb[153].mxu1 }
 0x575   : > { %v3584_v1 = vpop.f32.mrb[154].mxu1 }
 0x576   : > { %v3017_v57 = vpack.c.bf16 %v3584_v1, %v3583_v14  ;;  %v2920_v48 = vpop.f32.mrb[155].mxu1 }
 0x577   : > { %v3016_v28 = vpack.c.bf16 %v2920_v48, %v2917_v10 }
 0x578   : > { %v3033_v30 = vadd.bf16 %v3017_v57, %v5071_v12 }
 0x579   : > { %v3032_v33 = vadd.bf16 %v3016_v28, %v5068_v62 }
 0x57a   : > { %v3049_v16 = vmax.bf16 %v4269_v0, %v3033_v30 }
 0x57b   : > { %v3048_v29 = vmax.bf16 %v4269_v0, %v3032_v33 }
 0x57c   : > { %v3070_v25 = vunpack.c.l.bf16 %v3049_v16  ;;  %v3071_v20 = vunpack.c.h.bf16 %v3049_v16 }
 0x57d   : > { %v3068_v19 = vunpack.c.l.bf16 %v3048_v29  ;;  %v3069_v55 = vunpack.c.h.bf16 %v3048_v29 }
 0x57e   : > { %3102 = vst [vmem:[%s5109_s17 + $0x50] sm:$0xff] %v3070_v25  ;;  %3103 = vst [vmem:[%s5109_s17 + $0x58] sm:$0xff] %v3071_v20 }
 0x57f   : > { %3100 = vst [vmem:[%s5109_s17 + $0x40] sm:$0xff] %v3068_v19  ;;  %3101 = vst [vmem:[%s5109_s17 + $0x48] sm:$0xff] %v3069_v55 }
 0x583   : > { %v3587_v9 = vpop.f32.mrb[156].mxu1 }
 0x584   : > { %v2933_v52 = vpop.f32.mrb[157].mxu1 }
 0x585   : > { %v3588_v12 = vpop.f32.mrb[158].mxu1 }
 0x586   : > { %v3019_v62 = vpack.c.bf16 %v3588_v12, %v3587_v9  ;;  %v2936_v63 = vpop.f32.mrb[159].mxu1 }
 0x587   : > { %v3018_v26 = vpack.c.bf16 %v2936_v63, %v2933_v52 }
 0x588   : > { %v3035_v54 = vadd.bf16 %v3019_v62, %v5077_v60 }
 0x589   : > { %v3034_v21 = vadd.bf16 %v3018_v26, %v5074_v34 }
 0x58a   : > { %v3051_v46 = vmax.bf16 %v4269_v0, %v3035_v54 }
 0x58b   : > { %v3050_v59 = vmax.bf16 %v4269_v0, %v3034_v21 }
 0x58c   : > { %v3074_v61 = vunpack.c.l.bf16 %v3051_v46  ;;  %v3075_v3 = vunpack.c.h.bf16 %v3051_v46 }
 0x58d   : > { %v3072_v6 = vunpack.c.l.bf16 %v3050_v59  ;;  %v3073_v47 = vunpack.c.h.bf16 %v3050_v59 }
 0x58e   : > { %3106 = vst [vmem:[%s5109_s17 + $0x70] sm:$0xff] %v3074_v61  ;;  %3107 = vst [vmem:[%s5109_s17 + $0x78] sm:$0xff] %v3075_v3 }
 0x58f   : > { %3104 = vst [vmem:[%s5109_s17 + $0x60] sm:$0xff] %v3072_v6  ;;  %3105 = vst [vmem:[%s5109_s17 + $0x68] sm:$0xff] %v3073_v47 }
 0x593   : > { %v3591_v15 = vpop.f32.mrb[160].mxu1 }
 0x594   : > { %v2949_v50 = vpop.f32.mrb[161].mxu1 }
 0x595   : > { %v3592_v60 = vpop.f32.mrb[162].mxu1 }
 0x596   : > { %v3021_v34 = vpack.c.bf16 %v3592_v60, %v3591_v15  ;;  %v2952_v31 = vpop.f32.mrb[163].mxu1 }
 0x597   : > { %v3020_v49 = vpack.c.bf16 %v2952_v31, %v2949_v50 }
 0x598   : > { %v3037_v23 = vadd.bf16 %v3021_v34, %v5083_v22 }
 0x599   : > { %v3036_v53 = vadd.bf16 %v3020_v49, %v5080_v42 }
 0x59a   : > { %v3053_v41 = vmax.bf16 %v4269_v0, %v3037_v23 }
 0x59b   : > { %v3052_v32 = vmax.bf16 %v4269_v0, %v3036_v53 }
 0x59c   : > { %v3078_v8 = vunpack.c.l.bf16 %v3053_v41  ;;  %v3079_v39 = vunpack.c.h.bf16 %v3053_v41 }
 0x59d   : > { %v3076_v56 = vunpack.c.l.bf16 %v3052_v32  ;;  %v3077_v38 = vunpack.c.h.bf16 %v3052_v32 }
 0x59e   : > { %3110 = vst [vmem:[%s5109_s17 + $0x90] sm:$0xff] %v3078_v8  ;;  %3111 = vst [vmem:[%s5109_s17 + $0x98] sm:$0xff] %v3079_v39 }
 0x59f   : > { %3108 = vst [vmem:[%s5109_s17 + $0x80] sm:$0xff] %v3076_v56  ;;  %3109 = vst [vmem:[%s5109_s17 + $0x88] sm:$0xff] %v3077_v38 }
 0x5a3   : > { %v3595_v45 = vpop.f32.mrb[164].mxu1 }
 0x5a4   : > { %v2965_v36 = vpop.f32.mrb[165].mxu1 }
 0x5a5   : > { %v3596_v22 = vpop.f32.mrb[166].mxu1 }
 0x5a6   : > { %v3023_v42 = vpack.c.bf16 %v3596_v22, %v3595_v45  ;;  %v2968_v35 = vpop.f32.mrb[167].mxu1 }
 0x5a7   : > { %v3022_v58 = vpack.c.bf16 %v2968_v35, %v2965_v36 }
 0x5a8   : > { %v3039_v44 = vadd.bf16 %v3023_v42, %v5089_v13 }
 0x5a9   : > { %v3038_v4 = vadd.bf16 %v3022_v58, %v5086_v18 }
 0x5aa   : > { %v3055_v24 = vmax.bf16 %v4269_v0, %v3039_v44 }
 0x5ab   : > { %v3054_v43 = vmax.bf16 %v4269_v0, %v3038_v4 }
 0x5ac   : > { %v3082_v37 = vunpack.c.l.bf16 %v3055_v24  ;;  %v3083_v17 = vunpack.c.h.bf16 %v3055_v24 }
 0x5ad   : > { %v3080_v7 = vunpack.c.l.bf16 %v3054_v43  ;;  %v3081_v2 = vunpack.c.h.bf16 %v3054_v43 }
 0x5ae   : > { %3114 = vst [vmem:[%s5109_s17 + $0xb0] sm:$0xff] %v3082_v37  ;;  %3115 = vst [vmem:[%s5109_s17 + $0xb8] sm:$0xff] %v3083_v17 }
 0x5af   : > { %3112 = vst [vmem:[%s5109_s17 + $0xa0] sm:$0xff] %v3080_v7  ;;  %3113 = vst [vmem:[%s5109_s17 + $0xa8] sm:$0xff] %v3081_v2 }
 0x5b3   : > { %v3599_v11 = vpop.f32.mrb[168].mxu1 }
 0x5b4   : > { %v2981_v14 = vpop.f32.mrb[169].mxu1 }
 0x5b5   : > { %v3600_v13 = vpop.f32.mrb[170].mxu1 }
 0x5b6   : > { %v3025_v18 = vpack.c.bf16 %v3600_v13, %v3599_v11  ;;  %v2984_v10 = vpop.f32.mrb[171].mxu1 }
 0x5b7   : > { %v3024_v1 = vpack.c.bf16 %v2984_v10, %v2981_v14 }
 0x5b8   : > { %v3041_v57 = vadd.bf16 %v3025_v18, %v5095_v51 }
 0x5b9   : > { %v3040_v48 = vadd.bf16 %v3024_v1, %v5092_v27 }
 0x5ba   : > { %v3057_v28 = vmax.bf16 %v4269_v0, %v3041_v57 }
 0x5bb   : > { %v3056_v30 = vmax.bf16 %v4269_v0, %v3040_v48 }
 0x5bc   : > { %v3086_v33 = vunpack.c.l.bf16 %v3057_v28  ;;  %v3087_v16 = vunpack.c.h.bf16 %v3057_v28 }
 0x5bd   : > { %v3084_v29 = vunpack.c.l.bf16 %v3056_v30  ;;  %v3085_v25 = vunpack.c.h.bf16 %v3056_v30 }
 0x5be   : > { %3118 = vst [vmem:[%s5109_s17 + $0xd0] sm:$0xff] %v3086_v33  ;;  %3119 = vst [vmem:[%s5109_s17 + $0xd8] sm:$0xff] %v3087_v16 }
 0x5bf   : > { %3116 = vst [vmem:[%s5109_s17 + $0xc0] sm:$0xff] %v3084_v29  ;;  %3117 = vst [vmem:[%s5109_s17 + $0xc8] sm:$0xff] %v3085_v25 }
 0x5c3   : > { %v3603_v20 = vpop.f32.mrb[172].mxu1 }
 0x5c4   : > { %v2997_v19 = vpop.f32.mrb[173].mxu1 }
 0x5c5   : > { %v3604_v55 = vpop.f32.mrb[174].mxu1 }
 0x5c6   : > { %v3027_v51 = vpack.c.bf16 %v3604_v55, %v3603_v20  ;;  %v3000_v27 = vpop.f32.mrb[175].mxu1 }
 0x5c7   : > { %v3026_v9 = vpack.c.bf16 %v3000_v27, %v2997_v19 }
 0x5c8   : > { %v3043_v52 = vadd.bf16 %v3027_v51, %v5101_v40 }
 0x5c9   : > { %v3042_v12 = vadd.bf16 %v3026_v9, %v5098_v5 }
 0x5ca   : > { %v3059_v62 = vmax.bf16 %v4269_v0, %v3043_v52 }
 0x5cb   : > { %v3058_v63 = vmax.bf16 %v4269_v0, %v3042_v12 }
 0x5cc   : > { %v3090_v26 = vunpack.c.l.bf16 %v3059_v62  ;;  %v3091_v54 = vunpack.c.h.bf16 %v3059_v62 }
 0x5cd   : > { %v3088_v5 = vunpack.c.l.bf16 %v3058_v63  ;;  %v3089_v40 = vunpack.c.h.bf16 %v3058_v63 }
 0x5ce   : > { %3122 = vst [vmem:[%s5109_s17 + $0xf0] sm:$0xff] %v3090_v26  ;;  %3123 = vst [vmem:[%s5109_s17 + $0xf8] sm:$0xff] %v3091_v54 }
 0x5cf   : > { %3120 = vst [vmem:[%s5109_s17 + $0xe0] sm:$0xff] %v3088_v5  ;;  %3121 = vst [vmem:[%s5109_s17 + $0xe8] sm:$0xff] %v3089_v40 }
 0x5d0   : > { %4190 = shalt.err (!%p4187_p8)
}
 0x5d1   : > { %s4191_s10 = scalar_lea.hbm %s5172_s29, 4096  ;;  %s4195_s28 = scalar_lea.hbm %s5228_s6, 8192 }
 0x5d2   : > { %p4192_p6 = scmp.ne.s32.totalorder %s5172_s29, %s4191_s10  ;;  %p4196_p1 = scmp.lt.u32.totalorder %s5172_s29, %s5228_s6 }
 0x5d3   : > { %p4197_p0 = scmp.lt.u32.totalorder %s4195_s28, %s4191_s10  ;;  %p4199_p2 = scmp.lt.u32.totalorder %s4191_s10, %s5172_s29 }
 0x5d4   : > { %p4193_p9 = pnand %p4192_p6, %p5247_p7 }
 0x5d5   : > { %p4198_p5 = por %p4197_p0, %p4196_p1 }
 0x5d6   : > { %p4194_p4 = pneg %p4193_p9 }
 0x5d7   : > { %p4200_p10 = por %p4199_p2, %p4198_p5 }
 0x5d9   : > { %p4201_p11 = pnand %p4200_p10, %p4194_p4 }
 0x5db   : > { %4204 = shalt.err (!%p4201_p11)
}
 0x5dc   : > { %s4271_s19 = smov 128   ;;  %s4272_s9 = smov 8  }
 0x5dd   : > { %3643 = dma.vmem_to_hbm [thread:$0]  (%p5247_p7), %s5174_s26, 4096, %s5172_s29, %s3125_s27, %s4271_s19, %s4271_s19, %s4272_s9  }
 0x5de PF: > { %s3153_s13 = sand.u32 1, %s4243_s21   ;;  %p5248_p3 = scmp.ne.s32.totalorder %s5238_s25, 0 }
 0x5df   : > { %p5249_p12 = scmp.ge.s32.totalorder %s4255_s24, 2  ;;  %s3154_s30 = scalar_lea.sflag [#allocation4], %s3153_s13 }
 0x5e1   : > { %p3666_p13 = pnand %p5249_p12, %p5248_p3 }
 0x5e3   : > { %4238 = dma.done.wait (!%p3666_p13), %s3154_s30, 4096  }
 0x5e4   : > { %4240 = vsyncadd (!%p3666_p13), %s3154_s30, 4294963200  ;;  %p22_p8 = scmp.ge.s32.totalorder %s4468_s15, 4   ;;  %s5250_s21 = smov %s4247_s22 }
 0x5e5   : > { %s5251_s22 = smov %s4251_s23  ;;  %s5252_s23 = smov %s4480_s7 }
 0x5e6   : > { %s5253_s24 = smov %s4468_s15  ;;  %24 = sbr.rel (!%p22_p8) target bundleno = 8 (0x8), region = 109 }
 0x5ed   :  { %3159 = vsyncpa [#allocation3], 1 }
 0x5ee   :  { %3161 = vsyncpa [#allocation3 + $0x1], 1 }
 0x5ef   :  { %3162 = vsyncpa [#allocation6], 1 }
 0x5f0   :  { %3163 = vsyncpa [#allocation9], 1 }
 0x5f1   :  { %3164 = vsyncpa [#allocation12], 1 }
 0x5f2   :  { %3165 = vsyncpa [#allocation4], 1 }
 0x5f3   :  { %3167 = vsyncpa [#allocation4 + $0x1], 1 }

</bundles_post_ra>
